<compile_context>
chip_gen: v7x
topology: tpu7x:2x2x1
jax: 0.10.0
libtpu: 0.0.40
codegen_flags: <defaults>
</compile_context>

<pallas_src>
import jax
import jax.numpy as jnp
from jax import lax
from jax.experimental import pallas as pl
from jax.experimental.pallas import tpu as pltpu

BN_EPS = 1e-5
LANE = 128
SUBLANE = 8


def _round_up(x, m):
    return ((x + m - 1) // m) * m


def _vmem_limit_bytes():
    # Default scoped VMEM is only 16-32 MiB; raise it, but stay inside the
    # physical capacity of the generation (v5e/v6e: 128 MiB, v7x: 64 MiB).
    try:
        cap = int(pltpu.get_tpu_info().vmem_capacity_bytes)
    except Exception:
        cap = 64 << 20
    return max(32 << 20, min(cap - (16 << 20), 100 << 20))


VMEM_LIMIT = _vmem_limit_bytes()


def _pick_tile_h(H, W, cin_p, cout_p, vmem_budget):
    """Largest row-strip height TH (a divisor of H) whose working set fits the budget."""
    wh = _round_up(W + 2, SUBLANE)
    per_row = wh * (2 * 2 * cin_p      # double-buffered bf16 input strip rows
                    + 6 * cin_p        # f32 activated copy + bf16 recast
                    + 4 * cout_p       # f32 accumulator
                    + 2 * 2 * cout_p)  # double-buffered bf16 output block
    fixed = 2 * 9 * cin_p * cout_p * 2 + (2 << 20)
    th = max(1, (vmem_budget // 2 - fixed) // per_row)
    th = int(min(th, H))
    while H % th:
        th -= 1
    return th


# ---------------- fused Pallas kernel: halo conv3x3 (+optional input BN affine/ReLU)
# ---------------- + per-strip BatchNorm partial statistics --------------------------

def _make_conv_stats_kernel(TH, W, Wh, cin_p, cout_p, apply_input_act):
    """3x3 conv over haloed row strips + per-strip centred BN statistics.

    The strip lives in VMEM as a flat [(TH+3)*Wh, cin_p] matrix (row-major over
    (image row, image col)); every one of the 9 taps is then a *contiguous* row
    slice, so the conv is 9 accumulated MXU matmuls with no in-kernel gathers.
    Output rows whose column index >= W are junk (they straddle image rows);
    they are excluded from the statistics and sliced off outside the kernel.
    """
    inv_nt = 1.0 / float(TH * W)
    srows = (TH + 3) * Wh          # strip rows: TH data + 2 halo + 1 slack row

    def kernel(xpad_hbm, w9_ref, insc_ref, y_ref, st_ref, xb_ref, sem_ref):
        b = pl.program_id(0)
        h = pl.program_id(1)
        nh = pl.num_programs(1)

        def start_fetch(bb, hh, slot):
            pltpu.make_async_copy(
                xpad_hbm.at[bb, pl.ds(pl.multiple_of(hh * (TH * Wh), SUBLANE), srows)],
                xb_ref.at[slot], sem_ref.at[slot]).start()

        # Prime the per-image DMA chain, then keep one strip in flight (manual
        # double buffering; safe under a "parallel" batch axis because the chain
        # never crosses a batch boundary).
        @pl.when(h == 0)
        def _():
            start_fetch(b, h, 0)

        slot = h % 2
        pltpu.make_async_copy(xpad_hbm.at[0, pl.ds(0, srows)],
                              xb_ref.at[slot], sem_ref.at[slot]).wait()

        @pl.when(h + 1 < nh)
        def _():
            start_fetch(b, h + 1, 1 - slot)

        if apply_input_act:
            # Previous stage's BatchNorm affine + ReLU, fused into the input load.
            x = xb_ref[slot].astype(jnp.float32)
            x = jnp.maximum(x * insc_ref[0:1, :] + insc_ref[1:2, :], 0.0)
            # conv zero-padding must remain zero *after* the activation
            idx = lax.broadcasted_iota(jnp.int32, (srows, 1), 0)
            ccol = idx % Wh
            crow = idx // Wh
            pad = (ccol == 0) | (ccol == W + 1)
            pad = pad | ((crow == 0) & (h == 0)) | ((crow == TH + 1) & (h == nh - 1))
            xv = jnp.where(pad, 0.0, x).astype(jnp.bfloat16)
        else:
            xv = xb_ref[slot]

        acc = jnp.zeros((TH * Wh, cout_p), jnp.float32)
        for t in range(9):
            dy, dx = t // 3, t % 3
            off = dy * Wh + dx
            a = xv[off:off + TH * Wh, :]                       # contiguous row slice
            acc = acc + jnp.dot(a, w9_ref[t], preferred_element_type=jnp.float32)

        # Raw conv output of this strip (bf16, lane-dense, streamed to HBM).
        y_ref[...] = acc.reshape(1, TH * Wh, cout_p).astype(y_ref.dtype)

        # Per-strip centred statistics (stable); combined via Chan's formula outside.
        cidx = lax.broadcasted_iota(jnp.int32, (TH * Wh, 1), 0) % Wh
        valid = cidx < W
        s = jnp.sum(jnp.where(valid, acc, 0.0), axis=0, keepdims=True)
        mu = s * inv_nt
        d = acc - mu
        m2 = jnp.sum(jnp.where(valid, d * d, 0.0), axis=0, keepdims=True)
        st_ref[...] = jnp.concatenate([s, m2], axis=0).reshape(1, 1, 2, cout_p)

    return kernel


def _conv3x3_stats(x_pad_flat, w9, in_sc, H, W, Wh, th, apply_input_act):
    B = x_pad_flat.shape[0]
    cin_p = x_pad_flat.shape[-1]
    cout_p = w9.shape[-1]
    nH = H // th
    kernel = _make_conv_stats_kernel(th, W, Wh, cin_p, cout_p, apply_input_act)
    flops = 2 * B * H * Wh * 9 * cin_p * cout_p
    bytes_accessed = (x_pad_flat.size * 2 + w9.size * 2 + in_sc.size * 4
                      + B * H * Wh * cout_p * 2 + B * nH * 2 * cout_p * 4)
    return pl.pallas_call(
        kernel,
        out_shape=(jax.ShapeDtypeStruct((B, H * Wh, cout_p), jnp.bfloat16),
                   jax.ShapeDtypeStruct((B, nH, 2, cout_p), jnp.float32)),
        grid_spec=pltpu.PrefetchScalarGridSpec(
            num_scalar_prefetch=0,
            grid=(B, nH),
            in_specs=[
                pl.BlockSpec(memory_space=pl.ANY),   # haloed input, manual strip DMA
                # TODO(synk): constant-index blocks; pl.Buffered(1) would drop the
                # second pipeline buffer here and free VMEM for a taller strip.
                pl.BlockSpec((9, cin_p, cout_p), lambda b, h: (0, 0, 0)),
                pl.BlockSpec((2, cin_p), lambda b, h: (0, 0)),
            ],
            out_specs=(
                pl.BlockSpec((1, th * Wh, cout_p), lambda b, h: (b, h, 0)),
                pl.BlockSpec((1, 1, 2, cout_p), lambda b, h: (b, h, 0, 0)),
            ),
            scratch_shapes=[
                pltpu.VMEM((2, (th + 3) * Wh, cin_p), jnp.bfloat16),
                pltpu.SemaphoreType.DMA((2,)),
            ]),
        compiler_params=pltpu.CompilerParams(
            dimension_semantics=("parallel", "arbitrary"),
            vmem_limit_bytes=VMEM_LIMIT),
        cost_estimate=pl.CostEstimate(flops=flops, transcendentals=0,
                                      bytes_accessed=bytes_accessed),
    )(x_pad_flat, w9, in_sc)


# ---------------- streamed BN affine + ReLU (final stage epilogue) --------------------

def _affine_relu(y, sc, Wh, th):
    B, HW, cp = y.shape
    nH = HW // (th * Wh)

    def kernel(y_ref, sc_ref, o_ref):
        o_ref[...] = jnp.maximum(
            y_ref[...].astype(jnp.float32) * sc_ref[0:1, :] + sc_ref[1:2, :], 0.0)

    return pl.pallas_call(
        kernel,
        out_shape=jax.ShapeDtypeStruct((B, HW, cp), jnp.float32),
        grid_spec=pltpu.PrefetchScalarGridSpec(
            num_scalar_prefetch=0,
            grid=(B, nH),
            in_specs=[pl.BlockSpec((1, th * Wh, cp), lambda b, h: (b, h, 0)),
                      pl.BlockSpec((2, cp), lambda b, h: (0, 0))],
            out_specs=pl.BlockSpec((1, th * Wh, cp), lambda b, h: (b, h, 0))),
        compiler_params=pltpu.CompilerParams(
            dimension_semantics=("parallel", "arbitrary"),
            vmem_limit_bytes=VMEM_LIMIT),
    )(y, sc)


# ---------------- JAX glue -------------------------------------------------------------

def _bn_scale_shift(stats, gamma, beta, n_total, n_tile):
    """Combine per-strip (sum, centred-M2) into BatchNorm scale/shift (Chan's formula)."""
    cout_p = stats.shape[-1]
    s = stats[:, :, 0, :]
    m2 = stats[:, :, 1, :]
    mean = jnp.sum(s, axis=(0, 1)) / n_total
    tmean = s / n_tile
    var = (jnp.sum(m2, axis=(0, 1))
           + n_tile * jnp.sum((tmean - mean[None, None, :]) ** 2, axis=(0, 1))) / n_total
    g = jnp.pad(gamma, (0, cout_p - gamma.shape[0]))
    bt = jnp.pad(beta, (0, cout_p - beta.shape[0]))
    scale = g * lax.rsqrt(var + BN_EPS)
    shift = bt - mean * scale
    return jnp.stack([scale, shift], axis=0).astype(jnp.float32)


def _prep_weight_taps(w_oihw, cin_p, cout_p):
    cout, cin = w_oihw.shape[0], w_oihw.shape[1]
    w9 = jnp.transpose(w_oihw, (2, 3, 1, 0)).reshape(9, cin, cout)   # [tap, Cin, Cout]
    return jnp.pad(w9, ((0, 0), (0, cin_p - cin), (0, cout_p - cout))).astype(jnp.bfloat16)


def _halo_pad_flat(x_nhwc, cin_p, wh):
    """+1 halo row/col all around (+1 slack bottom row), lane-pad channels, flatten rows."""
    B, H, W, C = x_nhwc.shape
    xp = jnp.pad(x_nhwc, ((0, 0), (1, 2), (1, wh - (W + 1)), (0, cin_p - C)))
    return xp.astype(jnp.bfloat16).reshape(B, (H + 3) * wh, cin_p)


def _upsample_bilinear_x2_ac(x_nhwc):
    """nn.Upsample(scale_factor=2, mode='bilinear', align_corners=True) on NHWC."""
    B, H, W, C = x_nhwc.shape
    H2, W2 = 2 * H, 2 * W

    def coords(n_in, n_out):
        if n_in == 1:
            z = jnp.zeros((n_out,), jnp.int32)
            return z, z, jnp.zeros((n_out,), jnp.float32)
        src = jnp.arange(n_out, dtype=jnp.float32) * (n_in - 1) / (n_out - 1)
        i0 = jnp.floor(src).astype(jnp.int32)
        i1 = jnp.minimum(i0 + 1, n_in - 1)
        return i0, i1, src - i0.astype(jnp.float32)

    y0, y1, wy = coords(H, H2)
    x0, x1, wx = coords(W, W2)
    r0 = x_nhwc[:, y0, :, :]
    r1 = x_nhwc[:, y1, :, :]
    rows = r0 * (1.0 - wy)[None, :, None, None] + r1 * wy[None, :, None, None]
    c0 = rows[:, :, x0, :]
    c1 = rows[:, :, x1, :]
    return c0 * (1.0 - wx)[None, None, :, None] + c1 * wx[None, None, :, None]


def up_forward(x1, x2, params):
    """Up.forward(x1, x2) with bilinear=True: upsample -> pad -> concat -> DoubleConv.
    NCHW in / NCHW out (PyTorch layout); NHWC lane-dense in between."""
    x1 = jnp.transpose(x1, (0, 2, 3, 1))
    x2 = jnp.transpose(x2, (0, 2, 3, 1))
    x1u = _upsample_bilinear_x2_ac(x1)
    diffY = x2.shape[1] - x1u.shape[1]
    diffX = x2.shape[2] - x1u.shape[2]
    x1p = lax.pad(x1u, jnp.float32(0.0),
                  ((0, 0, 0),
                   (diffY // 2, diffY - diffY // 2, 0),
                   (diffX // 2, diffX - diffX // 2, 0),
                   (0, 0, 0)))
    x = jnp.concatenate([x2, x1p], axis=-1)               # channel concat on the lane dim

    B, H, W, cin = x.shape
    cmid, cout = params["w1"].shape[0], params["w2"].shape[0]
    cin_p, cmid_p, cout_p = (_round_up(c, LANE) for c in (cin, cmid, cout))
    wh = _round_up(W + 2, SUBLANE)
    n_total = B * H * W

    # ---- conv1: raw conv output (bf16, lane-padded NHWC) + per-strip BN stats
    th1 = _pick_tile_h(H, W, cin_p, cmid_p, VMEM_LIMIT)
    y1, st1 = _conv3x3_stats(_halo_pad_flat(x, cin_p, wh),
                             _prep_weight_taps(params["w1"], cin_p, cmid_p),
                             jnp.zeros((2, cin_p), jnp.float32),
                             H, W, wh, th1, apply_input_act=False)
    sc1 = _bn_scale_shift(st1, params["g1"], params["b1"], n_total, th1 * W)

    # ---- conv2: BN1 affine + ReLU fused into the conv kernel's input load
    th2 = _pick_tile_h(H, W, cmid_p, cout_p, VMEM_LIMIT)
    y1_img = y1.reshape(B, H, wh, cmid_p)[:, :, :W, :]     # drop junk columns
    # TODO(synk): emit the halo layout directly from the conv kernel to skip this re-pad.
    y2, st2 = _conv3x3_stats(_halo_pad_flat(y1_img, cmid_p, wh),
                             _prep_weight_taps(params["w2"], cmid_p, cout_p),
                             sc1, H, W, wh, th2, apply_input_act=True)
    sc2 = _bn_scale_shift(st2, params["g2"], params["b2"], n_total, th2 * W)

    # ---- final streamed BN2 affine + ReLU
    out = _affine_relu(y2, sc2, wh, th2)
    out = out.reshape(B, H, wh, cout_p)[:, :, :W, :cout]
    return jnp.transpose(out, (0, 3, 1, 2))


# ---------------- pure-JAX reference for verification ---------------------------------

def _ref_conv_bn_relu(x, w, gamma, beta):
    y = lax.conv_general_dilated(x, w, (1, 1), ((1, 1), (1, 1)),
                                 dimension_numbers=("NCHW", "OIHW", "NCHW"))
    mean = jnp.mean(y, axis=(0, 2, 3), keepdims=True)
    var = jnp.mean((y - mean) ** 2, axis=(0, 2, 3), keepdims=True)
    yn = (y - mean) / jnp.sqrt(var + BN_EPS)
    yn = yn * gamma[None, :, None, None] + beta[None, :, None, None]
    return jnp.maximum(yn, 0.0)


def _ref_up(x1, x2, params):
    x1n = jnp.transpose(x1, (0, 2, 3, 1))
    x2n = jnp.transpose(x2, (0, 2, 3, 1))
    x1u = _upsample_bilinear_x2_ac(x1n)
    diffY = x2n.shape[1] - x1u.shape[1]
    diffX = x2n.shape[2] - x1u.shape[2]
    x1p = lax.pad(x1u, jnp.float32(0.0),
                  ((0, 0, 0),
                   (diffY // 2, diffY - diffY // 2, 0),
                   (diffX // 2, diffX - diffX // 2, 0),
                   (0, 0, 0)))
    x = jnp.transpose(jnp.concatenate([x2n, x1p], axis=-1), (0, 3, 1, 2))
    h = _ref_conv_bn_relu(x, params["w1"], params["g1"], params["b1"])
    return _ref_conv_bn_relu(h, params["w2"], params["g2"], params["b2"])


# ---------------- main -----------------------------------------------------------------

if __name__ == "__main__":
    # Up(in_channels=8, out_channels=4, bilinear=True)
    in_channels, out_channels = 8, 4
    mid_channels = in_channels // 2                        # DoubleConv mid
    B, H, W = 2, 16, 16

    key = jax.random.PRNGKey(0)
    k1, k2, k3, k4, k5, k6, k7, k8 = jax.random.split(key, 8)

    # U-Net convention: x1 is the coarse feature (half spatial), x2 the skip feature.
    x1 = jax.random.normal(k1, (B, in_channels // 2, H // 2, W // 2), jnp.float32)
    x2 = jax.random.normal(k2, (B, in_channels // 2, H, W), jnp.float32)

    params = {
        "w1": 0.1 * jax.random.normal(k3, (mid_channels, in_channels, 3, 3), jnp.float32),
        "g1": 1.0 + 0.05 * jax.random.normal(k4, (mid_channels,), jnp.float32),
        "b1": 0.1 * jax.random.normal(k5, (mid_channels,), jnp.float32),
        "w2": 0.1 * jax.random.normal(k6, (out_channels, mid_channels, 3, 3), jnp.float32),
        "g2": 1.0 + 0.05 * jax.random.normal(k7, (out_channels,), jnp.float32),
        "b2": 0.1 * jax.random.normal(k8, (out_channels,), jnp.float32),
    }

    out = jax.block_until_ready(up_forward(x1, x2, params))
    ref = jax.block_until_ready(_ref_up(x1, x2, params))

    assert out.shape == (B, out_channels, H, W), out.shape
    err = float(jnp.max(jnp.abs(out - ref)))
    # bf16 MXU inputs + bf16-resident intermediates => few-% tolerance vs f32 reference.
    assert jnp.allclose(out, ref, atol=5e-2, rtol=5e-2), err

    print("KERNEL_OK")
</pallas_src>

<mosaic_0001>
module attributes {stable_mosaic.version = 11 : i64} {
  func.func @kernel(%arg0: i32, %arg1: i32, %arg2: memref<2x456x128xbf16, #tpu.memory_space<any>>, %arg3: memref<9x128x128xbf16, #tpu.memory_space<vmem>>, %arg4: memref<2x128xf32, #tpu.memory_space<vmem>>, %arg5: memref<1x384x128xbf16, #tpu.memory_space<vmem>>, %arg6: memref<1x1x2x128xf32, #tpu.memory_space<vmem>>, %arg7: memref<2x456x128xbf16, #tpu.memory_space<vmem>>, %arg8: memref<2x!tpu.dma_semaphore, #tpu.memory_space<semaphore_mem>>) attributes {dimension_semantics = [#tpu.dimension_semantics<parallel>, #tpu.dimension_semantics<arbitrary>], iteration_bounds = array<i64: 2, 1>, scalar_prefetch = 0 : i64, scratch_operands = 2 : i64, tpu.core_type = #tpu.core_type<tc>, window_params = [{}, {pipeline_mode = #tpu.pipeline_mode<synchronous>, transform_indices = @transform_1, window_bounds = array<i64: 9, 128, 128>}, {pipeline_mode = #tpu.pipeline_mode<synchronous>, transform_indices = @transform_2, window_bounds = array<i64: 2, 128>}, {transform_indices = @transform_3, window_bounds = array<i64: 1, 384, 128>}, {transform_indices = @transform_4, window_bounds = array<i64: 1, 1, 2, 128>}]} {
    %c0_i32 = arith.constant 0 : i32
    %0 = arith.cmpi eq, %arg1, %c0_i32 : i32
    %1 = arith.extui %0 : i1 to i32
    %c0_i32_0 = arith.constant 0 : i32
    %2 = arith.cmpi ne, %1, %c0_i32_0 : i32
    scf.if %2 {
      %c384_i32 = arith.constant 384 : i32
      %114 = arith.muli %arg1, %c384_i32 : i32
      %115 = tpu.assume_multiple %114, 8 : i32
      %c0_i32_59 = arith.constant 0 : i32
      %c0_i32_60 = arith.constant 0 : i32
      %c0_i32_61 = arith.constant 0 : i32
      %116 = tpu.memref_slice %arg2[%arg0, %115, %c0_i32_61] : memref<2x456x128xbf16, #tpu.memory_space<any>> -> memref<1x456x128xbf16, #tpu.memory_space<any>>
      %117 = tpu.memref_squeeze %116 : memref<1x456x128xbf16, #tpu.memory_space<any>> -> memref<456x128xbf16, #tpu.memory_space<any>>
      %c0_i32_62 = arith.constant 0 : i32
      %c0_i32_63 = arith.constant 0 : i32
      %118 = tpu.memref_slice %arg7[%c0_i32_59, %c0_i32_62, %c0_i32_63] : memref<2x456x128xbf16, #tpu.memory_space<vmem>> -> memref<1x456x128xbf16, #tpu.memory_space<vmem>>
      %119 = tpu.memref_squeeze %118 : memref<1x456x128xbf16, #tpu.memory_space<vmem>> -> memref<456x128xbf16, #tpu.memory_space<vmem>>
      %120 = tpu.memref_slice %arg8[%c0_i32_60] : memref<2x!tpu.dma_semaphore, #tpu.memory_space<semaphore_mem>> -> memref<1x!tpu.dma_semaphore, #tpu.memory_space<semaphore_mem>>
      %121 = tpu.memref_squeeze %120 : memref<1x!tpu.dma_semaphore, #tpu.memory_space<semaphore_mem>> -> memref<!tpu.dma_semaphore, #tpu.memory_space<semaphore_mem>>
      tpu.enqueue_dma source(%117 : memref<456x128xbf16, #tpu.memory_space<any>>) target(%119 : memref<456x128xbf16, #tpu.memory_space<vmem>>) target_semaphore(%121 : memref<!tpu.dma_semaphore, #tpu.memory_space<semaphore_mem>>)
    } else {
    }
    %c2_i32 = arith.constant 2 : i32
    %c0_i32_1 = arith.constant 0 : i32
    %3 = arith.cmpi eq, %c2_i32, %c0_i32_1 : i32
    %c1_i32 = arith.constant 1 : i32
    %4 = arith.select %3, %c1_i32, %c2_i32 : i32
    %5 = arith.remsi %arg1, %4 : i32
    %c0_i32_2 = arith.constant 0 : i32
    %6 = arith.cmpi ne, %5, %c0_i32_2 : i32
    %c0_i32_3 = arith.constant 0 : i32
    %7 = arith.cmpi slt, %5, %c0_i32_3 : i32
    %c0_i32_4 = arith.constant 0 : i32
    %8 = arith.cmpi slt, %4, %c0_i32_4 : i32
    %9 = arith.xori %7, %8 : i1
    %10 = arith.andi %9, %6 : i1
    %11 = arith.addi %5, %4 : i32
    %12 = arith.select %10, %11, %5 : i32
    %c0_i32_5 = arith.constant 0 : i32
    %c0_i32_6 = arith.constant 0 : i32
    %c0_i32_7 = arith.constant 0 : i32
    %13 = tpu.memref_slice %arg2[%c0_i32_5, %c0_i32_6, %c0_i32_7] : memref<2x456x128xbf16, #tpu.memory_space<any>> -> memref<1x456x128xbf16, #tpu.memory_space<any>>
    %14 = tpu.memref_squeeze %13 : memref<1x456x128xbf16, #tpu.memory_space<any>> -> memref<456x128xbf16, #tpu.memory_space<any>>
    %c0_i32_8 = arith.constant 0 : i32
    %c0_i32_9 = arith.constant 0 : i32
    %15 = tpu.memref_slice %arg7[%12, %c0_i32_8, %c0_i32_9] : memref<2x456x128xbf16, #tpu.memory_space<vmem>> -> memref<1x456x128xbf16, #tpu.memory_space<vmem>>
    %16 = tpu.memref_squeeze %15 : memref<1x456x128xbf16, #tpu.memory_space<vmem>> -> memref<456x128xbf16, #tpu.memory_space<vmem>>
    %17 = tpu.memref_slice %arg8[%12] : memref<2x!tpu.dma_semaphore, #tpu.memory_space<semaphore_mem>> -> memref<1x!tpu.dma_semaphore, #tpu.memory_space<semaphore_mem>>
    %18 = tpu.memref_squeeze %17 : memref<1x!tpu.dma_semaphore, #tpu.memory_space<semaphore_mem>> -> memref<!tpu.dma_semaphore, #tpu.memory_space<semaphore_mem>>
    tpu.wait_dma2 semaphore(%18 : memref<!tpu.dma_semaphore, #tpu.memory_space<semaphore_mem>>) src(%14 : memref<456x128xbf16, #tpu.memory_space<any>>) dst(%16 : memref<456x128xbf16, #tpu.memory_space<vmem>>)
    %c1_i32_10 = arith.constant 1 : i32
    %19 = arith.addi %arg1, %c1_i32_10 : i32
    %c1_i32_11 = arith.constant 1 : i32
    %20 = arith.cmpi slt, %19, %c1_i32_11 : i32
    %21 = arith.extui %20 : i1 to i32
    %c0_i32_12 = arith.constant 0 : i32
    %22 = arith.cmpi ne, %21, %c0_i32_12 : i32
    scf.if %22 {
      %c1_i32_59 = arith.constant 1 : i32
      %114 = arith.addi %arg1, %c1_i32_59 : i32
      %c1_i32_60 = arith.constant 1 : i32
      %115 = arith.subi %c1_i32_60, %12 : i32
      %c384_i32 = arith.constant 384 : i32
      %116 = arith.muli %114, %c384_i32 : i32
      %117 = tpu.assume_multiple %116, 8 : i32
      %c0_i32_61 = arith.constant 0 : i32
      %118 = tpu.memref_slice %arg2[%arg0, %117, %c0_i32_61] : memref<2x456x128xbf16, #tpu.memory_space<any>> -> memref<1x456x128xbf16, #tpu.memory_space<any>>
      %119 = tpu.memref_squeeze %118 : memref<1x456x128xbf16, #tpu.memory_space<any>> -> memref<456x128xbf16, #tpu.memory_space<any>>
      %c0_i32_62 = arith.constant 0 : i32
      %c0_i32_63 = arith.constant 0 : i32
      %120 = tpu.memref_slice %arg7[%115, %c0_i32_62, %c0_i32_63] : memref<2x456x128xbf16, #tpu.memory_space<vmem>> -> memref<1x456x128xbf16, #tpu.memory_space<vmem>>
      %121 = tpu.memref_squeeze %120 : memref<1x456x128xbf16, #tpu.memory_space<vmem>> -> memref<456x128xbf16, #tpu.memory_space<vmem>>
      %122 = tpu.memref_slice %arg8[%115] : memref<2x!tpu.dma_semaphore, #tpu.memory_space<semaphore_mem>> -> memref<1x!tpu.dma_semaphore, #tpu.memory_space<semaphore_mem>>
      %123 = tpu.memref_squeeze %122 : memref<1x!tpu.dma_semaphore, #tpu.memory_space<semaphore_mem>> -> memref<!tpu.dma_semaphore, #tpu.memory_space<semaphore_mem>>
      tpu.enqueue_dma source(%119 : memref<456x128xbf16, #tpu.memory_space<any>>) target(%121 : memref<456x128xbf16, #tpu.memory_space<vmem>>) target_semaphore(%123 : memref<!tpu.dma_semaphore, #tpu.memory_space<semaphore_mem>>)
    } else {
    }
    %23 = arith.index_cast %12 : i32 to index
    %c0 = arith.constant 0 : index
    %c0_13 = arith.constant 0 : index
    %24 = vector.load %arg7[%23, %c0, %c0_13] : memref<2x456x128xbf16, #tpu.memory_space<vmem>>, vector<1x456x128xbf16>
    %25 = vector.shape_cast %24 : vector<1x456x128xbf16> to vector<456x128xbf16>
    %cst = arith.constant 0.000000e+00 : f32
    %26 = vector.broadcast %cst : f32 to vector<384x128xf32>
    %27 = vector.extract_strided_slice %25 {offsets = [0, 0], sizes = [384, 128], strides = [1, 1]} : vector<456x128xbf16> to vector<384x128xbf16>
    %c0_14 = arith.constant 0 : index
    %c0_15 = arith.constant 0 : index
    %c0_16 = arith.constant 0 : index
    %28 = vector.load %arg3[%c0_14, %c0_15, %c0_16] : memref<9x128x128xbf16, #tpu.memory_space<vmem>>, vector<1x128x128xbf16>
    %29 = vector.shape_cast %28 : vector<1x128x128xbf16> to vector<128x128xbf16>
    %cst_17 = arith.constant dense<0.000000e+00> : vector<384x128xf32>
    %30 = tpu.matmul %27, %29, %cst_17 {dimension_numbers = #tpu.dot_dimension_numbers<[1], [0], [0], [1], [0, 0, 1, 1], [], []>} : vector<384x128xbf16>, vector<128x128xbf16>, vector<384x128xf32> -> vector<384x128xf32>
    %31 = arith.addf %26, %30 : vector<384x128xf32>
    %32 = vector.extract_strided_slice %25 {offsets = [1, 0], sizes = [384, 128], strides = [1, 1]} : vector<456x128xbf16> to vector<384x128xbf16>
    %c1 = arith.constant 1 : index
    %c0_18 = arith.constant 0 : index
    %c0_19 = arith.constant 0 : index
    %33 = vector.load %arg3[%c1, %c0_18, %c0_19] : memref<9x128x128xbf16, #tpu.memory_space<vmem>>, vector<1x128x128xbf16>
    %34 = vector.shape_cast %33 : vector<1x128x128xbf16> to vector<128x128xbf16>
    %cst_20 = arith.constant dense<0.000000e+00> : vector<384x128xf32>
    %35 = tpu.matmul %32, %34, %cst_20 {dimension_numbers = #tpu.dot_dimension_numbers<[1], [0], [0], [1], [0, 0, 1, 1], [], []>} : vector<384x128xbf16>, vector<128x128xbf16>, vector<384x128xf32> -> vector<384x128xf32>
    %36 = arith.addf %31, %35 : vector<384x128xf32>
    %37 = vector.extract_strided_slice %25 {offsets = [2, 0], sizes = [384, 128], strides = [1, 1]} : vector<456x128xbf16> to vector<384x128xbf16>
    %c2 = arith.constant 2 : index
    %c0_21 = arith.constant 0 : index
    %c0_22 = arith.constant 0 : index
    %38 = vector.load %arg3[%c2, %c0_21, %c0_22] : memref<9x128x128xbf16, #tpu.memory_space<vmem>>, vector<1x128x128xbf16>
    %39 = vector.shape_cast %38 : vector<1x128x128xbf16> to vector<128x128xbf16>
    %cst_23 = arith.constant dense<0.000000e+00> : vector<384x128xf32>
    %40 = tpu.matmul %37, %39, %cst_23 {dimension_numbers = #tpu.dot_dimension_numbers<[1], [0], [0], [1], [0, 0, 1, 1], [], []>} : vector<384x128xbf16>, vector<128x128xbf16>, vector<384x128xf32> -> vector<384x128xf32>
    %41 = arith.addf %36, %40 : vector<384x128xf32>
    %42 = vector.extract_strided_slice %25 {offsets = [24, 0], sizes = [384, 128], strides = [1, 1]} : vector<456x128xbf16> to vector<384x128xbf16>
    %c3 = arith.constant 3 : index
    %c0_24 = arith.constant 0 : index
    %c0_25 = arith.constant 0 : index
    %43 = vector.load %arg3[%c3, %c0_24, %c0_25] : memref<9x128x128xbf16, #tpu.memory_space<vmem>>, vector<1x128x128xbf16>
    %44 = vector.shape_cast %43 : vector<1x128x128xbf16> to vector<128x128xbf16>
    %cst_26 = arith.constant dense<0.000000e+00> : vector<384x128xf32>
    %45 = tpu.matmul %42, %44, %cst_26 {dimension_numbers = #tpu.dot_dimension_numbers<[1], [0], [0], [1], [0, 0, 1, 1], [], []>} : vector<384x128xbf16>, vector<128x128xbf16>, vector<384x128xf32> -> vector<384x128xf32>
    %46 = arith.addf %41, %45 : vector<384x128xf32>
    %47 = vector.extract_strided_slice %25 {offsets = [25, 0], sizes = [384, 128], strides = [1, 1]} : vector<456x128xbf16> to vector<384x128xbf16>
    %c4 = arith.constant 4 : index
    %c0_27 = arith.constant 0 : index
    %c0_28 = arith.constant 0 : index
    %48 = vector.load %arg3[%c4, %c0_27, %c0_28] : memref<9x128x128xbf16, #tpu.memory_space<vmem>>, vector<1x128x128xbf16>
    %49 = vector.shape_cast %48 : vector<1x128x128xbf16> to vector<128x128xbf16>
    %cst_29 = arith.constant dense<0.000000e+00> : vector<384x128xf32>
    %50 = tpu.matmul %47, %49, %cst_29 {dimension_numbers = #tpu.dot_dimension_numbers<[1], [0], [0], [1], [0, 0, 1, 1], [], []>} : vector<384x128xbf16>, vector<128x128xbf16>, vector<384x128xf32> -> vector<384x128xf32>
    %51 = arith.addf %46, %50 : vector<384x128xf32>
    %52 = vector.extract_strided_slice %25 {offsets = [26, 0], sizes = [384, 128], strides = [1, 1]} : vector<456x128xbf16> to vector<384x128xbf16>
    %c5 = arith.constant 5 : index
    %c0_30 = arith.constant 0 : index
    %c0_31 = arith.constant 0 : index
    %53 = vector.load %arg3[%c5, %c0_30, %c0_31] : memref<9x128x128xbf16, #tpu.memory_space<vmem>>, vector<1x128x128xbf16>
    %54 = vector.shape_cast %53 : vector<1x128x128xbf16> to vector<128x128xbf16>
    %cst_32 = arith.constant dense<0.000000e+00> : vector<384x128xf32>
    %55 = tpu.matmul %52, %54, %cst_32 {dimension_numbers = #tpu.dot_dimension_numbers<[1], [0], [0], [1], [0, 0, 1, 1], [], []>} : vector<384x128xbf16>, vector<128x128xbf16>, vector<384x128xf32> -> vector<384x128xf32>
    %56 = arith.addf %51, %55 : vector<384x128xf32>
    %57 = vector.extract_strided_slice %25 {offsets = [48, 0], sizes = [384, 128], strides = [1, 1]} : vector<456x128xbf16> to vector<384x128xbf16>
    %c6 = arith.constant 6 : index
    %c0_33 = arith.constant 0 : index
    %c0_34 = arith.constant 0 : index
    %58 = vector.load %arg3[%c6, %c0_33, %c0_34] : memref<9x128x128xbf16, #tpu.memory_space<vmem>>, vector<1x128x128xbf16>
    %59 = vector.shape_cast %58 : vector<1x128x128xbf16> to vector<128x128xbf16>
    %cst_35 = arith.constant dense<0.000000e+00> : vector<384x128xf32>
    %60 = tpu.matmul %57, %59, %cst_35 {dimension_numbers = #tpu.dot_dimension_numbers<[1], [0], [0], [1], [0, 0, 1, 1], [], []>} : vector<384x128xbf16>, vector<128x128xbf16>, vector<384x128xf32> -> vector<384x128xf32>
    %61 = arith.addf %56, %60 : vector<384x128xf32>
    %62 = vector.extract_strided_slice %25 {offsets = [49, 0], sizes = [384, 128], strides = [1, 1]} : vector<456x128xbf16> to vector<384x128xbf16>
    %c7 = arith.constant 7 : index
    %c0_36 = arith.constant 0 : index
    %c0_37 = arith.constant 0 : index
    %63 = vector.load %arg3[%c7, %c0_36, %c0_37] : memref<9x128x128xbf16, #tpu.memory_space<vmem>>, vector<1x128x128xbf16>
    %64 = vector.shape_cast %63 : vector<1x128x128xbf16> to vector<128x128xbf16>
    %cst_38 = arith.constant dense<0.000000e+00> : vector<384x128xf32>
    %65 = tpu.matmul %62, %64, %cst_38 {dimension_numbers = #tpu.dot_dimension_numbers<[1], [0], [0], [1], [0, 0, 1, 1], [], []>} : vector<384x128xbf16>, vector<128x128xbf16>, vector<384x128xf32> -> vector<384x128xf32>
    %66 = arith.addf %61, %65 : vector<384x128xf32>
    %67 = vector.extract_strided_slice %25 {offsets = [50, 0], sizes = [384, 128], strides = [1, 1]} : vector<456x128xbf16> to vector<384x128xbf16>
    %c8 = arith.constant 8 : index
    %c0_39 = arith.constant 0 : index
    %c0_40 = arith.constant 0 : index
    %68 = vector.load %arg3[%c8, %c0_39, %c0_40] : memref<9x128x128xbf16, #tpu.memory_space<vmem>>, vector<1x128x128xbf16>
    %69 = vector.shape_cast %68 : vector<1x128x128xbf16> to vector<128x128xbf16>
    %cst_41 = arith.constant dense<0.000000e+00> : vector<384x128xf32>
    %70 = tpu.matmul %67, %69, %cst_41 {dimension_numbers = #tpu.dot_dimension_numbers<[1], [0], [0], [1], [0, 0, 1, 1], [], []>} : vector<384x128xbf16>, vector<128x128xbf16>, vector<384x128xf32> -> vector<384x128xf32>
    %71 = arith.addf %66, %70 : vector<384x128xf32>
    %72 = vector.shape_cast %71 : vector<384x128xf32> to vector<1x384x128xf32>
    %73 = arith.truncf %72 : vector<1x384x128xf32> to vector<1x384x128xbf16>
    %c0_42 = arith.constant 0 : index
    %c0_43 = arith.constant 0 : index
    %c0_44 = arith.constant 0 : index
    %74 = vector.load %arg5[%c0_42, %c0_43, %c0_44] : memref<1x384x128xbf16, #tpu.memory_space<vmem>>, vector<1x384x128xbf16>
    tpu.vector_store %arg5[%c0_42, %c0_43, %c0_44], %73 {strides = array<i32>} : memref<1x384x128xbf16, #tpu.memory_space<vmem>>, vector<1x384x128xbf16>,
    %75 = tpu.iota {dimensions = array<i32: 0>} : vector<384x1xi32>
    %c24_i32 = arith.constant 24 : i32
    %c0_i32_45 = arith.constant 0 : i32
    %76 = arith.cmpi eq, %c24_i32, %c0_i32_45 : i32
    %c1_i32_46 = arith.constant 1 : i32
    %77 = arith.select %76, %c1_i32_46, %c24_i32 : i32
    %78 = vector.broadcast %77 : i32 to vector<384x1xi32>
    %79 = arith.remsi %75, %78 : vector<384x1xi32>
    %c0_i32_47 = arith.constant 0 : i32
    %80 = vector.broadcast %c0_i32_47 : i32 to vector<384x1xi32>
    %81 = arith.cmpi ne, %79, %80 : vector<384x1xi32>
    %c0_i32_48 = arith.constant 0 : i32
    %82 = vector.broadcast %c0_i32_48 : i32 to vector<384x1xi32>
    %83 = arith.cmpi slt, %79, %82 : vector<384x1xi32>
    %c0_i32_49 = arith.constant 0 : i32
    %84 = arith.cmpi slt, %77, %c0_i32_49 : i32
    %85 = vector.broadcast %84 : i1 to vector<384x1xi1>
    %86 = vector.broadcast %85 : vector<384x1xi1> to vector<384x1xi1>
    %87 = arith.xori %83, %86 : vector<384x1xi1>
    %88 = arith.andi %87, %81 : vector<384x1xi1>
    %89 = vector.broadcast %77 : i32 to vector<384x1xi32>
    %90 = arith.addi %79, %89 : vector<384x1xi32>
    %91 = arith.select %88, %90, %79 : vector<384x1xi1>, vector<384x1xi32>
    %c16_i32 = arith.constant 16 : i32
    %92 = vector.broadcast %c16_i32 : i32 to vector<384x1xi32>
    %93 = arith.cmpi slt, %91, %92 : vector<384x1xi32>
    %cst_50 = arith.constant 0.000000e+00 : f32
    %94 = vector.shape_cast %93 : vector<384x1xi1> to vector<384x1xi1>
    %95 = vector.broadcast %94 : vector<384x1xi1> to vector<384x128xi1>
    %96 = vector.broadcast %cst_50 : f32 to vector<384x128xf32>
    %97 = arith.select %95, %71, %96 : vector<384x128xi1>, vector<384x128xf32>
    %cst_51 = arith.constant dense<0.000000e+00> : vector<128xf32>
    %98 = vector.multi_reduction <add>, %97, %cst_51 [0] : vector<384x128xf32> to vector<128xf32>
    %99 = vector.shape_cast %98 : vector<128xf32> to vector<1x128xf32>
    %cst_52 = arith.constant 3.906250e-03 : f32
    %100 = vector.broadcast %cst_52 : f32 to vector<1x128xf32>
    %101 = arith.mulf %99, %100 : vector<1x128xf32>
    %102 = vector.broadcast %101 : vector<1x128xf32> to vector<384x128xf32>
    %103 = arith.subf %71, %102 : vector<384x128xf32>
    %104 = arith.mulf %103, %103 : vector<384x128xf32>
    %cst_53 = arith.constant 0.000000e+00 : f32
    %105 = vector.shape_cast %93 : vector<384x1xi1> to vector<384x1xi1>
    %106 = vector.broadcast %105 : vector<384x1xi1> to vector<384x128xi1>
    %107 = vector.broadcast %cst_53 : f32 to vector<384x128xf32>
    %108 = arith.select %106, %104, %107 : vector<384x128xi1>, vector<384x128xf32>
    %cst_54 = arith.constant dense<0.000000e+00> : vector<128xf32>
    %109 = vector.multi_reduction <add>, %108, %cst_54 [0] : vector<384x128xf32> to vector<128xf32>
    %110 = vector.shape_cast %109 : vector<128xf32> to vector<1x128xf32>
    %111 = tpu.concatenate %99, %110 in 0 : vector<1x128xf32>, vector<1x128xf32> -> vector<2x128xf32>
    %112 = vector.shape_cast %111 : vector<2x128xf32> to vector<1x1x2x128xf32>
    %c0_55 = arith.constant 0 : index
    %c0_56 = arith.constant 0 : index
    %c0_57 = arith.constant 0 : index
    %c0_58 = arith.constant 0 : index
    %113 = vector.load %arg6[%c0_55, %c0_56, %c0_57, %c0_58] : memref<1x1x2x128xf32, #tpu.memory_space<vmem>>, vector<1x1x2x128xf32>
    tpu.vector_store %arg6[%c0_55, %c0_56, %c0_57, %c0_58], %112 {strides = array<i32>} : memref<1x1x2x128xf32, #tpu.memory_space<vmem>>, vector<1x1x2x128xf32>,
    return
  }
  func.func @transform_1(%arg0: i32, %arg1: i32) -> (i32, i32, i32) {
    %c0_i32 = arith.constant 0 : i32
    %c0_i32_0 = arith.constant 0 : i32
    %c0_i32_1 = arith.constant 0 : i32
    %c0_i32_2 = arith.constant 0 : i32
    return %c0_i32, %c0_i32_0, %c0_i32_1 : i32, i32, i32
  }
  func.func @transform_2(%arg0: i32, %arg1: i32) -> (i32, i32) {
    %c0_i32 = arith.constant 0 : i32
    %c0_i32_0 = arith.constant 0 : i32
    %c0_i32_1 = arith.constant 0 : i32
    return %c0_i32, %c0_i32_0 : i32, i32
  }
  func.func @transform_3(%arg0: i32, %arg1: i32) -> (i32, i32, i32) {
    %c0_i32 = arith.constant 0 : i32
    %c0_i32_0 = arith.constant 0 : i32
    return %arg0, %arg1, %c0_i32 : i32, i32, i32
  }
  func.func @transform_4(%arg0: i32, %arg1: i32) -> (i32, i32, i32, i32) {
    %c0_i32 = arith.constant 0 : i32
    %c0_i32_0 = arith.constant 0 : i32
    %c0_i32_1 = arith.constant 0 : i32
    return %arg0, %arg1, %c0_i32, %c0_i32_0 : i32, i32, i32, i32
  }
}

</mosaic_0001>

<bundles_post_ra>
// kernel: tpu_custom_call.1
= control target key start
LH: loop header
LB: loop body
LE: loop exit
PB: predicated region body
PF: predicated region fallthrough
CT: control target
= control target key end

     0   :  { %10 = vsyncpa [#allocation5], 0  ;;  %s11188_s0 = inlined_call_operand.hbm [shape: bf16[2,456,128], index: 0, kind: input, shape index: {}]   ;;  %s11189_s1 = inlined_call_operand.hbm [shape: bf16[9,128,128], index: 1, kind: input, shape index: {}]   ;;  %s11190_s2 = inlined_call_operand.vmem [shape: f32[2,128], index: 2, kind: input, shape index: {}]   ;;  %s11191_s3 = inlined_call_operand.hbm [shape: bf16[2,384,128], index: 3, kind: output, shape index: {0}]   ;;  %s11192_s4 = inlined_call_operand.hbm [shape: f32[2,1,2,128], index: 4, kind: output, shape index: {1}]  }
   0x1   :  { %11 = vsyncpa [#allocation6], 0 }
   0x2   :  { %13 = vsyncpa [#allocation6 + $0x1], 0 }
   0x3   :  { %14 = vsyncpa [#allocation9], 0 }
   0x4   :  { %16 = vsyncpa [#allocation9 + $0x1], 0  ;;  %s7943_s15 = smov 0   ;;  %s7945_s16 = smov 0  }
   0x5   :  { %s7947_s17 = smov 0   ;;  %s7949_s18 = smov 0  }
   0x6   :  { %s7951_s2 = smov 0   ;;  %s7953_s19 = smov 0  }
   0x7 LB: > { %s5783_s20 = sadd.s32 4294967295, %s7908_s19   ;;  %s5784_s21 = sadd.s32 4294967294, %s7908_s19   ;;  %s7908_s19 = sphi %s7953_s19, %s22_s19   ;;  %s7904_s2 = sphi %s7951_s2, %s12039_s2   ;;  %s7900_s18 = sphi %s7949_s18, %s12038_s18   ;;  %s7896_s17 = sphi %s7947_s17, %s12037_s17   ;;  %s7892_s16 = sphi %s7945_s16, %s12036_s16   ;;  %s7888_s15 = sphi %s7943_s15, %s12035_s15  }
   0x8   : > { %s34_s22 = sadd.s32 1, %s7904_s2  ;;  %s85_s23 = sadd.s32 1, %s7896_s17 }
   0x9   : > { %p36_p0 = scmp.ge.s32.totalorder %s34_s22, 2  ;;  %p95_p1 = scmp.ne.s32.totalorder %s7896_s17, %s7892_s16 }
   0xa   : > { %p96_p2 = scmp.eq.s32.totalorder %s5783_s20, 1  ;;  %p101_p3 = scmp.ne.s32.totalorder %s7892_s16, %s7888_s15 }
   0xb   : > { %s12041_s22 = smov (%p36_p0, %s34_s22), 0  ;;  %p102_p5 = scmp.eq.s32.totalorder %s5784_s21, 1 }
   0xc   : > { %p7983_p4 = por %p96_p2, %p95_p1  ;;  %s80_s25 = ssub.s32 %s7904_s2, %s12041_s22 }
   0xd   : > { %p5785_p6 = scmp.ge.s32.totalorder %s7908_s19, 1  ;;  %p83_p7 = scmp.eq.s32.totalorder %s80_s25, 0 }
   0xe   : > { %s11383_s24 = scalar_select %p7983_p4, 1, 0 }
   0xf   : > { %p7990_p8 = por %p102_p5, %p101_p3  ;;  %p137_p9 = scmp.lt.s32.totalorder %s7908_s19, 3 }
  0x10   : > { %s7996_s27 = scalar_select %p83_p7, %s7896_s17, %s85_s23  }
  0x11   : > { %s11384_s26 = scalar_select %p7990_p8, 1, 0 }
  0x12   : > { %p7998_p10 = pnand %p5785_p6, %p137_p9  ;;  %p8002_p11 = scmp.eq.s32.totalorder %s5783_s20, 0 }
  0x13   : > { %s7910_s30 = smov [#allocation4]   ;;  %s7740_s9 = scalar_lea.hbm %s11189_s1, 9216 }
  0x14   : > { %s11385_s28 = scalar_select %p7998_p10, 1, 0 }
  0x15   : > { %s11386_s29 = scalar_select %p8002_p11, 1, 0 }
  0x16   : > { %p7537_p12 = pneg %p7998_p10  ;;  %s149_s5 = sshll.u32 %s7910_s30, 4  ;;  %s150_s5 = int_to_ptr.vmem [resolvable:$true] %s149_s5 }
  0x17   : > { %p7741_p0 = scmp.ne.s32.totalorder %s11189_s1, %s7740_s9  ;;  %p7747_p5 = scmp.lt.u32.totalorder %s7740_s9, %s11189_s1 }
  0x18   : > { %p8010_p13 = pnand %p8002_p11, %p7537_p12 }
  0x1a   : > { %p7742_p1 = pneg %p8010_p13 }
  0x1c   : > { %p7743_p2 = pnand %p7742_p1, %p7741_p0 }
  0x1e   : > { %p7744_p3 = pneg %p7743_p2 }
  0x20   : > { %p7749_p6 = pnand %p7747_p5, %p7744_p3 }
  0x22   : > { %7752 = shalt.err (!%p7749_p6)
}
  0x23   : > { %s7753_s14 = scalar_lea.vmem %s150_s5, 9216  ;;  %p7761_p8 = scmp.lt.s32.totalorder %s150_s5, %s150_s5 }
  0x24   : > { %p7754_p7 = scmp.ne.s32.totalorder %s150_s5, %s7753_s14  ;;  %p7762_p4 = scmp.lt.s32.totalorder %s7753_s14, %s7753_s14 }
  0x26   : > { %p7756_p9 = pnand %p7754_p7, %p7742_p1  ;;  %p7763_p11 = por %p7762_p4, %p7761_p8 }
  0x28   : > { %p7757_p12 = pneg %p7756_p9 }
  0x2a   : > { %p7764_p10 = pnand %p7763_p11, %p7757_p12 }
  0x2c   : > { %7767 = shalt.err (!%p7764_p10)
}
  0x2d   : > { %s7911_s20 = smov 64   ;;  %s7912_s21 = smov 4  }
  0x2e   : > { %7540 = dma.hbm_to_vmem [thread:$0]  (!%p8010_p13), %s11189_s1, 9216, %s150_s5, [#allocation5], %s7911_s20, %s7911_s20, %s7912_s21  }
  0x2f   : > { %p11388_p0 = scmp.ne.s32.totalorder %s11385_s28, 0 }
  0x31   : > { %168 = sbr.rel (%p11388_p0) target bundleno = 961 (0x3c1), region = 28 }
  0x38   : > { %p11389_p2 = scmp.ne.s32.totalorder %s11386_s29, 0 }
  0x3a   : > { %7873 = dma.done.wait (%p11389_p2), [#allocation5], 9216  }
  0x3b   : > { %7875 = vsyncadd (%p11389_p2), [#allocation5], 4294958080  ;;  %s8037_s30 = sand.u32 1, %s7892_s16   ;;  %s5973_s6 = smul.u32 3648, %s7900_s18 }
  0x3c   : > { %s7431_s7 = smul.u32 192, %s8037_s30  ;;  %s5789_s8 = sshll.u32 %s8037_s30, 1 }
  0x3d   : > { %s204_s28 = scalar_lea.hbm %s11188_s0, %s5973_s6  ;;  %s7913_s10 = smov [#allocation2]  }
  0x3e   : > { %s212_s11 = sshll.u32 %s7913_s10, 4  ;;  %s7768_s12 = scalar_lea.hbm %s204_s28, 3648  ;;  %s213_s11 = int_to_ptr.vmem [resolvable:$true] %s212_s11 }
  0x3f   : > { %p7769_p4 = scmp.ne.s32.totalorder %s204_s28, %s7768_s12  ;;  %s7770_s14 = scalar_lea.hbm %s11188_s0, 7296 }
  0x40   : > { %p7771_p8 = scmp.lt.u32.totalorder %s204_s28, %s11188_s0  ;;  %p7772_p10 = scmp.lt.u32.totalorder %s7770_s14, %s7768_s12 }
  0x41   : > { %p7774_p13 = scmp.lt.u32.totalorder %s7768_s12, %s204_s28 }
  0x42   : > { %p7773_p11 = por %p7772_p10, %p7771_p8 }
  0x44   : > { %p7775_p1 = por %p7774_p13, %p7773_p11 }
  0x46   : > { %p7776_p3 = pnand %p7775_p1, %p7769_p4 }
  0x48   : > { %7779 = shalt.err (!%p7776_p3)  }
  0x49   : > { %s7780_s23 = scalar_lea.vmem %s213_s11, 3648  ;;  %s7784_s25 = scalar_lea.vmem %s213_s11, 7296 }
  0x4a   : > { %p7781_p5 = scmp.ne.s32.totalorder %s213_s11, %s7780_s23  ;;  %p7785_p6 = scmp.lt.s32.totalorder %s213_s11, %s213_s11 }
  0x4b   : > { %p7786_p7 = scmp.lt.s32.totalorder %s7784_s25, %s7780_s23 }
  0x4d   : > { %p7787_p9 = por %p7786_p7, %p7785_p6 }
  0x4f   : > { %p7788_p12 = pnand %p7787_p9, %p7781_p5 }
  0x51   : > { %7791 = shalt.err (!%p7788_p12)  }
  0x52   : > { %215 = dma.hbm_to_vmem [thread:$0]  %s204_s28, 3648, %s213_s11, [#allocation3] }
  0x53   : > { %s8051_s6 = scalar_lea.vmem [#allocation7], %s7431_s7  ;;  %s8053_s9 = scalar_lea.vmem [#allocation8], %s5789_s8 }
  0x54   : > { %7876 = dma.done.wait [#allocation3], 3648 }
  0x55   : > { %7877 = vsyncadd [#allocation3], 4294963648  ;;  %v7605_v0 = vld [vmem:[#allocation4 + $0x40] sm:$0xff]   ;;  %v7607_v2 = vld [vmem:[#allocation4 + $0x48] sm:$0xff]   ;;  %vm475_vm0 = vsmask.f32 7424 }
  0x56   : > { %v7606_v1 = vld [vmem:[#allocation4 + $0x100] sm:$0xff]   ;;  %6455 = vmatprep.subr.bf16.mxu1 %v7605_v0  ;;  %v7608_v3 = vld [vmem:[#allocation4 + $0x108] sm:$0xff]   ;;  %v7609_v4 = vld [vmem:[#allocation4 + $0x50] sm:$0xff]   ;;  %vm1283_vm1 = vcmask 1046528   ;;  %s7528_s7 = smul.u32 3072, %s7900_s18  ;;  %s5636_s8 = sshll.u32 %s8051_s6, 4  ;;  %s10837_s8 = int_to_ptr.vmem [resolvable:$true] %s5636_s8 }
  0x57   : > { %6711 = vmatprep.subr.bf16.mxu0 %v7606_v1  ;;  %6456 = vmatpush3.bf16.msra.mxu1 %v7605_v0  ;;  %v7610_v5 = vld [vmem:[#allocation4 + $0x110] sm:$0xff]   ;;  %v7611_v6 = vld [vmem:[#allocation4 + $0x58] sm:$0xff]   ;;  %v7613_v8 = vld [vmem:[#allocation4 + $0x60] sm:$0xff]   ;;  %s5616_s11 = scalar_lea.sflag [#allocation6], %s8037_s30  ;;  %s7792_s12 = scalar_lea.vmem %s10837_s8, 3072 }
  0x58   : > { %6712 = vmatpush3.bf16.msra.mxu0 %v7606_v1  ;;  %6457 = vmatprep.subr.bf16.mxu1 %v7607_v2  ;;  %v7612_v7 = vld [vmem:[#allocation4 + $0x118] sm:$0xff]   ;;  %v7614_v9 = vld [vmem:[#allocation4 + $0x120] sm:$0xff]   ;;  %v7615_v10 = vld [vmem:[#allocation4 + $0x68] sm:$0xff]   ;;  %s10835_s10 = scalar_lea.hbm %s11191_s3, %s7528_s7  ;;  %p7793_p0 = scmp.ne.s32.totalorder %s10837_s8, %s7792_s12 }
  0x59   : > { %6713 = vmatprep.subr.bf16.mxu0 %v7608_v3  ;;  %v7616_v11 = vld [vmem:[#allocation4 + $0x128] sm:$0xff]   ;;  %v266_v12 = vld [vmem:[#allocation2 + $0x8] sm:$0xf]  ;;  %v267_v13 = vld [vmem:[#allocation2 + $0xc] sm:$0xf]  ;;  %p11934_p2 = scmp.ne.s32.totalorder %s11383_s24, 0 }
  0x5a   : > { %v7621_v14 = vld [vmem:[#allocation2] sm:$0xff]   ;;  %v268_v15 = vld [vmem:[#allocation2 + $0x10] sm:$0xf]  ;;  %v8055_v16 = vcombine.low %v266_v12, %v267_v13  ;;  %v269_v17 = vld [vmem:[#allocation2 + $0x14] sm:$0xf]  ;;  %s7914_s29 = smov [#allocation7]  }
  0x5b   : > { %6458 = vmatpush3.bf16.msra.mxu1 %v7607_v2  ;;  %v270_v18 = vld [vmem:[#allocation2 + $0x18] sm:$0xf]  ;;  %v271_v19 = vld [vmem:[#allocation2 + $0x1c] sm:$0xf]  ;;  %v8057_v20 = vcombine.low %v267_v13, %v268_v15  ;;  %v477_v21 = vshrl.u32 %v7621_v14, 16  ;;  %v479_v22 = vshll.u32 %v7621_v14, 16  ;;  %v8064_v28 = vcombine.low %v268_v15, %v269_v17  ;;  %p7794_p4 = pnand %p7793_p0, %p11934_p2 }
  0x5c   : > { %6714 = vmatpush3.bf16.msra.mxu0 %v7608_v3  ;;  %6459 = vmatprep.subr.bf16.mxu1 %v7609_v4  ;;  %v8059_v23 = vcombine.low %v269_v17, %v270_v18  ;;  %v7617_v24 = vld [vmem:[#allocation4 + $0x70] sm:$0xff]   ;;  %v484_v25 = vshll.u32 %v8055_v16, 16  ;;  %v272_v29 = vld [vmem:[#allocation2 + $0x20] sm:$0xf]  ;;  %v8066_v32 = vcombine.low %v270_v18, %v271_v19  ;;  %v488_v37 = vshrl.u32 %v8055_v16, 16  ;;  %v7627_v59 = vld [vmem:[#allocation4] sm:$0xff]  }
  0x5d   : > { %6715 = vmatprep.subr.bf16.mxu0 %v7610_v5  ;;  %11390 = vst [vmem:[#allocation20_spill] sm:$0xff] %v8057_v20  ;;  %v2089_v26 = vshrl.u32 %v8057_v20, 16  ;;  %v2091_v27 = vshll.u32 %v8057_v20, 16  ;;  %v7618_v30 = vld [vmem:[#allocation4 + $0x130] sm:$0xff]   ;;  %v481_v31 = vrot.slane %v479_v22, 1  ;;  %v8069_v34 = vcombine.low %v271_v19, %v272_v29  ;;  %v7619_v41 = vld [vmem:[#allocation4 + $0x78] sm:$0xff]   ;;  %p7795_p8 = pneg %p7794_p4 }
  0x5e   : > { %11391 = vst [vmem:[#allocation21_spill] sm:$0xff] %v8059_v23  ;;  %v2096_v33 = vshll.u32 %v8059_v23, 16  ;;  %v486_v35 = vrot.slane %v484_v25, 1  ;;  %v492_v40 = vshll.u32 %v8064_v28, 16  ;;  %v7620_v42 = vld [vmem:[#allocation4 + $0x138] sm:$0xff]   ;;  %v2100_v44 = vshrl.u32 %v8059_v23, 16 }
  0x5f   : > { %6460 = vmatpush3.bf16.msra.mxu1 %v7609_v4  ;;  %11392 = vst [vmem:[#allocation22_spill] sm:$0xff] %v8069_v34  ;;  %v2093_v36 = vrot.slane %v2091_v27, 1  ;;  %v482_v38 = vor.u32 %v481_v31, %v477_v21  ;;  %v2104_v45 = vshll.u32 %v8069_v34, 16  ;;  %v273_v46 = vld [vmem:[#allocation2 + $0x24] sm:$0xf]  ;;  %v496_v48 = vshrl.u32 %v8064_v28, 16 }
  0x60   : > { %6716 = vmatpush3.bf16.msra.mxu0 %v7610_v5  ;;  %6461 = vmatprep.subr.bf16.mxu1 %v7611_v6  ;;  %v2098_v39 = vrot.slane %v2096_v33, 1  ;;  %v500_v49 = vshll.u32 %v8066_v32, 16  ;;  %v274_v50 = vld [vmem:[#allocation2 + $0x28] sm:$0xf]  ;;  %v275_v51 = vld [vmem:[#allocation2 + $0x2c] sm:$0xf]  ;;  %v8079_v53 = vcombine.low %v272_v29, %v273_v46  ;;  %v490_v55 = vor.u32 %v488_v37, %v486_v35 }
  0x61   : > { %6717 = vmatprep.subr.bf16.mxu0 %v7612_v7  ;;  %v2094_v43 = vor.u32 %v2093_v36, %v2089_v26  ;;  %v487_v47 = vsel %vm475_vm0, %v482_v38, %v486_v35  ;;  %v276_v54 = vld [vmem:[#allocation2 + $0x30] sm:$0xf]  ;;  %v494_v56 = vrot.slane %v492_v40, 1  ;;  %v8081_v57 = vcombine.low %v273_v46, %v274_v50  ;;  %v277_v0 = vld [vmem:[#allocation2 + $0x34] sm:$0xf]  ;;  %v7629_v1 = vld [vmem:[#allocation4 + $0x140] sm:$0xff]  }
  0x62   : > { %6471 = vmatprep.mubr.bf16.mxu1 %v487_v47  ;;  %v2108_v58 = vshrl.u32 %v8069_v34, 16  ;;  %v2102_v60 = vor.u32 %v2100_v44, %v2098_v39  ;;  %v2106_v61 = vrot.slane %v2104_v45, 1  ;;  %v8084_v62 = vcombine.low %v274_v50, %v275_v51  ;;  %v278_v5 = vld [vmem:[#allocation2 + $0x38] sm:$0xf]  ;;  %v279_v19 = vld [vmem:[#allocation2 + $0x3c] sm:$0xf] }
  0x63   : > { %6462 = vmatpush3.bf16.msra.mxu1 %v7611_v6  ;;  %v2099_v52 = vsel %vm475_vm0, %v2094_v43, %v2098_v39  ;;  %11393 = vst [vmem:[#allocation23_spill] sm:$0xff] %v8081_v57  ;;  %v8086_v63 = vcombine.low %v275_v51, %v276_v54  ;;  %v498_v2 = vor.u32 %v496_v48, %v494_v56  ;;  %v502_v3 = vrot.slane %v500_v49, 1  ;;  %v280_v21 = vld [vmem:[#allocation2 + $0x40] sm:$0xf]  ;;  %v281_v33 = vld [vmem:[#allocation2 + $0x44] sm:$0xf] }
  0x64   : > { %6718 = vmatpush3.bf16.msra.mxu0 %v7612_v7  ;;  %6463 = vmatprep.subr.bf16.mxu1 %v7613_v8  ;;  %v2112_v4 = vshll.u32 %v8081_v57, 16  ;;  %v2110_v6 = vor.u32 %v2108_v58, %v2106_v61  ;;  %v504_v7 = vshrl.u32 %v8066_v32, 16  ;;  %v2116_v13 = vshrl.u32 %v8081_v57, 16  ;;  %v282_v37 = vld [vmem:[#allocation2 + $0x48] sm:$0xf]  ;;  %v7636_v43 = vld [vmem:[#allocation4 + $0x150] sm:$0xff]  }
  0x65   : > { %6719 = vmatprep.subr.bf16.mxu0 %v7614_v9  ;;  %6727 = vmatprep.mubr.bf16.mxu0 %v2099_v52  ;;  %11394 = vst [vmem:[#allocation24_spill] sm:$0xff] %v8086_v63  ;;  %v8094_v14 = vcombine.low %v277_v0, %v278_v5  ;;  %v2107_v15 = vsel %vm475_vm0, %v2102_v60, %v2106_v61  ;;  %v512_v17 = vshrl.u32 %v8079_v53, 16  ;;  %v516_v18 = vshll.u32 %v8084_v62, 16  ;;  %v7641_v52 = vld [vmem:[#allocation4 + $0x158] sm:$0xff]   ;;  %v284_v60 = vld [vmem:[#allocation2 + $0x50] sm:$0xf] }
  0x66   : > { %v2114_v12 = vrot.slane %v2112_v4, 1  ;;  %v503_v22 = vsel %vm475_vm0, %v498_v2, %v502_v3  ;;  %v8103_v31 = vcombine.low %v276_v54, %v277_v0  ;;  %v506_v35 = vor.u32 %v504_v7, %v502_v3  ;;  %v283_v54 = vld [vmem:[#allocation2 + $0x4c] sm:$0xf]  ;;  %v285_v4 = vld [vmem:[#allocation2 + $0x54] sm:$0xf]  ;;  %s7796_s13 = sshll.u32 %s7914_s29, 4  ;;  %s7797_s13 = int_to_ptr.vmem [resolvable:$false] %s7796_s13 }
  0x67   : > { %6464 = vmatpush3.bf16.msra.mxu1 %v7613_v8  ;;  %v508_v8 = vshll.u32 %v8079_v53, 16  ;;  %11395 = vst [vmem:[#allocation25_spill] sm:$0xff] %v8094_v14  ;;  %v2128_v25 = vshll.u32 %v8094_v14, 16  ;;  %v8105_v36 = vcombine.low %v279_v19, %v280_v21  ;;  %v518_v40 = vrot.slane %v516_v18, 1  ;;  %v7647_v18 = vld [vmem:[#allocation4 + $0x160] sm:$0xff]   ;;  %s7798_s14 = scalar_lea.vmem %s7797_s13, 6144  ;;  %p7799_p10 = scmp.lt.s32.totalorder %s10837_s8, %s7797_s13 }
  0x68   : > { %6720 = vmatpush3.bf16.msra.mxu0 %v7614_v9  ;;  %6465 = vmatprep.subr.bf16.mxu1 %v7615_v10  ;;  %v2120_v9 = vshll.u32 %v8086_v63, 16  ;;  %v2115_v26 = vsel %vm475_vm0, %v2110_v6, %v2114_v12  ;;  %v2118_v38 = vor.u32 %v2116_v13, %v2114_v12  ;;  %v520_v46 = vshrl.u32 %v8084_v62, 16  ;;  %v7653_v6 = vld [vmem:[#allocation4 + $0x18] sm:$0xff]   ;;  %p7800_p11 = scmp.lt.s32.totalorder %s7798_s14, %s7792_s12 }
  0x69   : > { %6721 = vmatprep.subr.bf16.mxu0 %v7616_v11  ;;  %v510_v27 = vrot.slane %v508_v8, 1  ;;  %11396 = vst [vmem:[#allocation26_spill] sm:$0xff] %v8105_v36  ;;  %v2130_v45 = vrot.slane %v2128_v25, 1  ;;  %v524_v47 = vshll.u32 %v8103_v31, 16  ;;  %v8111_v48 = vcombine.low %v281_v33, %v282_v37 }
  0x6a   : > { %v2122_v29 = vrot.slane %v2120_v9, 1  ;;  %v2132_v50 = vshrl.u32 %v8094_v14, 16  ;;  %v2136_v51 = vshll.u32 %v8105_v36, 16  ;;  %v528_v58 = vshrl.u32 %v8103_v31, 16  ;;  %p7801_p13 = por %p7800_p11, %p7799_p10 }
  0x6b   : > { %6466 = vmatpush3.bf16.msra.mxu1 %v7615_v10  ;;  %v495_v10 = vsel %vm475_vm0, %v490_v55, %v494_v56  ;;  %v514_v39 = vor.u32 %v512_v17, %v510_v27  ;;  %11397 = vst [vmem:[#allocation27_spill] sm:$0xff] %v8111_v48  ;;  %v8114_v49 = vsel %vm475_vm0, %v506_v35, %v510_v27  ;;  %v2140_v0 = vshrl.u32 %v8105_v36, 16 }
  0x6c   : > { %6722 = vmatpush3.bf16.msra.mxu0 %v7616_v11  ;;  %6467 = vmatprep.subr.bf16.mxu1 %v7617_v24  ;;  %v7630_v11 = vld [vmem:[#allocation4 + $0x148] sm:$0xff]   ;;  %11398 = vst [vmem:[#allocation28_spill] sm:$0xff] %v8114_v49  ;;  %v2123_v55 = vsel %vm475_vm0, %v2118_v38, %v2122_v29  ;;  %v526_v2 = vrot.slane %v524_v47, 1  ;;  %v8128_v3 = vcombine.low %v280_v21, %v281_v33  ;;  %v2138_v9 = vrot.slane %v2136_v51, 1  ;;  %v288_v38 = vld [vmem:[#allocation2 + $0x60] sm:$0xf]  ;;  %p7802_p1 = pnand %p7801_p13, %p7795_p8 }
  0x6d   : > { %6723 = vmatprep.subr.bf16.mxu0 %v7618_v30  ;;  %v8120_v56 = vsel %vm475_vm0, %v514_v39, %v518_v40  ;;  %v522_v7 = vor.u32 %v520_v46, %v518_v40  ;;  %v2134_v8 = vor.u32 %v2132_v50, %v2130_v45  ;;  %v8133_v13 = vcombine.low %v282_v37, %v283_v54  ;;  %v7648_v33 = vld [vmem:[#allocation4 + $0x168] sm:$0xff]   ;;  %v7661_v47 = vld [vmem:[#allocation4 + $0x20] sm:$0xff]  }
  0x6e   : > { %11399 = vst [vmem:[#allocation29_spill] sm:$0xff] %v8120_v56  ;;  %v540_v21 = vshll.u32 %v8128_v3, 16  ;;  %v544_v35 = vshrl.u32 %v8128_v3, 16  ;;  %v8154_v46 = vcombine.low %v284_v60, %v285_v4 }
  0x6f   : > { %6468 = vmatpush3.bf16.msra.mxu1 %v7617_v24  ;;  %v2124_v24 = vshrl.u32 %v8086_v63, 16  ;;  %v2139_v25 = vsel %vm475_vm0, %v2134_v8, %v2138_v9  ;;  %v548_v37 = vshll.u32 %v8133_v13, 16 }
  0x70   : > { %6724 = vmatpush3.bf16.msra.mxu0 %v7618_v30  ;;  %6469 = vmatprep.subr.bf16.mxu1 %v7619_v41  ;;  %v7635_v30 = vld [vmem:[#allocation4 + $0x8] sm:$0xff]  }
  0x71   : > { %6725 = vmatprep.subr.bf16.mxu0 %v7620_v42  ;;  %v2126_v44 = vor.u32 %v2124_v24, %v2122_v29  ;;  %v8139_v24 = vsel %vm475_vm0, %v522_v7, %v526_v2  ;;  %v552_v7 = vshrl.u32 %v8133_v13, 16 }
  0x72   : > { %11402 = vst [vmem:[#allocation32_spill] sm:$0xff] %v8139_v24 }
  0x73   : > { %6470 = vmatpush3.bf16.msra.mxu1 %v7619_v41  ;;  %v8107_v41 = vcombine.low %v278_v5, %v279_v19  ;;  %v2131_v61 = vsel %vm475_vm0, %v2126_v44, %v2130_v45  ;;  %v286_v5 = vld [vmem:[#allocation2 + $0x58] sm:$0xf]  ;;  %v290_v44 = vld [vmem:[#allocation2 + $0x68] sm:$0xf]  ;;  %v542_v45 = vrot.slane %v540_v21, 1 }
  0x74   : > { %6726 = vmatpush3.bf16.msra.mxu0 %v7620_v42  ;;  %6519 = vmatprep.subr.bf16.mxu1 %v7627_v59  ;;  %v7644_v42 = vld [vmem:[#allocation4 + $0x10] sm:$0xff]   ;;  %v8135_v19 = vcombine.low %v285_v4, %v286_v5  ;;  %v556_v4 = vshll.u32 %v8154_v46, 16 }
  0x75   : > { %6775 = vmatprep.subr.bf16.mxu0 %v7629_v1 }
  0x76   : > { %6472 = vmatmul.mubr.bf16.vlgmr.msra.gmra.mrb[0].mxu1 %v495_v10  ;;  %v8131_v10 = vcombine.low %v283_v54, %v284_v60  ;;  %11401 = vst [vmem:[#allocation31_spill] sm:$0xff] %v8135_v19  ;;  %v2164_v8 = vshrl.u32 %v8135_v19, 16 }
  0x77   : > { %6728 = vmatmul.mubr.bf16.vlgmr.msra.gmra.mrb[0].mxu0 %v2107_v15  ;;  %6520 = vmatpush3.bf16.msra.mxu1 %v7627_v59  ;;  %v532_v59 = vshll.u32 %v8107_v41, 16  ;;  %v2142_v15 = vor.u32 %v2140_v0, %v2138_v9 }
  0x78   : > { %6776 = vmatpush3.bf16.msra.mxu0 %v7629_v1  ;;  %6475 = vmatprep.mubr.bf16.mxu1 %v503_v22  ;;  %v2144_v1 = vshll.u32 %v8111_v48, 16  ;;  %11400 = vst [vmem:[#allocation30_spill] sm:$0xff] %v8131_v10  ;;  %v287_v22 = vld [vmem:[#allocation2 + $0x5c] sm:$0xf]  ;;  %v2152_v27 = vshll.u32 %v8131_v10, 16  ;;  %v2156_v40 = vshrl.u32 %v8131_v10, 16 }
  0x79   : > { %6777 = vmatprep.subr.bf16.mxu0 %v7630_v11  ;;  %6731 = vmatprep.mubr.bf16.mxu0 %v2115_v26  ;;  %v534_v12 = vrot.slane %v532_v59, 1  ;;  %v536_v26 = vshrl.u32 %v8107_v41, 16  ;;  %v8159_v59 = vcombine.low %v286_v5, %v287_v22 }
  0x7a   : > { %6521 = vmatprep.subr.bf16.mxu1 %v7635_v30  ;;  %v2146_v17 = vrot.slane %v2144_v1, 1  ;;  %v2154_v51 = vrot.slane %v2152_v27, 1  ;;  %v7654_v1 = vld [vmem:[#allocation4 + $0x170] sm:$0xff]   ;;  %v558_v27 = vrot.slane %v556_v4, 1 }
  0x7b   : > { %6522 = vmatpush3.bf16.msra.mxu1 %v7635_v30  ;;  %v2148_v30 = vshrl.u32 %v8111_v48, 16  ;;  %v538_v50 = vor.u32 %v536_v26, %v534_v12  ;;  %v7660_v26 = vld [vmem:[#allocation4 + $0x178] sm:$0xff]  }
  0x7c   : > { %6778 = vmatpush3.bf16.msra.mxu0 %v7630_v11  ;;  %6523 = vmatprep.subr.bf16.mxu1 %v7644_v42  ;;  %v530_v11 = vor.u32 %v528_v58, %v526_v2  ;;  %v2147_v39 = vsel %vm475_vm0, %v2142_v15, %v2146_v17  ;;  %v550_v58 = vrot.slane %v548_v37, 1  ;;  %v2158_v0 = vor.u32 %v2156_v40, %v2154_v51 }
  0x7d   : > { %6779 = vmatprep.subr.bf16.mxu0 %v7636_v43  ;;  %v2150_v54 = vor.u32 %v2148_v30, %v2146_v17  ;;  %v564_v15 = vshll.u32 %v8159_v59, 16  ;;  %v291_v17 = vld [vmem:[#allocation2 + $0x6c] sm:$0xf] }
  0x7e   : > { %6476 = vmatmul.mubr.bf16.gmra.mrb[4].mxu1 %v8114_v49  ;;  %v8145_v29 = vsel %vm475_vm0, %v530_v11, %v534_v12  ;;  %v560_v12 = vshrl.u32 %v8154_v46, 16  ;;  %v8328_v49 = vld [vmem:[#allocation2 + $0xb4] sm:$0xf] }
  0x7f   : > { %6732 = vmatmul.mubr.bf16.gmra.mrb[4].mxu0 %v2123_v55  ;;  %6479 = vmatprep.mubr.bf16.mxu1 %v8120_v56  ;;  %11403 = vst [vmem:[#allocation33_spill] sm:$0xff] %v8145_v29  ;;  %v546_v55 = vor.u32 %v544_v35, %v542_v45  ;;  %v2155_v9 = vsel %vm475_vm0, %v2150_v54, %v2154_v51  ;;  %v7675_v54 = vld [vmem:[#allocation4 + $0x38] sm:$0xff]   ;;  %v8326_v56 = vld [vmem:[#allocation2 + $0xb0] sm:$0xf] }
  0x80   : > { %6780 = vmatpush3.bf16.msra.mxu0 %v7636_v43  ;;  %6735 = vmatprep.mubr.bf16.mxu0 %v2131_v61  ;;  %v289_v43 = vld [vmem:[#allocation2 + $0x64] sm:$0xf]  ;;  %v7665_v61 = vld [vmem:[#allocation4 + $0x28] sm:$0xff]   ;;  %v554_v35 = vor.u32 %v552_v7, %v550_v58  ;;  %v562_v40 = vor.u32 %v560_v12, %v558_v27 }
  0x81   : > { %6781 = vmatprep.subr.bf16.mxu0 %v7641_v52  ;;  %6524 = vmatpush3.bf16.msra.mxu1 %v7644_v42  ;;  %v2160_v42 = vshll.u32 %v8135_v19, 16  ;;  %v8161_v2 = vcombine.low %v289_v43, %v290_v44  ;;  %v8172_v11 = vsel %vm475_vm0, %v546_v55, %v550_v58  ;;  %v8180_v30 = vcombine.low %v288_v38, %v289_v43 }
  0x82   : > { %6525 = vmatprep.subr.bf16.mxu1 %v7653_v6  ;;  %11405 = vst [vmem:[#allocation35_spill] sm:$0xff] %v8172_v11  ;;  %v8191_v55 = vsel %vm475_vm0, %v554_v35, %v558_v27  ;;  %v8223_v35 = vld [vmem:[#allocation2 + $0x80] sm:$0xf] }
  0x83   : > { %v2162_v60 = vrot.slane %v2160_v42, 1  ;;  %v566_v42 = vrot.slane %v564_v15, 1  ;;  %v572_v43 = vshll.u32 %v8180_v30, 16  ;;  %11406 = vst [vmem:[#allocation36_spill] sm:$0xff] %v8191_v55  ;;  %v576_v4 = vshrl.u32 %v8180_v30, 16 }
  0x84   : > { %6782 = vmatpush3.bf16.msra.mxu0 %v7641_v52  ;;  %v8157_v52 = vcombine.low %v287_v22, %v288_v38  ;;  %v8187_v38 = vld [vmem:[#allocation4 + $0x180] sm:$0xff]  }
  0x85   : > { %6783 = vmatprep.subr.bf16.mxu0 %v7647_v18  ;;  %6526 = vmatpush3.bf16.msra.mxu1 %v7653_v6  ;;  %v8165_v6 = vsel %vm475_vm0, %v538_v50, %v542_v45  ;;  %v2163_v21 = vsel %vm475_vm0, %v2158_v0, %v2162_v60  ;;  %v2166_v37 = vor.u32 %v2164_v8, %v2162_v60  ;;  %v8195_v0 = vld [vmem:[#allocation2 + $0x74] sm:$0xf]  ;;  %v2180_v60 = vshrl.u32 %v8161_v2, 16 }
  0x86   : > { %6480 = vmatmul.mubr.bf16.gmra.mrb[8].mxu1 %v8139_v24  ;;  %6527 = vmatprep.subr.bf16.mxu1 %v7661_v47  ;;  %11404 = vst [vmem:[#allocation34_spill] sm:$0xff] %v8165_v6  ;;  %v2168_v5 = vshll.u32 %v8157_v52, 16  ;;  %v2172_v22 = vshrl.u32 %v8157_v52, 16  ;;  %v8183_v45 = vcombine.low %v290_v44, %v291_v17  ;;  %v568_v44 = vshrl.u32 %v8159_v59, 16 }
  0x87   : > { %6736 = vmatmul.mubr.bf16.gmra.mrb[8].mxu0 %v2139_v25  ;;  %6483 = vmatprep.mubr.bf16.mxu1 %v8145_v29  ;;  %v2176_v25 = vshll.u32 %v8161_v2, 16  ;;  %v574_v12 = vrot.slane %v572_v43, 1 }
  0x88   : > { %6739 = vmatprep.mubr.bf16.mxu0 %v2147_v39  ;;  %6784 = vmatpush3.bf16.msra.mxu0 %v7647_v18  ;;  %v292_v18 = vld [vmem:[#allocation2 + $0x70] sm:$0xf]  ;;  %v2170_v39 = vrot.slane %v2168_v5, 1  ;;  %v580_v7 = vshll.u32 %v8183_v45, 16  ;;  %v8206_v5 = vld [vmem:[#allocation2 + $0x78] sm:$0xf] }
  0x89   : > { %6785 = vmatprep.subr.bf16.mxu0 %v7648_v33  ;;  %6528 = vmatpush3.bf16.msra.mxu1 %v7661_v47  ;;  %v8185_v47 = vcombine.low %v291_v17, %v292_v18  ;;  %v2178_v51 = vrot.slane %v2176_v25, 1  ;;  %v8212_v15 = vcombine.low %v292_v18, %v8195_v0  ;;  %v8214_v17 = vld [vmem:[#allocation4 + $0x80] sm:$0xff]   ;;  %v8225_v18 = vld [vmem:[#allocation2 + $0x84] sm:$0xf] }
  0x8a   : > { %6529 = vmatprep.subr.bf16.mxu1 %v7665_v61  ;;  %v2174_v50 = vor.u32 %v2172_v22, %v2170_v39  ;;  %v2171_v58 = vsel %vm475_vm0, %v2166_v37, %v2170_v39  ;;  %v582_v27 = vrot.slane %v580_v7, 1  ;;  %v2646_v37 = vrot.slane %v8057_v20, 1 }
  0x8b   : > { %v2182_v22 = vor.u32 %v2180_v60, %v2178_v51  ;;  %v2647_v39 = vrot.slane %v8059_v23, 1  ;;  %v8245_v60 = vcombine.low %v8223_v35, %v8225_v18 }
  0x8c   : > { %6786 = vmatpush3.bf16.msra.mxu0 %v7648_v33  ;;  %v7671_v33 = vld [vmem:[#allocation4 + $0x30] sm:$0xff]   ;;  %v2179_v8 = vsel %vm475_vm0, %v2174_v50, %v2178_v51  ;;  %v584_v50 = vshrl.u32 %v8183_v45, 16 }
  0x8d   : > { %6787 = vmatprep.subr.bf16.mxu0 %v7654_v1  ;;  %6530 = vmatpush3.bf16.msra.mxu1 %v7665_v61  ;;  %v2184_v61 = vshll.u32 %v8185_v47, 16  ;;  %v604_v23 = vshll.u32 %v8245_v60, 16 }
  0x8e   : > { %6484 = vmatmul.mubr.bf16.gmra.mrb[12].mxu1 %v8165_v6  ;;  %6531 = vmatprep.subr.bf16.mxu1 %v7671_v33  ;;  %v7672_v6 = vld [vmem:[#allocation4 + $0x190] sm:$0xff]  }
  0x8f   : > { %6740 = vmatmul.mubr.bf16.gmra.mrb[12].mxu0 %v2155_v9  ;;  %6487 = vmatprep.mubr.bf16.mxu1 %v8172_v11  ;;  %v8208_v9 = vld [vmem:[#allocation2 + $0x7c] sm:$0xf]  ;;  %v8217_v25 = vrot.slane %v2184_v61, 1  ;;  %v8247_v61 = vld [vmem:[#allocation2 + $0x88] sm:$0xf] }
  0x90   : > { %6743 = vmatprep.mubr.bf16.mxu0 %v2163_v21  ;;  %6788 = vmatpush3.bf16.msra.mxu0 %v7654_v1  ;;  %v8199_v1 = vsel %vm475_vm0, %v562_v40, %v566_v42  ;;  %v570_v21 = vor.u32 %v568_v44, %v566_v42  ;;  %v588_v40 = vshll.u32 %v8212_v15, 16  ;;  %v2648_v44 = vsel %vm1283_vm1, %v2646_v37, %v2647_v39  ;;  %v8258_v37 = vld [vmem:[#allocation2 + $0x90] sm:$0xf] }
  0x91   : > { %6789 = vmatprep.subr.bf16.mxu0 %v7660_v26  ;;  %11407 = vst [vmem:[#allocation37_spill] sm:$0xff] %v8199_v1  ;;  %6532 = vmatpush3.bf16.msra.mxu1 %v7671_v33  ;;  %11408 = vst [vmem:[#allocation38_spill] sm:$0xff] %v8217_v25  ;;  %v8221_v33 = vcombine.low %v8206_v5, %v8208_v9  ;;  %v2187_v51 = vsel %vm475_vm0, %v2182_v22, %v8217_v25  ;;  %v2651_v25 = vrot.slane %v8081_v57, 1 }
  0x92   : > { %6533 = vmatprep.subr.bf16.mxu1 %v7675_v54  ;;  %v8232_v42 = vsel %vm475_vm0, %v570_v21, %v574_v12  ;;  %v590_v7 = vrot.slane %v588_v40, 1  ;;  %v8262_v40 = vld [vmem:[#allocation2 + $0x94] sm:$0xf]  ;;  %v608_v57 = vshrl.u32 %v8245_v60, 16 }
  0x93   : > { %11409 = vst [vmem:[#allocation39_spill] sm:$0xff] %v8232_v42 }
  0x94   : > { %6790 = vmatpush3.bf16.msra.mxu0 %v7660_v26  ;;  %v578_v26 = vor.u32 %v576_v4, %v574_v12  ;;  %v8249_v4 = vld [vmem:[#allocation2 + $0x8c] sm:$0xf]  ;;  %v2649_v12 = vrot.slane %v8069_v34, 1 }
  0x95   : > { %6839 = vmatprep.subr.bf16.mxu0 %v8187_v38  ;;  %6534 = vmatpush3.bf16.msra.mxu1 %v7675_v54  ;;  %v596_v54 = vshll.u32 %v8221_v33, 16 }
  0x96   : > { %6488 = vmatmul.mubr.bf16.gmra.mrb[16].mxu1 %v8191_v55  ;;  %6583 = vmatprep.subr.bf16.mxu1 %v8214_v17  ;;  %v8238_v43 = vsel %vm475_vm0, %v578_v26, %v582_v27  ;;  %v8256_v26 = vcombine.low %v8247_v61, %v8249_v4  ;;  %v2652_v20 = vsel %vm1283_vm1, %v2649_v12, %v2651_v25 }
  0x97   : > { %6744 = vmatmul.mubr.bf16.gmra.mrb[16].mxu0 %v2171_v58  ;;  %6491 = vmatprep.mubr.bf16.mxu1 %v8199_v1  ;;  %11410 = vst [vmem:[#allocation40_spill] sm:$0xff] %v8238_v43  ;;  %v592_v58 = vshrl.u32 %v8212_v15, 16  ;;  %v598_v22 = vrot.slane %v596_v54, 1  ;;  %v2650_v54 = vsel %vm1283_vm1, %v2647_v39, %v2649_v12  ;;  %v8281_v1 = vcombine.low %v8258_v37, %v8262_v40  ;;  %v8286_v39 = vld [vmem:[#allocation2 + $0xa4] sm:$0xf] }
  0x98   : > { %6747 = vmatprep.mubr.bf16.mxu0 %v2179_v8  ;;  %v586_v8 = vor.u32 %v584_v50, %v582_v27  ;;  %11411 = vst [vmem:[#allocation41_spill] sm:$0xff] %v8256_v26  ;;  %v8265_v27 = vld [vmem:[#allocation2 + $0x98] sm:$0xf]  ;;  %v8267_v50 = vld [vmem:[#allocation2 + $0x9c] sm:$0xf]  ;;  %v612_v34 = vshll.u32 %v8256_v26, 16 }
  0x99   : > { %v594_v21 = vor.u32 %v592_v58, %v590_v7  ;;  %11414 = vst [vmem:[#allocation44_spill] sm:$0xff] %v8281_v1  ;;  %v8295_v12 = vld [vmem:[#allocation2 + $0xac] sm:$0xf]  ;;  %v624_v29 = vshrl.u32 %v8281_v1, 16 }
  0x9a   : > { %v8270_v58 = vsel %vm475_vm0, %v586_v8, %v590_v7  ;;  %v8284_v7 = vld [vmem:[#allocation2 + $0xa0] sm:$0xf]  ;;  %v614_v11 = vrot.slane %v612_v34, 1 }
  0x9b   : > { %11412 = vst [vmem:[#allocation42_spill] sm:$0xff] %v8270_v58  ;;  %v8311_v34 = vcombine.low %v8284_v7, %v8286_v39 }
  0x9d   : > { %11417 = vst [vmem:[#allocation47_spill] sm:$0xff] %v8311_v34 }
  0x9e   : > { %6492 = vmatmul.mubr.bf16.gmra.mrb[20].mxu1 %v8232_v42  ;;  %v7666_v42 = vld [vmem:[#allocation4 + $0x188] sm:$0xff]  }
  0x9f   : > { %6748 = vmatmul.mubr.bf16.gmra.mrb[20].mxu0 %v2187_v51  ;;  %6495 = vmatprep.mubr.bf16.mxu1 %v8238_v43  ;;  %v600_v51 = vshrl.u32 %v8221_v33, 16  ;;  %v606_v43 = vrot.slane %v604_v23, 1  ;;  %v8293_v23 = vld [vmem:[#allocation2 + $0xa8] sm:$0xf] }
  0xa0   : > { %6791 = vmatprep.mubr.bf16.mxu0 %v2648_v44  ;;  %v8274_v44 = vsel %vm475_vm0, %v594_v21, %v598_v22  ;;  %v8291_v21 = vcombine.low %v8265_v27, %v8267_v50 }
  0xa1   : > { %11413 = vst [vmem:[#allocation43_spill] sm:$0xff] %v8274_v44  ;;  %v602_v8 = vor.u32 %v600_v51, %v598_v22  ;;  %v610_v55 = vor.u32 %v608_v57, %v606_v43  ;;  %v616_v22 = vshrl.u32 %v8256_v26, 16  ;;  %v620_v51 = vshll.u32 %v8281_v1, 16  ;;  %v7683_v1 = vld [vmem:[#allocation4 + $0x1a0] sm:$0xff]  }
  0xa2   : > { %11415 = vst [vmem:[#allocation45_spill] sm:$0xff] %v8291_v21  ;;  %v2659_v57 = vrot.slane %v8111_v48, 1  ;;  %v632_v48 = vshrl.u32 %v8291_v21, 16 }
  0xa3   : > { %v8305_v24 = vsel %vm475_vm0, %v602_v8, %v606_v43  ;;  %v622_v8 = vrot.slane %v620_v51, 1  ;;  %v640_v51 = vshrl.u32 %v8311_v34, 16 }
  0xa4   : > { %11416 = vst [vmem:[#allocation46_spill] sm:$0xff] %v8305_v24 }
  0xa6   : > { %6496 = vmatmul.mubr.bf16.gmra.mrb[24].mxu1 %v8270_v58  ;;  %v2653_v58 = vrot.slane %v8086_v63, 1  ;;  %v8315_v63 = vsel %vm475_vm0, %v610_v55, %v614_v11  ;;  %v636_v55 = vshll.u32 %v8311_v34, 16 }
  0xa7   : > { %6792 = vmatmul.mubr.bf16.vlgmr.msra.gmra.mrb[0].mxu0 %v2650_v54  ;;  %6499 = vmatprep.mubr.bf16.mxu1 %v8274_v44  ;;  %v2655_v54 = vrot.slane %v8094_v14, 1  ;;  %v2657_v44 = vrot.slane %v8105_v36, 1  ;;  %11418 = vst [vmem:[#allocation48_spill] sm:$0xff] %v8315_v63  ;;  %v8319_v36 = vcombine.low %v8293_v23, %v8295_v12 }
  0xa8   : > { %6840 = vmatpush3.bf16.msra.mxu0 %v8187_v38  ;;  %6795 = vmatprep.mubr.bf16.mxu0 %v2652_v20  ;;  %v628_v20 = vshll.u32 %v8291_v21, 16  ;;  %v7676_v38 = vld [vmem:[#allocation4 + $0x198] sm:$0xff]   ;;  %v2654_v14 = vsel %vm1283_vm1, %v2651_v25, %v2653_v58  ;;  %v618_v25 = vor.u32 %v616_v22, %v614_v11  ;;  %v8335_v11 = vld [vmem:[#allocation2 + $0xb8] sm:$0xf]  ;;  %v8337_v22 = vld [vmem:[#allocation2 + $0xbc] sm:$0xf] }
  0xa9   : > { %6841 = vmatprep.subr.bf16.mxu0 %v7666_v42  ;;  %v2656_v43 = vsel %vm1283_vm1, %v2653_v58, %v2655_v54  ;;  %v626_v58 = vor.u32 %v624_v29, %v622_v8  ;;  %v644_v21 = vshll.u32 %v8319_v36, 16  ;;  %v8345_v29 = vcombine.low %v8326_v56, %v8328_v49 }
  0xab   : > { %v646_v26 = vrot.slane %v644_v21, 1  ;;  %v656_v21 = vshrl.u32 %v8345_v29, 16 }
  0xac   : > { %6842 = vmatpush3.bf16.msra.mxu0 %v7666_v42  ;;  %v630_v42 = vrot.slane %v628_v20, 1  ;;  %v7687_v20 = vld [vmem:[#allocation4 + $0x1a8] sm:$0xff]  }
  0xad   : > { %6843 = vmatprep.subr.bf16.mxu0 %v7672_v6 }
  0xae   : > { %6500 = vmatmul.mubr.bf16.gmra.mrb[28].mxu1 %v8305_v24  ;;  %v8341_v24 = vsel %vm475_vm0, %v626_v58, %v630_v42  ;;  %v7693_v58 = vld [vmem:[#allocation4 + $0x1b0] sm:$0xff]  }
  0xaf   : > { %6796 = vmatmul.mubr.bf16.gmra.mrb[4].mxu0 %v2654_v14  ;;  %6503 = vmatprep.mubr.bf16.mxu1 %v8315_v63  ;;  %v8333_v14 = vsel %vm475_vm0, %v618_v25, %v622_v8  ;;  %v2658_v63 = vsel %vm1283_vm1, %v2655_v54, %v2657_v44  ;;  %11419 = vst [vmem:[#allocation49_spill] sm:$0xff] %v8341_v24  ;;  %v2661_v54 = vrot.slane %v8131_v10, 1  ;;  %v2663_v25 = vrot.slane %v8135_v19, 1  ;;  %v7696_v19 = vld [vmem:[#allocation4 + $0x1b8] sm:$0xff]  }
  0xb0   : > { %6799 = vmatprep.mubr.bf16.mxu0 %v2656_v43  ;;  %6844 = vmatpush3.bf16.msra.mxu0 %v7672_v6  ;;  %v2660_v6 = vsel %vm1283_vm1, %v2657_v44, %v2659_v57  ;;  %v638_v43 = vrot.slane %v636_v55, 1  ;;  %v634_v8 = vor.u32 %v632_v48, %v630_v42  ;;  %v8355_v44 = vcombine.low %v8335_v11, %v8337_v22 }
  0xb1   : > { %6845 = vmatprep.subr.bf16.mxu0 %v7676_v38  ;;  %v648_v48 = vshrl.u32 %v8319_v36, 16  ;;  %v2662_v42 = vsel %vm1283_vm1, %v2659_v57, %v2661_v54 }
  0xb2   : > { %v642_v34 = vor.u32 %v640_v51, %v638_v43  ;;  %v660_v51 = vshll.u32 %v8355_v44, 16 }
  0xb3   : > { %v650_v57 = vor.u32 %v648_v48, %v646_v26 }
  0xb4   : > { %6846 = vmatpush3.bf16.msra.mxu0 %v7676_v38  ;;  %v652_v38 = vshll.u32 %v8345_v29, 16  ;;  %v8363_v55 = vsel %vm475_vm0, %v642_v34, %v646_v26  ;;  %v664_v26 = vshrl.u32 %v8355_v44, 16 }
  0xb5   : > { %6847 = vmatprep.subr.bf16.mxu0 %v7683_v1 }
  0xb6   : > { %6504 = vmatmul.mubr.bf16.gmra.mrb[32].mxu1 %v8333_v14 }
  0xb7   : > { %6800 = vmatmul.mubr.bf16.gmra.mrb[8].mxu0 %v2658_v63  ;;  %6507 = vmatprep.mubr.bf16.mxu1 %v8341_v24  ;;  %v8358_v63 = vsel %vm475_vm0, %v634_v8, %v638_v43  ;;  %v654_v43 = vrot.slane %v652_v38, 1  ;;  %v2665_v8 = vrot.slane %v8157_v52, 1  ;;  %v8378_v24 = vld [vmem:[#allocation4 + $0x1c0] sm:$0xff]  }
  0xb8   : > { %6803 = vmatprep.mubr.bf16.mxu0 %v2660_v6  ;;  %6848 = vmatpush3.bf16.msra.mxu0 %v7683_v1  ;;  %v8367_v6 = vld [vmem:[#allocation2 + $0xc0] sm:$0xf]  ;;  %v2664_v1 = vsel %vm1283_vm1, %v2661_v54, %v2663_v25  ;;  %v2667_v54 = vrot.slane %v8161_v2, 1 }
  0xb9   : > { %6849 = vmatprep.subr.bf16.mxu0 %v7687_v20  ;;  %v8374_v34 = vcombine.low %v8367_v6, %v8367_v6  ;;  %v658_v10 = vor.u32 %v656_v21, %v654_v43  ;;  %v8381_v38 = vsel %vm475_vm0, %v650_v57, %v654_v43  ;;  %v8392_v21 = vcombine.low %v8195_v0, %v8206_v5 }
  0xba   : > { %v8406_v5 = vcombine.low %v8208_v9, %v8223_v35  ;;  %v8421_v35 = vcombine.low %v8249_v4, %v8258_v37 }
  0xbb   : > { %v668_v48 = vshll.u32 %v8374_v34, 16 }
  0xbc   : > { %6850 = vmatpush3.bf16.msra.mxu0 %v7687_v20  ;;  %v662_v20 = vrot.slane %v660_v51, 1  ;;  %v2677_v37 = vrot.slane %v8421_v35, 1 }
  0xbd   : > { %6851 = vmatprep.subr.bf16.mxu0 %v7693_v58 }
  0xbe   : > { %6508 = vmatmul.mubr.bf16.gmra.mrb[36].mxu1 %v8358_v63  ;;  %v8397_v51 = vor.u32 %v664_v26, %v662_v20  ;;  %v2673_v26 = vrot.slane %v8406_v5, 1 }
  0xbf   : > { %6804 = vmatmul.mubr.bf16.gmra.mrb[12].mxu0 %v2662_v42  ;;  %6511 = vmatprep.mubr.bf16.mxu1 %v8363_v55  ;;  %v2666_v42 = vsel %vm1283_vm1, %v2663_v25, %v2665_v8  ;;  %v670_v25 = vrot.slane %v668_v48, 1  ;;  %v313_v48 = vld [vmem:[#allocation2 + $0xc4] sm:$0xf] }
  0xc0   : > { %6807 = vmatprep.mubr.bf16.mxu0 %v2664_v1  ;;  %6852 = vmatpush3.bf16.msra.mxu0 %v7693_v58  ;;  %v8387_v1 = vsel %vm475_vm0, %v658_v10, %v662_v20  ;;  %v2668_v58 = vsel %vm1283_vm1, %v2665_v8, %v2667_v54  ;;  %v2669_v10 = vrot.slane %v8185_v47, 1  ;;  %v8411_v8 = vcombine.low %v8225_v18, %v8247_v61  ;;  %v8413_v20 = vld [vmem:[#allocation2] sm:$0xff]   ;;  %v7686_v61 = vld [vmem:[#allocation4 + $0x88] sm:$0xff]  }
  0xc1   : > { %6853 = vmatprep.subr.bf16.mxu0 %v7696_v19  ;;  %v671_v43 = vsel %vm475_vm0, %v8397_v51, %v670_v25  ;;  %v314_v25 = vld [vmem:[#allocation2 + $0xc8] sm:$0xf] }
  0xc2   : > { %v2670_v0 = vsel %vm1283_vm1, %v2667_v54, %v2669_v10  ;;  %v2675_v54 = vrot.slane %v8411_v8, 1 }
  0xc4   : > { %6854 = vmatpush3.bf16.msra.mxu0 %v7696_v19  ;;  %v2671_v19 = vrot.slane %v8392_v21, 1  ;;  %v2676_v18 = vsel %vm1283_vm1, %v2673_v26, %v2675_v54 }
  0xc5   : > { %6903 = vmatprep.subr.bf16.mxu0 %v8378_v24 }
  0xc6   : > { %6512 = vmatmul.mubr.bf16.gmra.mrb[40].mxu1 %v8381_v38  ;;  %v2672_v57 = vsel %vm1283_vm1, %v2669_v10, %v2671_v19  ;;  %v2674_v9 = vsel %vm1283_vm1, %v2671_v19, %v2673_v26  ;;  %v315_v10 = vld [vmem:[#allocation2 + $0xcc] sm:$0xf]  ;;  %v7691_v19 = vld [vmem:[#allocation4 + $0x90] sm:$0xff]  }
  0xc7   : > { %6808 = vmatmul.mubr.bf16.gmra.mrb[16].mxu0 %v2666_v42  ;;  %6515 = vmatprep.mubr.bf16.mxu1 %v8387_v1  ;;  %v8426_v42 = vcombine.low %v8262_v40, %v8265_v27  ;;  %v8433_v4 = vcombine.low %v314_v25, %v315_v10  ;;  %v2678_v27 = vsel %vm1283_vm1, %v2675_v54, %v2677_v37 }
  0xc8   : > { %6811 = vmatprep.mubr.bf16.mxu0 %v2668_v58  ;;  %v8429_v58 = vcombine.low %v8367_v6, %v313_v48 }
  0xc9   : > { %v2679_v40 = vrot.slane %v8426_v42, 1 }
  0xce   : > { %6516 = vmatmul.mubr.bf16.gmra.mrb[44].mxu1 %v671_v43  ;;  %v8441_v43 = vcombine.low %v8267_v50, %v8284_v7  ;;  %v7699_v7 = vld [vmem:[#allocation4 + $0xa0] sm:$0xff]  }
  0xcf   : > { %6812 = vmatmul.mubr.bf16.gmra.mrb[20].mxu0 %v2670_v0  ;;  %6535 = vmatprep.mubr.bf16.mxu1 %v8413_v20  ;;  %v8446_v0 = vcombine.low %v8286_v39, %v8293_v23  ;;  %v8455_v39 = vcombine.low %v8295_v12, %v8326_v56  ;;  %v7703_v12 = vld [vmem:[#allocation4 + $0xb0] sm:$0xff]  }
  0xd0   : > { %6815 = vmatprep.mubr.bf16.mxu0 %v2672_v57  ;;  %v7695_v57 = vld [vmem:[#allocation4 + $0x98] sm:$0xff]   ;;  %v2681_v26 = vrot.slane %v8441_v43, 1 }
  0xd1   : > { %v2683_v50 = vrot.slane %v8446_v0, 1 }
  0xd2   : > { %v2682_v54 = vsel %vm1283_vm1, %v2679_v40, %v2681_v26 }
  0xd3   : > { %v2684_v23 = vsel %vm1283_vm1, %v2681_v26, %v2683_v50 }
  0xd6   : > { %6536 = vmatmul.mubr.bf16.vlgmr.msra.gmra.mrb[0].mxu1 %v8055_v16 }
  0xd7   : > { %6816 = vmatmul.mubr.bf16.gmra.mrb[24].mxu0 %v2674_v9  ;;  %6584 = vmatpush3.bf16.msra.mxu1 %v8214_v17  ;;  %v2680_v17 = vsel %vm1283_vm1, %v2677_v37, %v2679_v40  ;;  %v8460_v9 = vcombine.low %v8328_v49, %v8335_v11  ;;  %v8468_v37 = vcombine.low %v8337_v22, %v8367_v6  ;;  %v7705_v40 = vld [vmem:[#allocation4 + $0xb8] sm:$0xff]   ;;  %v8478_v6 = vld [vmem:[#allocation4 + $0xc0] sm:$0xff]  }
  0xd8   : > { %6539 = vmatprep.mubr.bf16.mxu1 %v8064_v28  ;;  %6819 = vmatprep.mubr.bf16.mxu0 %v2676_v18  ;;  %v7701_v18 = vld [vmem:[#allocation4 + $0xa8] sm:$0xff]  }
  0xd9   : > { %6585 = vmatprep.subr.bf16.mxu1 %v7686_v61  ;;  %v2687_v56 = vrot.slane %v8460_v9, 1 }
  0xdb   : > { %6586 = vmatpush3.bf16.msra.mxu1 %v7686_v61  ;;  %v2685_v61 = vrot.slane %v8455_v39, 1 }
  0xdc   : > { %6587 = vmatprep.subr.bf16.mxu1 %v7691_v19 }
  0xdd   : > { %v2686_v49 = vsel %vm1283_vm1, %v2683_v50, %v2685_v61  ;;  %v2688_v11 = vsel %vm1283_vm1, %v2685_v61, %v2687_v56  ;;  %v7704_v50 = vld [vmem:[#allocation4 + $0x1d0] sm:$0xff]  }
  0xde   : > { %6540 = vmatmul.mubr.bf16.gmra.mrb[4].mxu1 %v8066_v32  ;;  %v7712_v61 = vld [vmem:[#allocation4 + $0x1f0] sm:$0xff]  }
  0xdf   : > { %6820 = vmatmul.mubr.bf16.gmra.mrb[28].mxu0 %v2678_v27  ;;  %6543 = vmatprep.mubr.bf16.mxu1 %v8079_v53  ;;  %v2689_v27 = vrot.slane %v8468_v37, 1 }
  0xe0   : > { %6823 = vmatprep.mubr.bf16.mxu0 %v2680_v17  ;;  %6588 = vmatpush3.bf16.msra.mxu1 %v7691_v19  ;;  %v8472_v19 = vcombine.low %v313_v48, %v314_v25  ;;  %v8481_v48 = vcombine.low %v315_v10, %v315_v10  ;;  %v7702_v10 = vld [vmem:[#allocation4 + $0x1c8] sm:$0xff]  }
  0xe1   : > { %6589 = vmatprep.subr.bf16.mxu1 %v7695_v57  ;;  %v2690_v17 = vsel %vm1283_vm1, %v2687_v56, %v2689_v27  ;;  %v7715_v56 = vld [vmem:[#allocation4 + $0x1f8] sm:$0xff]  }
  0xe2   : > { %v2691_v22 = vrot.slane %v8472_v19, 1 }
  0xe4   : > { %6590 = vmatpush3.bf16.msra.mxu1 %v7695_v57  ;;  %v2692_v25 = vsel %vm1283_vm1, %v2689_v27, %v2691_v22  ;;  %v2693_v57 = vrot.slane %v8481_v48, 1  ;;  %v1285_v27 = vrot.slane %v8055_v16, 1  ;;  %v1291_v16 = vrot.slane %v8079_v53, 1 }
  0xe5   : > { %6591 = vmatprep.subr.bf16.mxu1 %v7699_v7 }
  0xe6   : > { %6544 = vmatmul.mubr.bf16.gmra.mrb[8].mxu1 %v8084_v62  ;;  %v2694_v26 = vsel %vm1283_vm1, %v2691_v22, %v2693_v57 }
  0xe7   : > { %6824 = vmatmul.mubr.bf16.gmra.mrb[32].mxu0 %v2682_v54  ;;  %6547 = vmatprep.mubr.bf16.mxu1 %v8103_v31  ;;  %v7708_v54 = vld [vmem:[#allocation4 + $0x1e0] sm:$0xff]  }
  0xe8   : > { %6827 = vmatprep.mubr.bf16.mxu0 %v2684_v23  ;;  %6592 = vmatpush3.bf16.msra.mxu1 %v7699_v7  ;;  %v7706_v7 = vld [vmem:[#allocation4 + $0x1d8] sm:$0xff]   ;;  %v11420_v23 = vld [vmem:[#allocation41_spill] sm:$0xff] }
  0xe9   : > { %6593 = vmatprep.subr.bf16.mxu1 %v7701_v18 }
  0xec   : > { %6594 = vmatpush3.bf16.msra.mxu1 %v7701_v18  ;;  %v11421_v18 = vld [vmem:[#allocation44_spill] sm:$0xff] }
  0xed   : > { %6595 = vmatprep.subr.bf16.mxu1 %v7703_v12 }
  0xee   : > { %6548 = vmatmul.mubr.bf16.gmra.mrb[12].mxu1 %v8107_v41 }
  0xef   : > { %6828 = vmatmul.mubr.bf16.gmra.mrb[36].mxu0 %v2686_v49  ;;  %6551 = vmatprep.mubr.bf16.mxu1 %v8128_v3  ;;  %v11423_v49 = vld [vmem:[#allocation47_spill] sm:$0xff] }
  0xf0   : > { %6831 = vmatprep.mubr.bf16.mxu0 %v2688_v11  ;;  %6596 = vmatpush3.bf16.msra.mxu1 %v7703_v12  ;;  %v11422_v12 = vld [vmem:[#allocation45_spill] sm:$0xff]  ;;  %v8509_v11 = vld [vmem:[#allocation4 + $0x200] sm:$0xff]  }
  0xf1   : > { %6597 = vmatprep.subr.bf16.mxu1 %v7705_v40 }
  0xf4   : > { %6598 = vmatpush3.bf16.msra.mxu1 %v7705_v40  ;;  %v1284_v40 = vrot.slane %v8413_v20, 1  ;;  %v7709_v20 = vld [vmem:[#allocation4 + $0xc8] sm:$0xff]  }
  0xf5   : > { %6647 = vmatprep.subr.bf16.mxu1 %v8478_v6 }
  0xf6   : > { %6552 = vmatmul.mubr.bf16.gmra.mrb[16].mxu1 %v8133_v13  ;;  %v1286_v22 = vsel %vm1283_vm1, %v1284_v40, %v1285_v27 }
  0xf7   : > { %6832 = vmatmul.mubr.bf16.gmra.mrb[40].mxu0 %v2690_v17  ;;  %6555 = vmatprep.mubr.bf16.mxu1 %v8154_v46  ;;  %v1287_v17 = vrot.slane %v8064_v28, 1  ;;  %v1293_v28 = vrot.slane %v8084_v62, 1 }
  0xf8   : > { %6835 = vmatprep.mubr.bf16.mxu0 %v2692_v25  ;;  %v1289_v25 = vrot.slane %v8066_v32, 1 }
  0xf9   : > { %v1288_v57 = vsel %vm1283_vm1, %v1285_v27, %v1287_v17 }
  0xfe   : > { %6556 = vmatmul.mubr.bf16.gmra.mrb[20].mxu1 %v8159_v59 }
  0xff   : > { %6836 = vmatmul.mubr.bf16.gmra.mrb[44].mxu0 %v2694_v26  ;;  %6559 = vmatprep.mubr.bf16.mxu1 %v8180_v30  ;;  %v1290_v26 = vsel %vm1283_vm1, %v1287_v17, %v1289_v25 }
 0x100   : > { %6855 = vmatprep.mubr.bf16.mxu0 %v8066_v32  ;;  %v8532_v32 = vsel %vm1283_vm1, %v1289_v25, %v1291_v16 }
 0x106   : > { %6560 = vmatmul.mubr.bf16.gmra.mrb[24].mxu1 %v8183_v45 }
 0x107   : > { %6856 = vmatmul.mubr.bf16.vlgmr.msra.gmra.mrb[0].mxu0 %v8079_v53  ;;  %6563 = vmatprep.mubr.bf16.mxu1 %v8212_v15  ;;  %v1295_v53 = vrot.slane %v8103_v31, 1 }
 0x108   : > { %6904 = vmatpush3.bf16.msra.mxu0 %v8378_v24  ;;  %6859 = vmatprep.mubr.bf16.mxu0 %v8084_v62  ;;  %v7710_v24 = vld [vmem:[#allocation4 + $0x1e8] sm:$0xff]   ;;  %v1297_v62 = vrot.slane %v8107_v41, 1 }
 0x109   : > { %6905 = vmatprep.subr.bf16.mxu0 %v7702_v10 }
 0x10c   : > { %6906 = vmatpush3.bf16.msra.mxu0 %v7702_v10  ;;  %v7711_v10 = vld [vmem:[#allocation4 + $0xd0] sm:$0xff]  }
 0x10d   : > { %6907 = vmatprep.subr.bf16.mxu0 %v7704_v50 }
 0x10e   : > { %6564 = vmatmul.mubr.bf16.gmra.mrb[28].mxu1 %v8221_v33 }
 0x10f   : > { %6860 = vmatmul.mubr.bf16.gmra.mrb[4].mxu0 %v8103_v31  ;;  %6567 = vmatprep.mubr.bf16.mxu1 %v8245_v60  ;;  %v1299_v31 = vrot.slane %v8128_v3, 1 }
 0x110   : > { %6863 = vmatprep.mubr.bf16.mxu0 %v8107_v41  ;;  %6908 = vmatpush3.bf16.msra.mxu0 %v7704_v50  ;;  %v8535_v50 = vsel %vm1283_vm1, %v1291_v16, %v1293_v28  ;;  %v1301_v41 = vrot.slane %v8133_v13, 1 }
 0x111   : > { %6909 = vmatprep.subr.bf16.mxu0 %v7706_v7  ;;  %v8556_v40 = vsel %vm1283_vm1, %v1297_v62, %v1299_v31 }
 0x112   : > { %v8559_v27 = vsel %vm1283_vm1, %v1299_v31, %v1301_v41 }
 0x114   : > { %6910 = vmatpush3.bf16.msra.mxu0 %v7706_v7  ;;  %v7714_v7 = vld [vmem:[#allocation4 + $0xd8] sm:$0xff]  }
 0x115   : > { %6911 = vmatprep.subr.bf16.mxu0 %v7708_v54 }
 0x116   : > { %6568 = vmatmul.mubr.bf16.gmra.mrb[32].mxu1 %v11420_v23 }
 0x117   : > { %6864 = vmatmul.mubr.bf16.gmra.mrb[8].mxu0 %v8128_v3  ;;  %6571 = vmatprep.mubr.bf16.mxu1 %v11421_v18  ;;  %v1303_v3 = vrot.slane %v8154_v46, 1 }
 0x118   : > { %6867 = vmatprep.mubr.bf16.mxu0 %v8133_v13  ;;  %6912 = vmatpush3.bf16.msra.mxu0 %v7708_v54  ;;  %v8544_v54 = vsel %vm1283_vm1, %v1293_v28, %v1295_v53  ;;  %v1305_v13 = vrot.slane %v8159_v59, 1  ;;  %v11424_v28 = vld [vmem:[#allocation28_spill] sm:$0xff] }
 0x119   : > { %6913 = vmatprep.subr.bf16.mxu0 %v7710_v24  ;;  %v8568_v17 = vsel %vm1283_vm1, %v1301_v41, %v1303_v3 }
 0x11a   : > { %v8571_v25 = vsel %vm1283_vm1, %v1303_v3, %v1305_v13  ;;  %v7726_v3 = vld [vmem:[#allocation4 + $0x220] sm:$0xff]  }
 0x11c   : > { %6914 = vmatpush3.bf16.msra.mxu0 %v7710_v24  ;;  %v8547_v24 = vsel %vm1283_vm1, %v1295_v53, %v1297_v62  ;;  %v7721_v53 = vld [vmem:[#allocation4 + $0x208] sm:$0xff]  }
 0x11d   : > { %6915 = vmatprep.subr.bf16.mxu0 %v7712_v61  ;;  %v11425_v62 = vld [vmem:[#allocation29_spill] sm:$0xff] }
 0x11e   : > { %6572 = vmatmul.mubr.bf16.gmra.mrb[36].mxu1 %v11422_v12 }
 0x11f   : > { %6868 = vmatmul.mubr.bf16.gmra.mrb[12].mxu0 %v8154_v46  ;;  %6575 = vmatprep.mubr.bf16.mxu1 %v11423_v49  ;;  %v1307_v46 = vrot.slane %v8180_v30, 1 }
 0x120   : > { %6871 = vmatprep.mubr.bf16.mxu0 %v8159_v59  ;;  %6916 = vmatpush3.bf16.msra.mxu0 %v7712_v61  ;;  %v7720_v61 = vld [vmem:[#allocation4 + $0xe8] sm:$0xff]   ;;  %v1309_v59 = vrot.slane %v8183_v45, 1 }
 0x121   : > { %6917 = vmatprep.subr.bf16.mxu0 %v7715_v56 }
 0x122   : > { %v8588_v16 = vsel %vm1283_vm1, %v1307_v46, %v1309_v59 }
 0x124   : > { %6918 = vmatpush3.bf16.msra.mxu0 %v7715_v56  ;;  %v7722_v56 = vld [vmem:[#allocation4 + $0xf0] sm:$0xff]  }
 0x125   : > { %6967 = vmatprep.subr.bf16.mxu0 %v8509_v11 }
 0x126   : > { %6576 = vmatmul.mubr.bf16.gmra.mrb[40].mxu1 %v8319_v36 }
 0x127   : > { %6872 = vmatmul.mubr.bf16.gmra.mrb[16].mxu0 %v8180_v30  ;;  %6579 = vmatprep.mubr.bf16.mxu1 %v8345_v29  ;;  %v1311_v30 = vrot.slane %v8212_v15, 1 }
 0x128   : > { %6875 = vmatprep.mubr.bf16.mxu0 %v8183_v45  ;;  %v1313_v45 = vrot.slane %v8221_v33, 1 }
 0x12e   : > { %6580 = vmatmul.mubr.bf16.gmra.mrb[44].mxu1 %v8355_v44 }
 0x12f   : > { %6876 = vmatmul.mubr.bf16.gmra.mrb[20].mxu0 %v8212_v15  ;;  %6599 = vmatprep.mubr.bf16.mxu1 %v1286_v22  ;;  %v7724_v22 = vld [vmem:[#allocation4 + $0xf8] sm:$0xff]   ;;  %v11426_v15 = vld [vmem:[#allocation32_spill] sm:$0xff] }
 0x130   : > { %6879 = vmatprep.mubr.bf16.mxu0 %v8221_v33  ;;  %v1317_v33 = vrot.slane %v11420_v23, 1 }
 0x136   : > { %6600 = vmatmul.mubr.bf16.vlgmr.msra.gmra.mrb[0].mxu1 %v1288_v57  ;;  %v8573_v57 = vld [vmem:[#allocation4 + $0x100] sm:$0xff]  }
 0x137   : > { %6880 = vmatmul.mubr.bf16.gmra.mrb[24].mxu0 %v8245_v60  ;;  %6648 = vmatpush3.bf16.msra.mxu1 %v8478_v6  ;;  %v7718_v6 = vld [vmem:[#allocation4 + $0xe0] sm:$0xff]  }
 0x138   : > { %6603 = vmatprep.mubr.bf16.mxu1 %v1290_v26  ;;  %6883 = vmatprep.mubr.bf16.mxu0 %v11420_v23  ;;  %v8583_v26 = vsel %vm1283_vm1, %v1305_v13, %v1307_v46  ;;  %v11428_v23 = vld [vmem:[#allocation34_spill] sm:$0xff] }
 0x139   : > { %6649 = vmatprep.subr.bf16.mxu1 %v7709_v20 }
 0x13b   : > { %6650 = vmatpush3.bf16.msra.mxu1 %v7709_v20  ;;  %v8585_v20 = vld [vmem:[#allocation2 + $0xd0] sm:$0xff]  }
 0x13c   : > { %6651 = vmatprep.subr.bf16.mxu1 %v7711_v10 }
 0x13e   : > { %6604 = vmatmul.mubr.bf16.gmra.mrb[4].mxu1 %v8532_v32 }
 0x13f   : > { %6884 = vmatmul.mubr.bf16.gmra.mrb[28].mxu0 %v11421_v18  ;;  %6607 = vmatprep.mubr.bf16.mxu1 %v8535_v50 }
 0x140   : > { %6887 = vmatprep.mubr.bf16.mxu0 %v11422_v12  ;;  %6652 = vmatpush3.bf16.msra.mxu1 %v7711_v10  ;;  %v8597_v10 = vsel %vm1283_vm1, %v1309_v59, %v1311_v30  ;;  %v7727_v59 = vld [vmem:[#allocation4 + $0x228] sm:$0xff]  }
 0x141   : > { %6653 = vmatprep.subr.bf16.mxu1 %v7714_v7 }
 0x144   : > { %6654 = vmatpush3.bf16.msra.mxu1 %v7714_v7  ;;  %v8600_v7 = vsel %vm1283_vm1, %v1311_v30, %v1313_v45  ;;  %v11429_v30 = vld [vmem:[#allocation35_spill] sm:$0xff] }
 0x145   : > { %6655 = vmatprep.subr.bf16.mxu1 %v7718_v6 }
 0x146   : > { %6608 = vmatmul.mubr.bf16.gmra.mrb[8].mxu1 %v8544_v54 }
 0x147   : > { %6888 = vmatmul.mubr.bf16.gmra.mrb[32].mxu0 %v11423_v49  ;;  %6611 = vmatprep.mubr.bf16.mxu1 %v8547_v24 }
 0x148   : > { %6891 = vmatprep.mubr.bf16.mxu0 %v8319_v36  ;;  %6656 = vmatpush3.bf16.msra.mxu1 %v7718_v6  ;;  %v1315_v6 = vrot.slane %v8245_v60, 1  ;;  %v11427_v60 = vld [vmem:[#allocation33_spill] sm:$0xff] }
 0x149   : > { %6657 = vmatprep.subr.bf16.mxu1 %v7720_v61 }
 0x14a   : > { %v8610_v31 = vsel %vm1283_vm1, %v1313_v45, %v1315_v6  ;;  %v8613_v41 = vsel %vm1283_vm1, %v1315_v6, %v1317_v33  ;;  %v7728_v45 = vld [vmem:[#allocation4 + $0x230] sm:$0xff]   ;;  %v7729_v6 = vld [vmem:[#allocation4 + $0x238] sm:$0xff]  }
 0x14c   : > { %6658 = vmatpush3.bf16.msra.mxu1 %v7720_v61  ;;  %v7723_v61 = vld [vmem:[#allocation4 + $0x210] sm:$0xff]  }
 0x14d   : > { %6659 = vmatprep.subr.bf16.mxu1 %v7722_v56 }
 0x14e   : > { %6612 = vmatmul.mubr.bf16.gmra.mrb[12].mxu1 %v8556_v40 }
 0x14f   : > { %6892 = vmatmul.mubr.bf16.gmra.mrb[36].mxu0 %v8345_v29  ;;  %6615 = vmatprep.mubr.bf16.mxu1 %v8559_v27 }
 0x150   : > { %6895 = vmatprep.mubr.bf16.mxu0 %v8355_v44  ;;  %6660 = vmatpush3.bf16.msra.mxu1 %v7722_v56  ;;  %v7725_v56 = vld [vmem:[#allocation4 + $0x218] sm:$0xff]  }
 0x151   : > { %6661 = vmatprep.subr.bf16.mxu1 %v7724_v22 }
 0x154   : > { %6662 = vmatpush3.bf16.msra.mxu1 %v7724_v22  ;;  %v1321_v22 = vrot.slane %v11422_v12, 1  ;;  %v11430_v12 = vld [vmem:[#allocation36_spill] sm:$0xff] }
 0x155   : > { %7031 = vmatprep.subr.bf16.mxu1 %v8573_v57 }
 0x156   : > { %6616 = vmatmul.mubr.bf16.gmra.mrb[16].mxu1 %v8568_v17 }
 0x157   : > { %6896 = vmatmul.mubr.bf16.gmra.mrb[40].mxu0 %v8429_v58  ;;  %6619 = vmatprep.mubr.bf16.mxu1 %v8571_v25 }
 0x158   : > { %6899 = vmatprep.mubr.bf16.mxu0 %v8433_v4 }
 0x15e   : > { %6620 = vmatmul.mubr.bf16.gmra.mrb[20].mxu1 %v8583_v26 }
 0x15f   : > { %6900 = vmatmul.mubr.bf16.gmra.mrb[44].mxu0 %v8585_v20  ;;  %6623 = vmatprep.mubr.bf16.mxu1 %v8588_v16 }
 0x160   : > { %6919 = vmatprep.mubr.bf16.mxu0 %v11424_v28  ;;  %v1325_v28 = vrot.slane %v8319_v36, 1  ;;  %v1327_v36 = vrot.slane %v8345_v29, 1  ;;  %v1331_v29 = vrot.slane %v8374_v34, 1  ;;  %v7733_v34 = vld [vmem:[#allocation4 + $0x108] sm:$0xff]  }
 0x166   : > { %6624 = vmatmul.mubr.bf16.gmra.mrb[24].mxu1 %v8597_v10 }
 0x167   : > { %6920 = vmatmul.mubr.bf16.vlgmr.msra.gmra.mrb[0].mxu0 %v11425_v62  ;;  %6627 = vmatprep.mubr.bf16.mxu1 %v8600_v7 }
 0x168   : > { %6968 = vmatpush3.bf16.msra.mxu0 %v8509_v11  ;;  %6923 = vmatprep.mubr.bf16.mxu0 %v11426_v15  ;;  %v1319_v11 = vrot.slane %v11421_v18, 1  ;;  %v1323_v18 = vrot.slane %v11423_v49, 1  ;;  %v11431_v15 = vld [vmem:[#allocation37_spill] sm:$0xff]  ;;  %v11432_v49 = vld [vmem:[#allocation39_spill] sm:$0xff] }
 0x169   : > { %6969 = vmatprep.subr.bf16.mxu0 %v7721_v53 }
 0x16a   : > { %v8622_v13 = vsel %vm1283_vm1, %v1317_v33, %v1319_v11  ;;  %v8625_v46 = vsel %vm1283_vm1, %v1319_v11, %v1321_v22  ;;  %v8637_v62 = vsel %vm1283_vm1, %v1323_v18, %v1325_v28  ;;  %v8645_v33 = vrot.slane %v8355_v44, 1  ;;  %v11434_v44 = vld [vmem:[#allocation42_spill] sm:$0xff] }
 0x16c   : > { %6970 = vmatpush3.bf16.msra.mxu0 %v7721_v53  ;;  %v8634_v53 = vsel %vm1283_vm1, %v1321_v22, %v1323_v18  ;;  %v1332_v11 = vsel %vm1283_vm1, %v8645_v33, %v1331_v29  ;;  %v11436_v22 = vld [vmem:[#allocation20_spill] sm:$0xff]  ;;  %v11440_v18 = vld [vmem:[#allocation22_spill] sm:$0xff] }
 0x16d   : > { %6971 = vmatprep.subr.bf16.mxu0 %v7723_v61  ;;  %v7737_v29 = vld [vmem:[#allocation4 + $0x128] sm:$0xff]  }
 0x16e   : > { %6628 = vmatmul.mubr.bf16.gmra.mrb[28].mxu1 %v8610_v31 }
 0x16f   : > { %6924 = vmatmul.mubr.bf16.gmra.mrb[4].mxu0 %v11427_v60  ;;  %6631 = vmatprep.mubr.bf16.mxu1 %v8613_v41  ;;  %v11433_v60 = vld [vmem:[#allocation40_spill] sm:$0xff] }
 0x170   : > { %6927 = vmatprep.mubr.bf16.mxu0 %v11428_v23  ;;  %6972 = vmatpush3.bf16.msra.mxu0 %v7723_v61  ;;  %v8648_v61 = vsel %vm1283_vm1, %v1325_v28, %v1327_v36  ;;  %v11435_v23 = vld [vmem:[#allocation43_spill] sm:$0xff] }
 0x171   : > { %6973 = vmatprep.subr.bf16.mxu0 %v7725_v56  ;;  %v11441_v28 = vld [vmem:[#allocation23_spill] sm:$0xff] }
 0x174   : > { %6974 = vmatpush3.bf16.msra.mxu0 %v7725_v56  ;;  %v8652_v56 = vsel %vm1283_vm1, %v1327_v36, %v8645_v33  ;;  %v11444_v36 = vld [vmem:[#allocation25_spill] sm:$0xff] }
 0x175   : > { %6975 = vmatprep.subr.bf16.mxu0 %v7726_v3 }
 0x176   : > { %6632 = vmatmul.mubr.bf16.gmra.mrb[32].mxu1 %v8622_v13 }
 0x177   : > { %6928 = vmatmul.mubr.bf16.gmra.mrb[8].mxu0 %v11429_v30  ;;  %6635 = vmatprep.mubr.bf16.mxu1 %v8625_v46  ;;  %v11439_v30 = vld [vmem:[#allocation48_spill] sm:$0xff] }
 0x178   : > { %6931 = vmatprep.mubr.bf16.mxu0 %v11430_v12  ;;  %6976 = vmatpush3.bf16.msra.mxu0 %v7726_v3  ;;  %v11437_v3 = vld [vmem:[#allocation46_spill] sm:$0xff] }
 0x179   : > { %6977 = vmatprep.subr.bf16.mxu0 %v7727_v59  ;;  %v7734_v12 = vld [vmem:[#allocation4 + $0x110] sm:$0xff]  }
 0x17c   : > { %6978 = vmatpush3.bf16.msra.mxu0 %v7727_v59  ;;  %v11438_v59 = vld [vmem:[#allocation21_spill] sm:$0xff] }
 0x17d   : > { %6979 = vmatprep.subr.bf16.mxu0 %v7728_v45 }
 0x17e   : > { %6636 = vmatmul.mubr.bf16.gmra.mrb[36].mxu1 %v8634_v53 }
 0x17f   : > { %6932 = vmatmul.mubr.bf16.gmra.mrb[12].mxu0 %v11431_v15  ;;  %6639 = vmatprep.mubr.bf16.mxu1 %v8637_v62  ;;  %v7735_v15 = vld [vmem:[#allocation4 + $0x118] sm:$0xff]  }
 0x180   : > { %6935 = vmatprep.mubr.bf16.mxu0 %v11432_v49  ;;  %6980 = vmatpush3.bf16.msra.mxu0 %v7728_v45  ;;  %v11442_v45 = vld [vmem:[#allocation49_spill] sm:$0xff]  ;;  %v11445_v49 = vld [vmem:[#allocation26_spill] sm:$0xff] }
 0x181   : > { %6981 = vmatprep.subr.bf16.mxu0 %v7729_v6 }
 0x184   : > { %6982 = vmatpush3.bf16.msra.mxu0 %v7729_v6  ;;  %v11443_v6 = vld [vmem:[#allocation24_spill] sm:$0xff] }
 0x186   : > { %6640 = vmatmul.mubr.bf16.gmra.mrb[40].mxu1 %v8648_v61 }
 0x187   : > { %6936 = vmatmul.mubr.bf16.gmra.mrb[16].mxu0 %v11433_v60  ;;  %6643 = vmatprep.mubr.bf16.mxu1 %v8652_v56 }
 0x188   : > { %6939 = vmatprep.mubr.bf16.mxu0 %v11434_v44  ;;  %v3413_v44 = vshrl.u32 %v8429_v58, 16 }
 0x18e   : > { %6644 = vmatmul.mubr.bf16.gmra.mrb[44].mxu1 %v1332_v11 }
 0x18f   : > { %6940 = vmatmul.mubr.bf16.gmra.mrb[20].mxu0 %v11435_v23  ;;  %6663 = vmatprep.mubr.bf16.mxu1 %v11436_v22  ;;  %v3421_v23 = vshrl.u32 %v8433_v4, 16  ;;  %v7738_v22 = vld [vmem:[#allocation4 + $0x130] sm:$0xff]  }
 0x190   : > { %6943 = vmatprep.mubr.bf16.mxu0 %v11437_v3  ;;  %v11446_v3 = vld [vmem:[#allocation27_spill] sm:$0xff] }
 0x196   : > { %6664 = vmatmul.mubr.bf16.vlgmr.msra.gmra.mrb[0].mxu1 %v11438_v59 }
 0x197   : > { %6944 = vmatmul.mubr.bf16.gmra.mrb[24].mxu0 %v11439_v30  ;;  %7039 = vmatpush3.bf16.msra.mxu1 %v8573_v57  ;;  %v3409_v57 = vshll.u32 %v8429_v58, 16 }
 0x198   : > { %6667 = vmatprep.mubr.bf16.mxu1 %v11440_v18  ;;  %6947 = vmatprep.mubr.bf16.mxu0 %v8333_v14  ;;  %v7736_v14 = vld [vmem:[#allocation4 + $0x120] sm:$0xff]   ;;  %v8687_v18 = vld [vmem:[#allocation2 + $0xd8] ss:$0 sps:$4 sm:$0xff]  }
 0x199   : > { %7032 = vmatprep.subr.bf16.mxu1 %v7733_v34  ;;  %v3411_v60 = vrot.slane %v3409_v57, 1 }
 0x19b   : > { %7040 = vmatpush3.bf16.msra.mxu1 %v7733_v34  ;;  %v3412_v11 = vsel %vm475_vm0, %v8397_v51, %v3411_v60  ;;  %v3415_v30 = vor.u32 %v3413_v44, %v3411_v60  ;;  %v2212_v60 = vshrl.u32 %v8411_v8, 16 }
 0x19c   : > { %7033 = vmatprep.subr.bf16.mxu1 %v7734_v12 }
 0x19e   : > { %6668 = vmatmul.mubr.bf16.gmra.mrb[4].mxu1 %v11441_v28 }
 0x19f   : > { %6948 = vmatmul.mubr.bf16.gmra.mrb[28].mxu0 %v11442_v45  ;;  %6671 = vmatprep.mubr.bf16.mxu1 %v11443_v6  ;;  %v3429_v45 = vshrl.u32 %v8585_v20, 16  ;;  %v3433_v6 = vshll.u32 %v8687_v18, 16 }
 0x1a0   : > { %6951 = vmatprep.mubr.bf16.mxu0 %v8358_v63  ;;  %7041 = vmatpush3.bf16.msra.mxu1 %v7734_v12  ;;  %v3417_v63 = vshll.u32 %v8433_v4, 16  ;;  %v7739_v12 = vld [vmem:[#allocation4 + $0x138] sm:$0xff]  }
 0x1a1   : > { %7034 = vmatprep.subr.bf16.mxu1 %v7735_v15 }
 0x1a2   : > { %v3419_v59 = vrot.slane %v3417_v63, 1  ;;  %v2224_v63 = vshll.u32 %v8426_v42, 16 }
 0x1a4   : > { %7042 = vmatpush3.bf16.msra.mxu1 %v7735_v15  ;;  %v3423_v34 = vor.u32 %v3421_v23, %v3419_v59  ;;  %v3420_v28 = vsel %vm475_vm0, %v3415_v30, %v3419_v59  ;;  %v11448_v15 = vld [vmem:[#allocation31_spill] sm:$0xff]  ;;  %v2232_v23 = vshll.u32 %v8441_v43, 16  ;;  %v2248_v30 = vshll.u32 %v8455_v39, 16 }
 0x1a5   : > { %7035 = vmatprep.subr.bf16.mxu1 %v7736_v14 }
 0x1a6   : > { %6672 = vmatmul.mubr.bf16.gmra.mrb[8].mxu1 %v11444_v36 }
 0x1a7   : > { %6952 = vmatmul.mubr.bf16.gmra.mrb[32].mxu0 %v8363_v55  ;;  %6675 = vmatprep.mubr.bf16.mxu1 %v11445_v49  ;;  %v3425_v55 = vshll.u32 %v8585_v20, 16  ;;  %v2216_v49 = vshll.u32 %v8421_v35, 16 }
 0x1a8   : > { %6955 = vmatprep.mubr.bf16.mxu0 %v8381_v38  ;;  %7043 = vmatpush3.bf16.msra.mxu1 %v7736_v14  ;;  %v11447_v38 = vld [vmem:[#allocation30_spill] sm:$0xff]  ;;  %v3435_v14 = vrot.slane %v3433_v6, 1  ;;  %v3779_v6 = vrot.slane %v8429_v58, 1 }
 0x1a9   : > { %7036 = vmatprep.subr.bf16.mxu1 %v7737_v29  ;;  %v3427_v51 = vrot.slane %v3425_v55, 1  ;;  %v2228_v55 = vshrl.u32 %v8426_v42, 16 }
 0x1ab   : > { %v3431_v57 = vor.u32 %v3429_v45, %v3427_v51 }
 0x1ac   : > { %7044 = vmatpush3.bf16.msra.mxu1 %v7737_v29  ;;  %v2220_v29 = vshrl.u32 %v8421_v35, 16 }
 0x1ad   : > { %7037 = vmatprep.subr.bf16.mxu1 %v7738_v22  ;;  %v3436_v36 = vsel %vm475_vm0, %v3431_v57, %v3435_v14  ;;  %v2268_v57 = vshrl.u32 %v8468_v37, 16  ;;  %v3780_v14 = vsel %vm1283_vm1, %v8645_v33, %v3779_v6 }
 0x1ae   : > { %6676 = vmatmul.mubr.bf16.gmra.mrb[12].mxu1 %v11446_v3  ;;  %v2240_v3 = vshll.u32 %v8446_v0, 16 }
 0x1af   : > { %6956 = vmatmul.mubr.bf16.gmra.mrb[36].mxu0 %v8387_v1  ;;  %6679 = vmatprep.mubr.bf16.mxu1 %v11447_v38  ;;  %v3428_v1 = vsel %vm475_vm0, %v3423_v34, %v3427_v51  ;;  %v2244_v34 = vshrl.u32 %v8446_v0, 16  ;;  %v2252_v51 = vshrl.u32 %v8455_v39, 16 }
 0x1b0   : > { %6959 = vmatprep.mubr.bf16.mxu0 %v3412_v11  ;;  %7045 = vmatpush3.bf16.msra.mxu1 %v7738_v22  ;;  %v2226_v11 = vrot.slane %v2224_v63, 1  ;;  %v2236_v22 = vshrl.u32 %v8441_v43, 16  ;;  %v2242_v59 = vrot.slane %v2240_v3, 1 }
 0x1b1   : > { %7038 = vmatprep.subr.bf16.mxu1 %v7739_v12 }
 0x1b4   : > { %7046 = vmatpush3.bf16.msra.mxu1 %v7739_v12  ;;  %v2256_v12 = vshll.u32 %v8460_v9, 16 }
 0x1b6   : > { %6680 = vmatmul.mubr.bf16.gmra.mrb[16].mxu1 %v11448_v15  ;;  %v2258_v45 = vrot.slane %v2256_v12, 1 }
 0x1b7   : > { %6960 = vmatmul.mubr.bf16.gmra.mrb[40].mxu0 %v3420_v28  ;;  %6683 = vmatprep.mubr.bf16.mxu1 %v8157_v52  ;;  %v2188_v52 = vshrl.u32 %v8185_v47, 16 }
 0x1b8   : > { %6963 = vmatprep.mubr.bf16.mxu0 %v3428_v1 }
 0x1be   : > { %6684 = vmatmul.mubr.bf16.gmra.mrb[20].mxu1 %v8161_v2  ;;  %v2192_v2 = vshll.u32 %v8392_v21, 16 }
 0x1bf   : > { %6964 = vmatmul.mubr.bf16.gmra.mrb[44].mxu0 %v3436_v36  ;;  %6687 = vmatprep.mubr.bf16.mxu1 %v8185_v47  ;;  %v2204_v47 = vshrl.u32 %v8406_v5, 16  ;;  %v3781_v36 = vrot.slane %v8433_v4, 1 }
 0x1c0   : > { %6983 = vmatprep.mubr.bf16.mxu0 %v8532_v32  ;;  %v11449_v32 = vld [vmem:[#allocation38_spill] sm:$0xff] }
 0x1c1   : > { %v3782_v33 = vsel %vm1283_vm1, %v3779_v6, %v3781_v36 }
 0x1c6   : > { %6688 = vmatmul.mubr.bf16.gmra.mrb[24].mxu1 %v8392_v21 }
 0x1c7   : > { %6984 = vmatmul.mubr.bf16.vlgmr.msra.gmra.mrb[0].mxu0 %v8535_v50  ;;  %6691 = vmatprep.mubr.bf16.mxu1 %v8406_v5  ;;  %v2190_v50 = vor.u32 %v2188_v52, %v11449_v32  ;;  %v2276_v32 = vshrl.u32 %v8472_v19, 16 }
 0x1c8   : > { %6987 = vmatprep.mubr.bf16.mxu0 %v8544_v54  ;;  %v2194_v54 = vrot.slane %v2192_v2, 1  ;;  %v3783_v2 = vrot.slane %v8585_v20, 1  ;;  %v3785_v20 = vrot.slane %v8687_v18, 1 }
 0x1ce   : > { %6692 = vmatmul.mubr.bf16.gmra.mrb[28].mxu1 %v8411_v8 }
 0x1cf   : > { %6988 = vmatmul.mubr.bf16.gmra.mrb[4].mxu0 %v8547_v24  ;;  %6695 = vmatprep.mubr.bf16.mxu1 %v8421_v35  ;;  %v2200_v24 = vshll.u32 %v8406_v5, 16 }
 0x1d0   : > { %6991 = vmatprep.mubr.bf16.mxu0 %v8556_v40  ;;  %v2196_v40 = vshrl.u32 %v8392_v21, 16 }
 0x1d6   : > { %6696 = vmatmul.mubr.bf16.gmra.mrb[32].mxu1 %v8426_v42 }
 0x1d7   : > { %6992 = vmatmul.mubr.bf16.gmra.mrb[8].mxu0 %v8559_v27  ;;  %6699 = vmatprep.mubr.bf16.mxu1 %v8441_v43  ;;  %v2195_v27 = vsel %vm475_vm0, %v2190_v50, %v2194_v54  ;;  %v2280_v50 = vshll.u32 %v8481_v48, 16  ;;  %v4352_v48 = vlaneseq }
 0x1d8   : > { %6995 = vmatprep.mubr.bf16.mxu0 %v8568_v17  ;;  %v2208_v17 = vshll.u32 %v8411_v8, 16 }
 0x1de   : > { %6700 = vmatmul.mubr.bf16.gmra.mrb[36].mxu1 %v8446_v0  ;;  %v2264_v0 = vshll.u32 %v8468_v37, 16 }
 0x1df   : > { %6996 = vmatmul.mubr.bf16.gmra.mrb[12].mxu0 %v8571_v25  ;;  %6703 = vmatprep.mubr.bf16.mxu1 %v8455_v39  ;;  %v2202_v25 = vrot.slane %v2200_v24, 1  ;;  %v2260_v39 = vshrl.u32 %v8460_v9, 16  ;;  %v2282_v24 = vrot.slane %v2280_v50, 1 }
 0x1e0   : > { %6999 = vmatprep.mubr.bf16.mxu0 %v8583_v26  ;;  %v2198_v26 = vor.u32 %v2196_v40, %v2194_v54 }
 0x1e1   : > { %v2262_v58 = vor.u32 %v2260_v39, %v2258_v45 }
 0x1e2   : > { %v2203_v21 = vsel %vm475_vm0, %v2198_v26, %v2202_v25 }
 0x1e6   : > { %6704 = vmatmul.mubr.bf16.gmra.mrb[40].mxu1 %v8460_v9 }
 0x1e7   : > { %7000 = vmatmul.mubr.bf16.gmra.mrb[16].mxu0 %v8588_v16  ;;  %6707 = vmatprep.mubr.bf16.mxu1 %v8468_v37  ;;  %v2206_v16 = vor.u32 %v2204_v47, %v2202_v25 }
 0x1e8   : > { %7003 = vmatprep.mubr.bf16.mxu0 %v8597_v10  ;;  %v2210_v10 = vrot.slane %v2208_v17, 1 }
 0x1ea   : > { %v2211_v5 = vsel %vm475_vm0, %v2206_v16, %v2210_v10 }
 0x1ee   : > { %6708 = vmatmul.mubr.bf16.gmra.mrb[44].mxu1 %v8472_v19 }
 0x1ef   : > { %7004 = vmatmul.mubr.bf16.gmra.mrb[20].mxu0 %v8600_v7  ;;  %6751 = vmatprep.mubr.bf16.mxu1 %v2195_v27  ;;  %v2218_v7 = vrot.slane %v2216_v49, 1  ;;  %v8775_v27 = vshrl.u32 %v4352_v48, 7 }
 0x1f0   : > { %7007 = vmatprep.mubr.bf16.mxu0 %v8610_v31  ;;  %v2214_v31 = vor.u32 %v2212_v60, %v2210_v10 }
 0x1f1   : > { %v2222_v44 = vor.u32 %v2220_v29, %v2218_v7  ;;  %v4355_v47 = vadd.s32 16, %v8775_v27  ;;  %v4356_v26 = vadd.s32 24, %v8775_v27  ;;  %v4354_v18 = vadd.s32 8, %v8775_v27 }
 0x1f2   : > { %v2219_v8 = vsel %vm475_vm0, %v2214_v31, %v2218_v7  ;;  %v8783_v16 = vmul.u32.u64.low 2863311531, %v8775_v27  ;;  %v8784_v10 = vmul.u32.u64.high 2863311531, %v8775_v27, %v8783_v16  ;;  %v4359_v60 = vadd.s32 48, %v8775_v27 }
 0x1f3   : > { %v2227_v35 = vsel %vm475_vm0, %v2222_v44, %v2226_v11  ;;  %v8778_v17 = vmul.u32.u64.low 2863311531, %v4355_v47  ;;  %v8779_v25 = vmul.u32.u64.high 2863311531, %v4355_v47, %v8778_v17  ;;  %v4357_v63 = vadd.s32 32, %v8775_v27 }
 0x1f4   : > { %v4360_v31 = vadd.s32 56, %v8775_v27  ;;  %v8892_v16 = vadd.s32 120, %v8775_v27 }
 0x1f5   : > { %v4429_v7 = vshrl.u32 %v8779_v25, 4  ;;  %v8885_v25 = vadd.s32 96, %v8775_v27 }
 0x1f6   : > { %6752 = vmatmul.mubr.bf16.vlgmr.msra.gmra.mrb[24].mxu1 %v2203_v21  ;;  %v8787_v49 = vmul.u32.u64.low 2863311531, %v4356_v26  ;;  %v8788_v21 = vmul.u32.u64.high 2863311531, %v4356_v26, %v8787_v49 }
 0x1f7   : > { %7008 = vmatmul.mubr.bf16.gmra.mrb[24].mxu0 %v8613_v41  ;;  %6755 = vmatprep.mubr.bf16.mxu1 %v2211_v5  ;;  %v2234_v41 = vrot.slane %v2232_v23, 1  ;;  %v8791_v5 = vmul.u32.u64.low 2863311531, %v4354_v18  ;;  %v8792_v29 = vmul.u32.u64.high 2863311531, %v4354_v18, %v8791_v5  ;;  %v8801_v23 = vadd.s32 40, %v8775_v27 }
 0x1f8   : > { %7011 = vmatprep.mubr.bf16.mxu0 %v8622_v13  ;;  %v2230_v13 = vor.u32 %v2228_v55, %v2226_v11  ;;  %v8797_v44 = vmul.u32.u64.low 2863311531, %v4359_v60  ;;  %v8798_v11 = vmul.u32.u64.high 2863311531, %v4359_v60, %v8797_v44  ;;  %v4407_v55 = vshrl.u32 %v8784_v10, 4 }
 0x1f9   : > { %v2238_v38 = vor.u32 %v2236_v22, %v2234_v41  ;;  %v4430_v3 = vmul.u32 24, %v4429_v7  ;;  %v11575_v7 = vmov 0 }
 0x1fa   : > { %v2235_v42 = vsel %vm475_vm0, %v2230_v13, %v2234_v41  ;;  %v4440_v41 = vshrl.u32 %v8788_v21, 4 }
 0x1fb   : > { %v2243_v43 = vsel %vm475_vm0, %v2238_v38, %v2242_v59  ;;  %v8811_v13 = vmul.u32.u64.low 2863311531, %v4360_v31  ;;  %v8812_v38 = vmul.u32.u64.high 2863311531, %v4360_v31, %v8811_v13  ;;  %v8823_v12 = vsub.s32 %v4355_v47, %v4430_v3 }
 0x1fd   : > { %vm4931_vm2 = vcmp.ne.s32.totalorder %v8823_v12, 0  ;;  %vm4979_vm3 = vcmp.lt.s32.totalorder %v8823_v12, 0 }
 0x1fe   : > { %6756 = vmatmul.mubr.bf16.gmra.mrb[28].mxu1 %v2219_v8  ;;  %v8804_v8 = vadd.s32 80, %v8775_v27  ;;  %vm8904_vm12 = vmand %vm4979_vm3, %vm4931_vm2 }
 0x1ff   : > { %7012 = vmatmul.mubr.bf16.gmra.mrb[28].mxu0 %v8625_v46  ;;  %6759 = vmatprep.mubr.bf16.mxu1 %v2227_v35  ;;  %v2250_v46 = vrot.slane %v2248_v30, 1  ;;  %v8807_v35 = vmul.u32.u64.low 2863311531, %v4357_v63  ;;  %v8808_v22 = vmul.u32.u64.high 2863311531, %v4357_v63, %v8807_v35 }
 0x200   : > { %7015 = vmatprep.mubr.bf16.mxu0 %v8634_v53  ;;  %v2246_v53 = vor.u32 %v2244_v34, %v2242_v59  ;;  %v8815_v59 = vmul.u32.u64.low 2863311531, %v8801_v23  ;;  %v8816_v30 = vmul.u32.u64.high 2863311531, %v8801_v23, %v8815_v59 }
 0x201   : > { %v2254_v28 = vor.u32 %v2252_v51, %v2250_v46  ;;  %v4418_v51 = vshrl.u32 %v8792_v29, 4 }
 0x202   : > { %v2251_v1 = vsel %vm475_vm0, %v2246_v53, %v2250_v46  ;;  %v4441_v46 = vmul.u32 24, %v4440_v41  ;;  %v4473_v53 = vshrl.u32 %v8798_v11, 4  ;;  %v8934_v11 = vadd.s32 104, %v8775_v27 }
 0x203   : > { %v2259_v15 = vsel %vm475_vm0, %v2254_v28, %v2258_v45  ;;  %v8827_v28 = vadd.s32 64, %v8775_v27  ;;  %v8830_v45 = vadd.s32 88, %v8775_v27 }
 0x204   : > { %v8838_v39 = vsub.s32 %v4356_v26, %v4441_v46 }
 0x206   : > { %6760 = vmatmul.mubr.bf16.gmra.mrb[32].mxu1 %v2235_v42  ;;  %v8819_v42 = vmul.u32.u64.low 2863311531, %v8804_v8  ;;  %v8820_v34 = vmul.u32.u64.high 2863311531, %v8804_v8, %v8819_v42  ;;  %vm4932_vm6 = vcmp.ne.s32.totalorder %v8838_v39, 0  ;;  %vm4980_vm7 = vcmp.lt.s32.totalorder %v8838_v39, 0 }
 0x207   : > { %7016 = vmatmul.mubr.bf16.gmra.mrb[32].mxu0 %v8637_v62  ;;  %6763 = vmatprep.mubr.bf16.mxu1 %v2243_v43  ;;  %v2272_v62 = vshll.u32 %v8472_v19, 16  ;;  %v3786_v19 = vsel %vm1283_vm1, %v3783_v2, %v3785_v20  ;;  %v4408_v43 = vmul.u32 24, %v4407_v55  ;;  %v8876_v20 = vadd.s32 24, %v8838_v39  ;;  %vm8942_vm15 = vmand %vm4980_vm7, %vm4932_vm6 }
 0x208   : > { %7019 = vmatprep.mubr.bf16.mxu0 %v8648_v61  ;;  %v2266_v61 = vrot.slane %v2264_v0, 1  ;;  %v4419_v0 = vmul.u32 24, %v4418_v51  ;;  %v8949_v55 = vmul.u32.u64.low 2863311531, %v8892_v16  ;;  %v8950_v35 = vmul.u32.u64.high 2863311531, %v8892_v16, %v8949_v55 }
 0x209   : > { %v2274_v9 = vrot.slane %v2272_v62, 1  ;;  %v8833_v6 = vsub.s32 %v8775_v27, %v4408_v43  ;;  %v8991_v51 = vmul.u32.u64.low 2863311531, %v8934_v11  ;;  %v8992_v46 = vmul.u32.u64.high 2863311531, %v8934_v11, %v8991_v51 }
 0x20a   : > { %v2270_v52 = vor.u32 %v2268_v57, %v2266_v61  ;;  %v2267_v37 = vsel %vm475_vm0, %v2262_v58, %v2266_v61  ;;  %v4474_v57 = vmul.u32 24, %v4473_v53  ;;  %v8846_v61 = vadd.s32 72, %v8775_v27 }
 0x20b   : > { %v2278_v4 = vor.u32 %v2276_v32, %v2274_v9  ;;  %v4462_v58 = vshrl.u32 %v8816_v30, 4  ;;  %vm4929_vm4 = vcmp.ne.s32.totalorder %v8833_v6, 0  ;;  %v8859_v32 = vadd.s32 112, %v8775_v27 }
 0x20c   : > { %v2275_v54 = vsel %vm475_vm0, %v2270_v52, %v2274_v9  ;;  %v8851_v52 = vmul.u32.u64.low 2863311531, %v8830_v45  ;;  %v8852_v9 = vmul.u32.u64.high 2863311531, %v8830_v45, %v8851_v52  ;;  %vm4977_vm5 = vcmp.lt.s32.totalorder %v8833_v6, 0 }
 0x20d   : > { %v2283_v40 = vsel %vm475_vm0, %v2278_v4, %v2282_v24  ;;  %v8863_v50 = vadd.s32 24, %v8833_v6  ;;  %v8871_v4 = vmul.u32.u64.low 2863311531, %v8846_v61  ;;  %v8872_v24 = vmul.u32.u64.high 2863311531, %v8846_v61, %v8871_v4  ;;  %vm8924_vm13 = vmand %vm4977_vm5, %vm4929_vm4 }
 0x20e   : > { %6764 = vmatmul.mubr.bf16.gmra.mrb[36].mxu1 %v2251_v1  ;;  %v4451_v1 = vshrl.u32 %v8808_v22, 4  ;;  %v8881_v47 = vmul.u32.u64.low 2863311531, %v8859_v32  ;;  %v8882_v17 = vmul.u32.u64.high 2863311531, %v8859_v32, %v8881_v47  ;;  %v4528_v29 = vshrl.u32 %v8852_v9, 4 }
 0x20f   : > { %7020 = vmatmul.mubr.bf16.gmra.mrb[36].mxu0 %v8652_v56  ;;  %6767 = vmatprep.mubr.bf16.mxu1 %v2259_v15  ;;  %v3784_v56 = vsel %vm1283_vm1, %v3781_v36, %v3783_v2  ;;  %v4484_v15 = vshrl.u32 %v8812_v38, 4  ;;  %v4517_v36 = vshrl.u32 %v8820_v34, 4  ;;  %v8855_v2 = vadd.s32 24, %v8823_v12 }
 0x210   : > { %7023 = vmatprep.mubr.bf16.mxu0 %v3780_v14  ;;  %v8842_v62 = vmul.u32.u64.low 2863311531, %v8827_v28  ;;  %v8843_v14 = vmul.u32.u64.high 2863311531, %v8827_v28, %v8842_v62  ;;  %v4506_v13 = vshrl.u32 %v8872_v24, 4  ;;  %v8965_v38 = vadd.s32 144, %v8775_v27 }
 0x211   : > { %v11464_v30 = vmov 0  ;;  %v4529_v42 = vmul.u32 24, %v4528_v29  ;;  %v4561_v43 = vshrl.u32 %v8882_v17, 4  ;;  %v11475_v62 = vmov 0 }
 0x212   : > { %v9073_v55 = vadd.s32 128, %v8775_v27  ;;  %v9097_v51 = vadd.s32 152, %v8775_v27 }
 0x213   : > { %v9048_v4 = vsub.s32 %v8830_v45, %v4529_v42  ;;  %v4562_v47 = vmul.u32 24, %v4561_v43 }
 0x215   : > { %11480 = vst [vmem:[#allocation39_spill] sm:$0xff] %v9048_v4  ;;  %v9112_v45 = vadd.s32 24, %v9048_v4 }
 0x216   : > { %6768 = vmatmul.mubr.bf16.gmra.mrb[40].mxu1 %v2267_v37  ;;  %v4452_v37 = vmul.u32 24, %v4451_v1 }
 0x217   : > { %7024 = vmatmul.mubr.bf16.gmra.mrb[40].mxu0 %v3782_v33  ;;  %6771 = vmatprep.mubr.bf16.mxu1 %v2275_v54  ;;  %v8865_v33 = vsub.s32 %v4354_v18, %v4419_v0  ;;  %v4485_v54 = vmul.u32 24, %v4484_v15  ;;  %v4495_v18 = vshrl.u32 %v8843_v14, 4  ;;  %v11469_v0 = vmov 0  ;;  %11486 = vst [vmem:[#allocation21_spill] sm:$0xff] %v9112_v45 }
 0x218   : > { %7027 = vmatprep.mubr.bf16.mxu0 %v3784_v56  ;;  %v8868_v56 = vsub.s32 %v4359_v60, %v4474_v57  ;;  %v8878_v48 = vsub.s32 %v4357_v63, %v4452_v37  ;;  %v9301_v45 = vadd.s32 216, %v8775_v27 }
 0x219   : > { %vm4930_vm8 = vcmp.ne.s32.totalorder %v8865_v33, 0  ;;  %vm4978_vm9 = vcmp.lt.s32.totalorder %v8865_v33, 0  ;;  %v8889_v26 = vsub.s32 %v4360_v31, %v4485_v54  ;;  %v8895_v10 = vadd.s32 24, %v8865_v33 }
 0x21a   : > { %11450 = vst [vmem:[#allocation41_spill] sm:$0xff] %v8868_v56  ;;  %vm4935_vm10 = vcmp.ne.s32.totalorder %v8868_v56, 0  ;;  %vm4983_vm11 = vcmp.lt.s32.totalorder %v8868_v56, 0  ;;  %v8909_v21 = vadd.s32 24, %v8868_v56  ;;  %vm4933_vm14 = vcmp.ne.s32.totalorder %v8878_v48, 0  ;;  %vm8958_vm2 = vmand %vm4978_vm9, %vm4930_vm8 }
 0x21b   : > { %11451 = vst [vmem:[#allocation44_spill] sm:$0xff] %v8889_v26  ;;  %v8930_v31 = vmul.u32.u64.low 2863311531, %v8885_v25  ;;  %v8931_v44 = vmul.u32.u64.high 2863311531, %v8885_v25, %v8930_v31  ;;  %vm4981_vm0 = vcmp.lt.s32.totalorder %v8878_v48, 0  ;;  %vm4936_vm1 = vcmp.ne.s32.totalorder %v8889_v26, 0  ;;  %vm8973_vm4 = vmand %vm4983_vm11, %vm4935_vm10 }
 0x21c   : > { %11454 = vst [vmem:[#allocation45_spill] sm:$0xff] %v8909_v21  ;;  %vm4984_vm3 = vcmp.lt.s32.totalorder %v8889_v26, 0  ;;  %v4496_v41 = vmul.u32 24, %v4495_v18  ;;  %v11465_v30 = vsel %vm8973_vm4, 4294967295, %v11464_v30  ;;  %vm8984_vm8 = vmand %vm4981_vm0, %vm4933_vm14  ;;  %v8995_v53 = vadd.s32 24, %v8878_v48 }
 0x21d   : > { %11466 = vst [vmem:[#allocation32_spill] sm:$0xff] %v11465_v30  ;;  %vm9001_vm10 = vmand %vm4984_vm3, %vm4936_vm1  ;;  %v9006_v1 = vadd.s32 24, %v8889_v26  ;;  %v11477_v54 = vmov 0  ;;  %v4539_v17 = vshrl.u32 %v8931_v44, 4  ;;  %v4572_v31 = vshrl.u32 %v8950_v35, 4 }
 0x21e   : > { %6772 = vmatmul.mubr.bf16.gmra.mrb[44].mxu1 %v2283_v40  ;;  %v4463_v40 = vmul.u32 24, %v4462_v58  ;;  %v11470_v0 = vsel %vm9001_vm10, 4294967295, %v11469_v0  ;;  %v9021_v14 = vsub.s32 %v8827_v28, %v4496_v41  ;;  %v4507_v58 = vmul.u32 24, %v4506_v13 }
 0x21f   : > { %7028 = vmatmul.mubr.bf16.gmra.mrb[44].mxu0 %v3786_v19  ;;  %v4518_v19 = vmul.u32 24, %v4517_v36  ;;  %11471 = vst [vmem:[#allocation33_spill] sm:$0xff] %v11470_v0  ;;  %11472 = vst [vmem:[#allocation34_spill] sm:$0xff] %v9006_v1  ;;  %v9024_v36 = vmul.u32.u64.low 2863311531, %v8965_v38  ;;  %v9025_v52 = vmul.u32.u64.high 2863311531, %v8965_v38, %v9024_v36  ;;  %vm4940_vm3 = vcmp.ne.s32.totalorder %v9048_v4, 0 }
 0x220   : > { %v8912_v60 = vsub.s32 %v8801_v23, %v4463_v40  ;;  %vm4937_vm0 = vcmp.ne.s32.totalorder %v9021_v14, 0  ;;  %v9087_v42 = vsub.s32 %v8846_v61, %v4507_v58  ;;  %vm4985_vm1 = vcmp.lt.s32.totalorder %v9021_v14, 0 }
 0x221   : > { %v8915_v5 = vsub.s32 %v8804_v8, %v4518_v19  ;;  %v9093_v43 = vadd.s32 24, %v9021_v14  ;;  %v9101_v36 = vsub.s32 %v8859_v32, %v4562_v47  ;;  %v4540_v13 = vmul.u32 24, %v4539_v17 }
 0x222   : > { %11455 = vst [vmem:[#allocation47_spill] sm:$0xff] %v8912_v60  ;;  %vm4934_vm5 = vcmp.ne.s32.totalorder %v8912_v60, 0  ;;  %vm4982_vm6 = vcmp.lt.s32.totalorder %v8912_v60, 0  ;;  %v9009_v15 = vadd.s32 24, %v8912_v60  ;;  %v4550_v61 = vshrl.u32 %v8992_v46, 4 }
 0x223   : > { %11456 = vst [vmem:[#allocation28_spill] sm:$0xff] %v8915_v5  ;;  %vm4939_vm7 = vcmp.ne.s32.totalorder %v8915_v5, 0  ;;  %vm4987_vm9 = vcmp.lt.s32.totalorder %v8915_v5, 0  ;;  %v9012_v57 = vadd.s32 24, %v8915_v5  ;;  %vm9016_vm11 = vmand %vm4982_vm6, %vm4934_vm5  ;;  %vm4988_vm5 = vcmp.lt.s32.totalorder %v9048_v4, 0 }
 0x224   : > { %11473 = vst [vmem:[#allocation35_spill] sm:$0xff] %v9009_v15  ;;  %v11476_v62 = vsel %vm9016_vm11, 4294967295, %v11475_v62  ;;  %vm9043_vm14 = vmand %vm4987_vm9, %vm4939_vm7  ;;  %v4573_v58 = vmul.u32 24, %v4572_v31  ;;  %v9105_v29 = vmul.u32.u64.low 2863311531, %v9073_v55  ;;  %v9106_v19 = vmul.u32.u64.high 2863311531, %v9073_v55, %v9105_v29 }
 0x225   : > { %11474 = vst [vmem:[#allocation36_spill] sm:$0xff] %v9012_v57  ;;  %v11478_v54 = vsel %vm9043_vm14, 4294967295, %v11477_v54  ;;  %11485 = vst [vmem:[#allocation46_spill] sm:$0xff] %v9101_v36  ;;  %v9109_v44 = vadd.s32 136, %v8775_v27  ;;  %v4605_v28 = vshrl.u32 %v9025_v52, 4  ;;  %v9117_v32 = vadd.s32 176, %v8775_v27 }
 0x226   : > { %11479 = vst [vmem:[#allocation37_spill] sm:$0xff] %v11478_v54  ;;  %v9121_v46 = vmul.u32.u64.low 2863311531, %v9097_v51  ;;  %v9122_v47 = vmul.u32.u64.high 2863311531, %v9097_v51, %v9121_v46  ;;  %v9125_v17 = vadd.s32 160, %v8775_v27  ;;  %v9130_v31 = vadd.s32 24, %v9087_v42  ;;  %vm9181_vm9 = vmand %vm4985_vm1, %vm4937_vm0 }
 0x227   : > { %v9134_v52 = vsub.s32 %v8885_v25, %v4540_v13  ;;  %v4551_v9 = vmul.u32 24, %v4550_v61  ;;  %v9139_v37 = vsub.s32 %v8892_v16, %v4573_v58  ;;  %v4606_v54 = vmul.u32 24, %v4605_v28  ;;  %vm9195_vm7 = vmand %vm4988_vm5, %vm4940_vm3 }
 0x228   : > { %v9142_v46 = vmul.u32.u64.low 2863311531, %v9109_v44  ;;  %v9143_v5 = vmul.u32.u64.high 2863311531, %v9109_v44, %v9142_v46  ;;  %v9155_v13 = vadd.s32 168, %v8775_v27  ;;  %v9168_v28 = vadd.s32 24, %v9101_v36 }
 0x229   : > { %11488 = vst [vmem:[#allocation22_spill] sm:$0xff] %v9134_v52  ;;  %11490 = vst [vmem:[#allocation49_spill] sm:$0xff] %v9139_v37  ;;  %v9161_v16 = vmul.u32.u64.low 2863311531, %v9125_v17  ;;  %v9162_v58 = vmul.u32.u64.high 2863311531, %v9125_v17, %v9161_v16  ;;  %v9165_v46 = vadd.s32 208, %v8775_v27  ;;  %vm11501_vm1 = vcmp.ne.s32.totalorder %v9087_v42, 0 }
 0x22a   : > { %11493 = vst [vmem:[#allocation26_spill] sm:$0xff] %v9168_v28  ;;  %v11495_v16 = vmov 0  ;;  %vm11502_vm6 = vcmp.lt.s32.totalorder %v9087_v42, 0  ;;  %vm11506_vm5 = vcmp.ne.s32.totalorder %v9101_v36, 0  ;;  %vm11507_vm0 = vcmp.lt.s32.totalorder %v9101_v36, 0 }
 0x22b   : > { %v11496_v16 = vsel %vm9181_vm9, 4294967295, %v11495_v16  ;;  %vm9211_vm14 = vmand %vm11502_vm6, %vm11501_vm1  ;;  %vm11512_vm3 = vcmp.ne.s32.totalorder %v9134_v52, 0  ;;  %vm11513_vm4 = vcmp.lt.s32.totalorder %v9134_v52, 0  ;;  %v9251_v56 = vadd.s32 24, %v9139_v37 }
 0x22c   : > { %vm9227_vm10 = vmand %vm11507_vm0, %vm11506_vm5  ;;  %v4594_v30 = vshrl.u32 %v9143_v5, 4  ;;  %vm11520_vm0 = vcmp.ne.s32.totalorder %v9139_v37, 0  ;;  %vm11521_vm5 = vcmp.lt.s32.totalorder %v9139_v37, 0  ;;  %v11528_v15 = vmov 0 }
 0x22d   : > { %vm9243_vm11 = vmand %vm11513_vm4, %vm11512_vm3  ;;  %11518 = vst [vmem:[#allocation54_spill] sm:$0xff] %v9251_v56  ;;  %v11566_v56 = vmov 0 }
 0x22e   : > { %vm9260_vm1 = vmand %vm11521_vm5, %vm11520_vm0 }
 0x269   : > { %v8918_v63 = vpop.f32.mrb[0].mxu1 }
 0x26a   : > { %v8936_v23 = vpop.f32.mrb[1].mxu1 }
 0x26b   : > { %v8952_v22 = vpop.f32.mrb[2].mxu1 }
 0x26c   : > { %v8967_v59 = vpop.f32.mrb[3].mxu1 }
 0x26d   : > { %11463 = vst [vmem:[#allocation29_spill] sm:$0xff] %v8967_v59 }
 0x271   : > { %v9050_v24 = vpop.f32.mrb[4].mxu1 }
 0x272   : > { %11481 = vst [vmem:[#allocation40_spill] sm:$0xff] %v9050_v24  ;;  %v9061_v18 = vpop.f32.mrb[5].mxu1  ;;  %v4616_v24 = vshrl.u32 %v9122_v47, 4 }
 0x273   : > { %11482 = vst [vmem:[#allocation42_spill] sm:$0xff] %v9061_v18  ;;  %v9075_v41 = vpop.f32.mrb[6].mxu1 }
 0x274   : > { %11483 = vst [vmem:[#allocation43_spill] sm:$0xff] %v9075_v41  ;;  %v9089_v35 = vpop.f32.mrb[7].mxu1 }
 0x275   : > { %11484 = vst [vmem:[#allocation20_spill] sm:$0xff] %v9089_v35  ;;  %v9151_v35 = vmul.u32.u64.low 2863311531, %v9117_v32  ;;  %v9152_v25 = vmul.u32.u64.high 2863311531, %v9117_v32, %v9151_v35 }
 0x276   : > { %v9172_v35 = vsub.s32 %v8934_v11, %v4551_v9  ;;  %v11497_v11 = vmov 0  ;;  %v9201_v9 = vsub.s32 %v8965_v38, %v4606_v54 }
 0x277   : > { %v11498_v11 = vsel %vm9195_vm7, 4294967295, %v11497_v11  ;;  %v9218_v26 = vmul.u32.u64.low 2863311531, %v9165_v46  ;;  %v9219_v38 = vmul.u32.u64.high 2863311531, %v9165_v46, %v9218_v26 }
 0x278   : > { %11494 = vst [vmem:[#allocation27_spill] sm:$0xff] %v9172_v35  ;;  %11499 = vst [vmem:[#allocation30_spill] sm:$0xff] %v11498_v11  ;;  %vm4942_vm6 = vcmp.ne.s32.totalorder %v9172_v35, 0  ;;  %v11514_v26 = vmov 0  ;;  %v9265_v59 = vadd.s32 24, %v9172_v35  ;;  %vm4947_vm4 = vcmp.ne.s32.totalorder %v9201_v9, 0 }
 0x279   : > { %v9127_v29 = vpop.f32.mrb[8].mxu1  ;;  %11500 = vst [vmem:[#allocation31_spill] sm:$0xff] %v9201_v9  ;;  %v11515_v26 = vsel %vm9243_vm11, 4294967295, %v11514_v26  ;;  %vm4995_vm3 = vcmp.lt.s32.totalorder %v9201_v9, 0  ;;  %vm11527_vm0 = vcmp.lt.s32.totalorder %v9172_v35, 0  ;;  %v9298_v4 = vadd.s32 24, %v9201_v9 }
 0x27a   : > { %11487 = vst [vmem:[#allocation48_spill] sm:$0xff] %v9127_v29  ;;  %v9136_v40 = vpop.f32.mrb[9].mxu1  ;;  %v9146_v29 = vadd.s32 184, %v8775_v27  ;;  %11516 = vst [vmem:[#allocation52_spill] sm:$0xff] %v11515_v26  ;;  %v11570_v35 = vmov 0  ;;  %v11592_v26 = vmov 0 }
 0x27b   : > { %11489 = vst [vmem:[#allocation23_spill] sm:$0xff] %v9136_v40  ;;  %v9148_v57 = vpop.f32.mrb[10].mxu1  ;;  %11525 = vst [vmem:[#allocation57_spill] sm:$0xff] %v9265_v59  ;;  %v11588_v59 = vmov 0  ;;  %v9567_v11 = vadd.s32 272, %v8775_v27 }
 0x27c   : > { %11491 = vst [vmem:[#allocation24_spill] sm:$0xff] %v9148_v57  ;;  %v9157_v61 = vpop.f32.mrb[11].mxu1  ;;  %v9175_v57 = vadd.s32 192, %v8775_v27  ;;  %v9188_v40 = vmul.u32.u64.low 2863311531, %v9146_v29  ;;  %v9189_v41 = vmul.u32.u64.high 2863311531, %v9146_v29, %v9188_v40  ;;  %vm9284_vm5 = vmand %vm11527_vm0, %vm4942_vm6 }
 0x27d   : > { %11492 = vst [vmem:[#allocation25_spill] sm:$0xff] %v9157_v61  ;;  %v4583_v61 = vshrl.u32 %v9106_v19, 4  ;;  %v9204_v18 = vmul.u32.u64.low 2863311531, %v9155_v13  ;;  %v9205_v19 = vmul.u32.u64.high 2863311531, %v9155_v13, %v9204_v18  ;;  %v11503_v40 = vmov 0  ;;  %11531 = vst [vmem:[#allocation60_spill] sm:$0xff] %v9298_v4 }
 0x27e   : > { %v11504_v40 = vsel %vm9211_vm14, 4294967295, %v11503_v40  ;;  %v11508_v18 = vmov 0  ;;  %v9234_v47 = vmul.u32.u64.low 2863311531, %v9175_v57  ;;  %v9235_v1 = vmul.u32.u64.high 2863311531, %v9175_v57, %v9234_v47  ;;  %vm9311_vm6 = vmand %vm4995_vm3, %vm4947_vm4 }
 0x27f   : > { %v11509_v18 = vsel %vm9227_vm10, 4294967295, %v11508_v18  ;;  %v4584_v21 = vmul.u32 24, %v4583_v61  ;;  %v4649_v61 = vshrl.u32 %v9152_v25, 4  ;;  %v11529_v15 = vsel %vm9284_vm5, 4294967295, %v11528_v15 }
 0x280   : > { %11510 = vst [vmem:[#allocation50_spill] sm:$0xff] %v11509_v18  ;;  %11530 = vst [vmem:[#allocation59_spill] sm:$0xff] %v11529_v15  ;;  %v4617_v25 = vmul.u32 24, %v4616_v24  ;;  %v4660_v36 = vshrl.u32 %v9189_v41, 4 }
 0x281   : > { %v9221_v54 = vpop.f32.mrb[12].mxu1  ;;  %v9316_v60 = vsub.s32 %v9073_v55, %v4584_v21  ;;  %v4650_v18 = vmul.u32 24, %v4649_v61  ;;  %v9333_v55 = vadd.s32 200, %v8775_v27  ;;  %v4671_v61 = vshrl.u32 %v9235_v1, 4 }
 0x282   : > { %11505 = vst [vmem:[#allocation38_spill] sm:$0xff] %v9221_v54  ;;  %v9237_v0 = vpop.f32.mrb[13].mxu1  ;;  %v9248_v54 = vadd.s32 24, %v9134_v52  ;;  %v4638_v52 = vshrl.u32 %v9205_v19, 4  ;;  %v9343_v19 = vmul.u32.u64.low 2863311531, %v9301_v45  ;;  %v9344_v24 = vmul.u32.u64.high 2863311531, %v9301_v45, %v9343_v19 }
 0x283   : > { %11511 = vst [vmem:[#allocation51_spill] sm:$0xff] %v9237_v0  ;;  %v9254_v47 = vpop.f32.mrb[14].mxu1  ;;  %v11522_v0 = vmov 0  ;;  %v9356_v28 = vadd.s32 24, %v9316_v60  ;;  %v9359_v1 = vsub.s32 %v9117_v32, %v4650_v18  ;;  %v9362_v19 = vadd.s32 240, %v8775_v27 }
 0x284   : > { %11517 = vst [vmem:[#allocation53_spill] sm:$0xff] %v9248_v54  ;;  %11519 = vst [vmem:[#allocation55_spill] sm:$0xff] %v9254_v47  ;;  %v11523_v0 = vsel %vm9260_vm1, 4294967295, %v11522_v0  ;;  %v9270_v5 = vpop.f32.mrb[15].mxu1  ;;  %v4595_v47 = vmul.u32 24, %v4594_v30  ;;  %v9329_v54 = vsub.s32 %v9097_v51, %v4617_v25  ;;  %v4693_v30 = vshrl.u32 %v9219_v38, 4 }
 0x285   : > { %11524 = vst [vmem:[#allocation56_spill] sm:$0xff] %v11523_v0  ;;  %11526 = vst [vmem:[#allocation58_spill] sm:$0xff] %v9270_v5  ;;  %v4627_v5 = vshrl.u32 %v9162_v58, 4  ;;  %v11532_v58 = vmov 0  ;;  %v4672_v32 = vmul.u32 24, %v4671_v61  ;;  %vm11540_vm3 = vcmp.ne.s32.totalorder %v9316_v60, 0 }
 0x286   : > { %v11533_v58 = vsel %vm9311_vm6, 4294967295, %v11532_v58  ;;  %11535 = vst [vmem:[#allocation62_spill] sm:$0xff] %v9329_v54  ;;  %v9351_v38 = vsub.s32 %v9109_v44, %v4595_v47  ;;  %v4694_v44 = vmul.u32 24, %v4693_v30  ;;  %v9379_v18 = vadd.s32 24, %v9329_v54 }
 0x287   : > { %11534 = vst [vmem:[#allocation61_spill] sm:$0xff] %v11533_v58  ;;  %v4628_v21 = vmul.u32 24, %v4627_v5  ;;  %v4661_v5 = vmul.u32 24, %v4660_v36  ;;  %vm11541_vm0 = vcmp.lt.s32.totalorder %v9316_v60, 0  ;;  %vm4999_vm6 = vcmp.lt.s32.totalorder %v9359_v1, 0 }
 0x288   : > { %v9370_v36 = vmul.u32.u64.low 2863311531, %v9333_v55  ;;  %v9371_v47 = vmul.u32.u64.high 2863311531, %v9333_v55, %v9370_v36  ;;  %v9391_v30 = vmul.u32.u64.low 2863311531, %v9362_v19  ;;  %v9392_v61 = vmul.u32.u64.high 2863311531, %v9362_v19, %v9391_v30  ;;  %vm9398_vm10 = vmand %vm11541_vm0, %vm11540_vm3 }
 0x289   : > { %v9335_v41 = vpop.f32.mrb[16].mxu1  ;;  %v9367_v9 = vsub.s32 %v9125_v17, %v4628_v21  ;;  %v9384_v17 = vsub.s32 %v9146_v29, %v4661_v5  ;;  %v9406_v29 = vsub.s32 %v9165_v46, %v4694_v44  ;;  %vm11546_vm5 = vcmp.ne.s32.totalorder %v9329_v54, 0 }
 0x28a   : > { %11536 = vst [vmem:[#allocation63_spill] sm:$0xff] %v9335_v41  ;;  %v9346_v51 = vpop.f32.mrb[17].mxu1  ;;  %v4639_v41 = vmul.u32 24, %v4638_v52  ;;  %v9376_v52 = vadd.s32 224, %v8775_v27  ;;  %vm11547_vm11 = vcmp.lt.s32.totalorder %v9329_v54, 0  ;;  %v9419_v5 = vsub.s32 %v9175_v57, %v4672_v32 }
 0x28b   : > { %11537 = vst [vmem:[#allocation64_spill] sm:$0xff] %v9346_v51  ;;  %v9353_v25 = vpop.f32.mrb[18].mxu1  ;;  %11544 = vst [vmem:[#allocation67_spill] sm:$0xff] %v9406_v29  ;;  %v4704_v30 = vshrl.u32 %v9344_v24, 4  ;;  %vm11552_vm3 = vcmp.ne.s32.totalorder %v9351_v38, 0  ;;  %vm11553_vm0 = vcmp.lt.s32.totalorder %v9351_v38, 0  ;;  %v11569_v0 = vsel %vm8958_vm2, %v8895_v10, %v8865_v33 }
 0x28c   : > { %11538 = vst [vmem:[#allocation65_spill] sm:$0xff] %v9353_v25  ;;  %v9364_v51 = vpop.f32.mrb[19].mxu1  ;;  %v9388_v21 = vsub.s32 %v9155_v13, %v4639_v41  ;;  %vm9414_vm7 = vmand %vm11547_vm11, %vm11546_vm5  ;;  %v9442_v57 = vadd.s32 248, %v8775_v27  ;;  %vm11557_vm4 = vcmp.ne.s32.totalorder %v9359_v1, 0  ;;  %v9455_v32 = vadd.s32 24, %v9359_v1 }
 0x28d   : > { %11539 = vst [vmem:[#allocation66_spill] sm:$0xff] %v9364_v51  ;;  %11550 = vst [vmem:[#allocation69_spill] sm:$0xff] %v9419_v5  ;;  %v9423_v51 = vmul.u32.u64.low 2863311531, %v9376_v52  ;;  %v9424_v25 = vmul.u32.u64.high 2863311531, %v9376_v52, %v9423_v51  ;;  %vm11561_vm11 = vcmp.ne.s32.totalorder %v9367_v9, 0  ;;  %vm11562_vm14 = vcmp.lt.s32.totalorder %v9367_v9, 0 }
 0x28e   : > { %vm9432_vm1 = vmand %vm11553_vm0, %vm11552_vm3  ;;  %v11558_v51 = vmov 0  ;;  %v9473_v58 = vadd.s32 24, %v9367_v9  ;;  %v4682_v37 = vshrl.u32 %v9371_v47, 4  ;;  %vm11574_vm5 = vcmp.lt.s32.totalorder %v9384_v17, 0 }
 0x28f   : > { %vm9450_vm3 = vmand %vm4999_vm6, %vm11557_vm4  ;;  %vm5001_vm9 = vcmp.lt.s32.totalorder %v9419_v5, 0  ;;  %vm11577_vm2 = vcmp.ne.s32.totalorder %v9388_v21, 0  ;;  %v11579_v33 = vmov 0  ;;  %v9518_v10 = vadd.s32 24, %v9388_v21 }
 0x290   : > { %v11559_v51 = vsel %vm9450_vm3, 4294967295, %v11558_v51  ;;  %vm9468_vm6 = vmand %vm11562_vm14, %vm11561_vm11  ;;  %vm9492_vm14 = vcmp.lt.s32.totalorder %v11569_v0, 16  ;;  %vm11573_vm11 = vcmp.ne.s32.totalorder %v9384_v17, 0  ;;  %v9521_v3 = vadd.s32 24, %v9406_v29 }
 0x291   : > { %v9408_v13 = vpop.f32.mrb[20].mxu1  ;;  %v11571_v35 = vsel %vm9492_vm14, 4294967295, %v11570_v35  ;;  %vm9500_vm4 = vmand %vm11574_vm5, %vm11573_vm11  ;;  %vm11578_vm14 = vcmp.lt.s32.totalorder %v9388_v21, 0  ;;  %v11582_v47 = vsel %vm8904_vm12, %v8855_v2, %v8823_v12  ;;  %vm11587_vm11 = vcmp.lt.s32.totalorder %v9406_v29, 0 }
 0x292   : > { %11545 = vst [vmem:[#allocation68_spill] sm:$0xff] %v9408_v13  ;;  %v9426_v46 = vpop.f32.mrb[21].mxu1  ;;  %v9437_v13 = vadd.s32 24, %v9351_v38  ;;  %11572 = vst [vmem:[#allocation74_spill] sm:$0xff] %v11571_v35  ;;  %v11576_v7 = vsel %vm9500_vm4, 4294967295, %v11575_v7  ;;  %vm9532_vm5 = vcmp.lt.s32.totalorder %v11582_v47, 16 }
 0x293   : > { %11551 = vst [vmem:[#allocation70_spill] sm:$0xff] %v9426_v46  ;;  %v9444_v24 = vpop.f32.mrb[22].mxu1  ;;  %v9460_v46 = vadd.s32 232, %v8775_v27  ;;  %11581 = vst [vmem:[#allocation75_spill] sm:$0xff] %v9521_v3  ;;  %v9545_v15 = vadd.s32 24, %v9419_v5  ;;  %v4737_v49 = vshrl.u32 %v9392_v61, 4 }
 0x294   : > { %11556 = vst [vmem:[#allocation71_spill] sm:$0xff] %v9444_v24  ;;  %v9462_v4 = vpop.f32.mrb[23].mxu1  ;;  %v11563_v24 = vmov 0  ;;  %v4683_v61 = vmul.u32 24, %v4682_v37  ;;  %v11596_v2 = vmov 0  ;;  %v4715_v8 = vshrl.u32 %v9424_v25, 4 }
 0x295   : > { %11560 = vst [vmem:[#allocation72_spill] sm:$0xff] %v9462_v4  ;;  %v11564_v24 = vsel %vm9468_vm6, 4294967295, %v11563_v24  ;;  %v11565_v4 = vsel %vm8924_vm13, %v8863_v50, %v8833_v6  ;;  %v9505_v6 = vadd.s32 24, %v9384_v17  ;;  %vm4953_vm13 = vcmp.ne.s32.totalorder %v9419_v5, 0  ;;  %11591 = vst [vmem:[#allocation78_spill] sm:$0xff] %v9545_v15  ;;  %v11609_v37 = vld [vmem:[#allocation47_spill] sm:$0xff] }
 0x296   : > { %vm9483_vm0 = vcmp.lt.s32.totalorder %v11565_v4, 16  ;;  %v4705_v50 = vmul.u32 24, %v4704_v30  ;;  %v9524_v0 = vmul.u32.u64.low 2863311531, %v9442_v57  ;;  %v9525_v4 = vmul.u32.u64.high 2863311531, %v9442_v57, %v9524_v0  ;;  %vm9562_vm12 = vmand %vm5001_vm9, %vm4953_vm13 }
 0x297   : > { %v11567_v56 = vsel %vm9483_vm0, 4294967295, %v11566_v56  ;;  %vm9513_vm0 = vmand %vm11578_vm14, %vm11577_vm2  ;;  %v11583_v30 = vmov 0  ;;  %vm11586_vm14 = vcmp.ne.s32.totalorder %v9406_v29, 0  ;;  %v11593_v26 = vsel %vm9562_vm12, 4294967295, %v11592_v26 }
 0x298   : > { %11568 = vst [vmem:[#allocation73_spill] sm:$0xff] %v11567_v56  ;;  %v11580_v33 = vsel %vm9513_vm0, 4294967295, %v11579_v33  ;;  %v11584_v30 = vsel %vm9532_vm5, 4294967295, %v11583_v30  ;;  %vm9540_vm2 = vmand %vm11587_vm11, %vm11586_vm14  ;;  %v9549_v0 = vmul.u32.u64.low 2863311531, %v9460_v46  ;;  %v9550_v12 = vmul.u32.u64.high 2863311531, %v9460_v46, %v9549_v0 }
 0x299   : > { %11585 = vst [vmem:[#allocation76_spill] sm:$0xff] %v11584_v30  ;;  %v11589_v59 = vsel %vm9540_vm2, 4294967295, %v11588_v59  ;;  %11594 = vst [vmem:[#allocation79_spill] sm:$0xff] %v11593_v26  ;;  %v11595_v0 = vsel %vm8942_vm15, %v8876_v20, %v8838_v39  ;;  %v9587_v54 = vsub.s32 %v9301_v45, %v4705_v50  ;;  %v11601_v20 = vsel %vm8984_vm8, %v8995_v53, %v8878_v48 }
 0x29a   : > { %11590 = vst [vmem:[#allocation77_spill] sm:$0xff] %v11589_v59  ;;  %vm9574_vm14 = vcmp.lt.s32.totalorder %v11595_v0, 16  ;;  %v6985_v39 = vpop.f32.mrb[0].mxu0  ;;  %vm9614_vm15 = vcmp.lt.s32.totalorder %v11601_v20, 16  ;;  %v11602_v0 = vmov 0  ;;  %v4738_v47 = vmul.u32 24, %v4737_v49 }
 0x29b   : > { %v11597_v2 = vsel %vm9574_vm14, 4294967295, %v11596_v2  ;;  %11599 = vst [vmem:[#allocation81_spill] sm:$0xff] %v9587_v54  ;;  %v9607_v25 = vadd.f32 %v6985_v39, %v8918_v63  ;;  %v3873_v50 = vpop.f32.mrb[1].mxu0  ;;  %v11603_v0 = vsel %vm9614_vm15, 4294967295, %v11602_v0  ;;  %v9623_v45 = vadd.s32 256, %v8775_v27  ;;  %v11608_v49 = vld [vmem:[#allocation35_spill] sm:$0xff] }
 0x29c   : > { %11598 = vst [vmem:[#allocation80_spill] sm:$0xff] %v11597_v2  ;;  %11604 = vst [vmem:[#allocation83_spill] sm:$0xff] %v11603_v0  ;;  %v9626_v63 = vadd.f32 %v3873_v50, %v8936_v23  ;;  %v6986_v34 = vpop.f32.mrb[2].mxu0  ;;  %v9629_v39 = vsub.s32 %v9333_v55, %v4683_v61  ;;  %v9632_v48 = vmul.u32.u64.low 2863311531, %v9567_v11  ;;  %v9633_v53 = vmul.u32.u64.high 2863311531, %v9567_v11, %v9632_v48  ;;  %v11614_v50 = vld [vmem:[#allocation29_spill] sm:$0xff] }
 0x29d   : > { %11600 = vst [vmem:[#allocation82_spill] sm:$0xff] %v9607_v25  ;;  %v9636_v20 = vadd.f32 %v6986_v34, %v8952_v22  ;;  %v3876_v29 = vpop.f32.mrb[3].mxu0  ;;  %vm11607_vm8 = vnez %v11476_v62  ;;  %v11611_v23 = vmov 0  ;;  %v4716_v55 = vmul.u32 24, %v4715_v8  ;;  %v11616_v34 = vld [vmem:[#allocation32_spill] sm:$0xff]  ;;  %v11618_v48 = vld [vmem:[#allocation45_spill] sm:$0xff] }
 0x29e   : > { %11605 = vst [vmem:[#allocation84_spill] sm:$0xff] %v9626_v63  ;;  %v11610_v3 = vsel %vm11607_vm8, %v11608_v49, %v11609_v37  ;;  %v9649_v61 = vadd.s32 280, %v8775_v27  ;;  %v9652_v22 = vadd.f32 %v3876_v29, %v11614_v50  ;;  %v9656_v62 = vadd.s32 24, %v9587_v54  ;;  %v11619_v8 = vld [vmem:[#allocation41_spill] sm:$0xff] }
 0x29f   : > { %11606 = vst [vmem:[#allocation85_spill] sm:$0xff] %v9636_v20  ;;  %vm9643_vm9 = vcmp.lt.s32.totalorder %v11610_v3, 16  ;;  %v4748_v3 = vshrl.u32 %v9525_v4, 4  ;;  %v6032_v37 = vpack.c.bf16 %v9636_v20, %v9607_v25  ;;  %vm11617_vm8 = vnez %v11616_v34 }
 0x2a0   : > { %v11612_v23 = vsel %vm9643_vm9, 4294967295, %v11611_v23  ;;  %11615 = vst [vmem:[#allocation47_spill] sm:$0xff] %v9652_v22  ;;  %v11620_v49 = vsel %vm11617_vm8, %v11618_v48, %v11619_v8  ;;  %v11621_v59 = vmov 0  ;;  %v9671_v29 = vsub.s32 %v9362_v19, %v4738_v47  ;;  %v11627_v47 = vld [vmem:[#allocation33_spill] sm:$0xff] }
 0x2a1   : > { %11613 = vst [vmem:[#allocation35_spill] sm:$0xff] %v11612_v23  ;;  %vm9666_vm13 = vcmp.lt.s32.totalorder %v11620_v49, 16  ;;  %v4726_v50 = vshrl.u32 %v9550_v12, 4  ;;  %v9675_v4 = vadd.s32 264, %v8775_v27  ;;  %vm11625_vm11 = vnez %v11567_v56  ;;  %6144 = vst [vmem:[%s8051_s6 + $0x8] sm:$0xff] %v6032_v37   ;;  %v11629_v12 = vld [vmem:[#allocation34_spill] sm:$0xff] }
 0x2a2   : > { %v11622_v59 = vsel %vm9666_vm13, 4294967295, %v11621_v59  ;;  %11624 = vst [vmem:[#allocation32_spill] sm:$0xff] %v9671_v29  ;;  %v5313_v34 = vsel %vm11625_vm11, %v9626_v63, 0.0  ;;  %v6027_v48 = vpack.c.bf16 %v9652_v22, %v9626_v63  ;;  %vm11626_vm8 = vnez %v11571_v35  ;;  %v11630_v49 = vld [vmem:[#allocation44_spill] sm:$0xff]  ;;  %v11688_v23 = vld [vmem:[#allocation22_spill] sm:$0xff] }
 0x2a3   : > { %11623 = vst [vmem:[#allocation29_spill] sm:$0xff] %v11622_v59  ;;  %v5314_v8 = vsel %vm11626_vm8, %v9652_v22, 0.0  ;;  %vm11628_vm12 = vnez %v11627_v47  ;;  %v11632_v15 = vmov 0  ;;  %vm11635_vm11 = vcmp.ne.s32.totalorder %v9587_v54, 0  ;;  %v11640_v22 = vld [vmem:[#allocation40_spill] sm:$0xff] }
 0x2a4   : > { %v5361_v19 = vadd.f32 %v5314_v8, %v5313_v34  ;;  %v11631_v5 = vsel %vm11628_vm12, %v11629_v12, %v11630_v49  ;;  %vm11636_vm3 = vcmp.lt.s32.totalorder %v9587_v54, 0  ;;  %v11637_v35 = vmov 0  ;;  %6028 = vst [vmem:[%s8051_s6] sm:$0xff] %v6027_v48   ;;  %v6989_v8 = vpop.f32.mrb[4].mxu0 }
 0x2a5   : > { %vm9692_vm4 = vcmp.lt.s32.totalorder %v11631_v5, 16  ;;  %vm9700_vm0 = vmand %vm11636_vm3, %vm11635_vm11  ;;  %v9706_v37 = vadd.s32 24, %v9629_v39  ;;  %v9709_v34 = vsub.s32 %v9376_v52, %v4716_v55  ;;  %v5315_v5 = vsel %vm9532_vm5, %v9607_v25, 0.0  ;;  %v3889_v26 = vpop.f32.mrb[5].mxu0  ;;  %v11700_v25 = vld [vmem:[#allocation27_spill] sm:$0xff] }
 0x2a6   : > { %v11633_v15 = vsel %vm9692_vm4, 4294967295, %v11632_v15  ;;  %v11638_v35 = vsel %vm9700_vm0, 4294967295, %v11637_v35  ;;  %v4749_v47 = vmul.u32 24, %v4748_v3  ;;  %v5362_v56 = vadd.f32 %v5361_v19, %v5315_v5  ;;  %v6990_v19 = vpop.f32.mrb[6].mxu0 }
 0x2a7   : > { %11634 = vst [vmem:[#allocation45_spill] sm:$0xff] %v11633_v15  ;;  %11639 = vst [vmem:[#allocation41_spill] sm:$0xff] %v9709_v34  ;;  %v9716_v12 = vmul.u32.u64.low 2863311531, %v9623_v45  ;;  %v9717_v49 = vmul.u32.u64.high 2863311531, %v9623_v45, %v9716_v12  ;;  %v9720_v63 = vadd.f32 %v6989_v8, %v11640_v22  ;;  %vm11642_vm3 = vnez %v11496_v16  ;;  %v11647_v22 = vld [vmem:[#allocation42_spill] sm:$0xff]  ;;  %v11653_v8 = vld [vmem:[#allocation43_spill] sm:$0xff] }
 0x2a8   : > { %v11643_v52 = vsel %vm11642_vm3, %v9093_v43, %v9021_v14  ;;  %v11644_v55 = vmov 0  ;;  %v5316_v3 = vsel %vm9574_vm14, %v9636_v20, 0.0  ;;  %v9737_v48 = vadd.f32 %v3889_v26, %v11647_v22  ;;  %v3892_v26 = vpop.f32.mrb[7].mxu0  ;;  %v11697_v20 = vld [vmem:[#allocation59_spill] sm:$0xff] }
 0x2a9   : > { %11641 = vst [vmem:[#allocation33_spill] sm:$0xff] %v9720_v63  ;;  %vm9727_vm12 = vcmp.lt.s32.totalorder %v11643_v52, 16  ;;  %vm11649_vm3 = vcmp.ne.s32.totalorder %v9629_v39, 0  ;;  %vm11650_vm5 = vcmp.lt.s32.totalorder %v9629_v39, 0  ;;  %v11651_v43 = vmov 0 }
 0x2aa   : > { %v11645_v55 = vsel %vm9727_vm12, 4294967295, %v11644_v55  ;;  %11648 = vst [vmem:[#allocation44_spill] sm:$0xff] %v9737_v48  ;;  %vm9747_vm11 = vmand %vm11650_vm5, %vm11649_vm3  ;;  %v4727_v16 = vmul.u32 24, %v4726_v50  ;;  %v5363_v5 = vadd.f32 %v5362_v56, %v5316_v3  ;;  %v9752_v12 = vadd.f32 %v6990_v19, %v11653_v8  ;;  %v11661_v3 = vld [vmem:[#allocation20_spill] sm:$0xff] }
 0x2ab   : > { %11646 = vst [vmem:[#allocation34_spill] sm:$0xff] %v11645_v55  ;;  %v11652_v43 = vsel %vm9747_vm11, 4294967295, %v11651_v43  ;;  %vm11655_vm2 = vnez %v11504_v40  ;;  %v11657_v22 = vmov 0  ;;  %v9764_v14 = vadd.s32 24, %v9671_v29 }
 0x2ac   : > { %11654 = vst [vmem:[#allocation40_spill] sm:$0xff] %v9752_v12  ;;  %v11656_v52 = vsel %vm11655_vm2, %v9130_v31, %v9087_v42  ;;  %v4781_v50 = vshrl.u32 %v9633_v53, 4  ;;  %v5317_v56 = vsel %vm9614_vm15, %v9737_v48, 0.0  ;;  %v9771_v19 = vadd.f32 %v3892_v26, %v11661_v3  ;;  %v11668_v26 = vld [vmem:[#allocation37_spill] sm:$0xff]  ;;  %v11671_v3 = vld [vmem:[#allocation28_spill] sm:$0xff] }
 0x2ad   : > { %vm9759_vm14 = vcmp.lt.s32.totalorder %v11656_v52, 16  ;;  %11660 = vst [vmem:[#allocation43_spill] sm:$0xff] %v9764_v14  ;;  %vm11663_vm5 = vcmp.ne.s32.totalorder %v9671_v29, 0  ;;  %vm11664_vm2 = vcmp.lt.s32.totalorder %v9671_v29, 0  ;;  %v11665_v42 = vmov 0  ;;  %v11670_v52 = vld [vmem:[#allocation36_spill] sm:$0xff] }
 0x2ae   : > { %v11658_v22 = vsel %vm9759_vm14, 4294967295, %v11657_v22  ;;  %11662 = vst [vmem:[#allocation20_spill] sm:$0xff] %v9771_v19  ;;  %vm9777_vm3 = vmand %vm11664_vm2, %vm11663_vm5  ;;  %v9782_v31 = vsub.s32 %v9442_v57, %v4749_v47  ;;  %v9785_v40 = vadd.s32 304, %v8775_v27  ;;  %v5364_v53 = vadd.f32 %v5363_v5, %v5317_v56  ;;  %v11730_v14 = vld [vmem:[#allocation49_spill] sm:$0xff] }
 0x2af   : > { %11659 = vst [vmem:[#allocation42_spill] sm:$0xff] %v11658_v22  ;;  %v11666_v42 = vsel %vm9777_vm3, 4294967295, %v11665_v42  ;;  %v6042_v8 = vpack.c.bf16 %v9752_v12, %v9720_v63  ;;  %vm11669_vm15 = vnez %v11668_v26  ;;  %v11673_v2 = vmov 0  ;;  %v11676_v26 = vld [vmem:[#allocation30_spill] sm:$0xff] }
 0x2b0   : > { %11667 = vst [vmem:[#allocation86_spill] sm:$0xff] %v11666_v42  ;;  %v11672_v0 = vsel %vm11669_vm15, %v11670_v52, %v11671_v3  ;;  %v6037_v47 = vpack.c.bf16 %v9771_v19, %v9737_v48  ;;  %v5318_v5 = vsel %vm9643_vm9, %v9771_v19, 0.0  ;;  %vm11677_vm8 = vnez %v11676_v26  ;;  %v11678_v52 = vld [vmem:[#allocation21_spill] sm:$0xff]  ;;  %v11679_v3 = vld [vmem:[#allocation39_spill] sm:$0xff] }
 0x2b1   : > { %vm9794_vm5 = vcmp.lt.s32.totalorder %v11672_v0, 16  ;;  %v9810_v0 = vsub.s32 %v9460_v46, %v4727_v16  ;;  %6146 = vst [vmem:[%s8051_s6 + $0x18] sm:$0xff] %v6042_v8   ;;  %v5365_v56 = vadd.f32 %v5364_v53, %v5318_v5  ;;  %v11680_v57 = vsel %vm11677_vm8, %v11678_v52, %v11679_v3  ;;  %v6993_v53 = vpop.f32.mrb[8].mxu0  ;;  %v11684_v5 = vld [vmem:[#allocation48_spill] sm:$0xff] }
 0x2b2   : > { %v11674_v2 = vsel %vm9794_vm5, 4294967295, %v11673_v2  ;;  %vm9818_vm2 = vcmp.lt.s32.totalorder %v11680_v57, 16  ;;  %v11681_v30 = vmov 0  ;;  %v9827_v19 = vadd.s32 24, %v9709_v34  ;;  %6145 = vst [vmem:[%s8051_s6 + $0x10] sm:$0xff] %v6037_v47   ;;  %v3905_v52 = vpop.f32.mrb[9].mxu0 }
 0x2b3   : > { %11675 = vst [vmem:[#allocation37_spill] sm:$0xff] %v11674_v2  ;;  %v11682_v30 = vsel %vm9818_vm2, 4294967295, %v11681_v30  ;;  %v4782_v46 = vmul.u32 24, %v4781_v50  ;;  %v5319_v16 = vsel %vm9666_vm13, %v9720_v63, 0.0  ;;  %v4759_v8 = vshrl.u32 %v9717_v49, 4  ;;  %v11685_v3 = vld [vmem:[#allocation52_spill] sm:$0xff] }
 0x2b4   : > { %11683 = vst [vmem:[#allocation36_spill] sm:$0xff] %v11682_v30  ;;  %v5366_v57 = vadd.f32 %v5365_v56, %v5319_v16  ;;  %v9837_v26 = vadd.f32 %v6993_v53, %v11684_v5  ;;  %vm11686_vm9 = vnez %v11685_v3  ;;  %v11687_v50 = vld [vmem:[#allocation53_spill] sm:$0xff]  ;;  %v11690_v59 = vmov 0  ;;  %v11693_v56 = vld [vmem:[#allocation23_spill] sm:$0xff]  ;;  %v6994_v53 = vpop.f32.mrb[10].mxu0 }
 0x2b5   : > { %v11689_v48 = vsel %vm11686_vm9, %v11687_v50, %v11688_v23  ;;  %v9849_v47 = vmul.u32.u64.low 2863311531, %v9649_v61  ;;  %v9850_v63 = vmul.u32.u64.high 2863311531, %v9649_v61, %v9849_v47  ;;  %v5320_v49 = vsel %vm9692_vm4, %v9752_v12, 0.0  ;;  %v3908_v50 = vpop.f32.mrb[11].mxu0 }
 0x2b6   : > { %vm9844_vm3 = vcmp.lt.s32.totalorder %v11689_v48, 16  ;;  %v9856_v16 = vadd.f32 %v3905_v52, %v11693_v56  ;;  %v9859_v5 = vadd.s32 24, %v9782_v31  ;;  %v5367_v23 = vadd.f32 %v5366_v57, %v5320_v49  ;;  %v11695_v48 = vld [vmem:[#allocation24_spill] sm:$0xff]  ;;  %v11699_v47 = vld [vmem:[#allocation57_spill] sm:$0xff] }
 0x2b7   : > { %v11691_v59 = vsel %vm9844_vm3, 4294967295, %v11690_v59  ;;  %v9863_v3 = vadd.f32 %v6994_v53, %v11695_v48  ;;  %vm11698_vm15 = vnez %v11697_v20  ;;  %v11702_v12 = vmov 0  ;;  %v11705_v49 = vld [vmem:[#allocation25_spill] sm:$0xff] }
 0x2b8   : > { %11692 = vst [vmem:[#allocation28_spill] sm:$0xff] %v11691_v59  ;;  %11694 = vst [vmem:[#allocation30_spill] sm:$0xff] %v9856_v16  ;;  %v11701_v15 = vsel %vm11698_vm15, %v11699_v47, %v11700_v25  ;;  %v9876_v52 = vadd.s32 24, %v9810_v0  ;;  %v5321_v57 = vsel %vm9727_vm12, %v9856_v16, 0.0  ;;  %v9882_v56 = vadd.f32 %v3908_v50, %v11705_v49  ;;  %v11711_v47 = vld [vmem:[#allocation50_spill] sm:$0xff] }
 0x2b9   : > { %11696 = vst [vmem:[#allocation21_spill] sm:$0xff] %v9863_v3  ;;  %vm9870_vm8 = vcmp.lt.s32.totalorder %v11701_v15, 16  ;;  %vm11707_vm9 = vcmp.ne.s32.totalorder %v9709_v34, 0  ;;  %vm11708_vm15 = vcmp.lt.s32.totalorder %v9709_v34, 0  ;;  %v9893_v25 = vsub.s32 %v9567_v11, %v4782_v46  ;;  %v11713_v50 = vld [vmem:[#allocation26_spill] sm:$0xff] }
 0x2ba   : > { %v11703_v12 = vsel %vm9870_vm8, 4294967295, %v11702_v12  ;;  %11706 = vst [vmem:[#allocation48_spill] sm:$0xff] %v9882_v56  ;;  %vm9888_vm13 = vmand %vm11708_vm15, %vm11707_vm9  ;;  %v4760_v20 = vmul.u32 24, %v4759_v8  ;;  %v5368_v53 = vadd.f32 %v5367_v23, %v5321_v57  ;;  %v6052_v48 = vpack.c.bf16 %v9863_v3, %v9837_v26  ;;  %v11714_v49 = vld [vmem:[#allocation46_spill] sm:$0xff] }
 0x2bb   : > { %11704 = vst [vmem:[#allocation39_spill] sm:$0xff] %v11703_v12  ;;  %vm11712_vm4 = vnez %v11711_v47  ;;  %v11716_v29 = vmov 0  ;;  %vm11719_vm9 = vcmp.ne.s32.totalorder %v9782_v31, 0  ;;  %vm11720_vm15 = vcmp.lt.s32.totalorder %v9782_v31, 0  ;;  %v11766_v12 = vld [vmem:[#allocation63_spill] sm:$0xff] }
 0x2bc   : > { %v11715_v55 = vsel %vm11712_vm4, %v11713_v50, %v11714_v49  ;;  %vm9910_vm0 = vmand %vm11720_vm15, %vm11719_vm9  ;;  %v9915_v46 = vmul.u32.u64.low 2863311531, %v9675_v4  ;;  %v9916_v8 = vmul.u32.u64.high 2863311531, %v9675_v4, %v9915_v46  ;;  %v6047_v23 = vpack.c.bf16 %v9882_v56, %v9856_v16  ;;  %6148 = vst [vmem:[%s8051_s6 + $0x28] sm:$0xff] %v6052_v48   ;;  %v11729_v16 = vld [vmem:[#allocation54_spill] sm:$0xff] }
 0x2bd   : > { %vm9902_vm12 = vcmp.lt.s32.totalorder %v11715_v55, 16  ;;  %v5322_v55 = vsel %vm9759_vm14, %v9882_v56, 0.0  ;;  %vm11723_vm4 = vcmp.ne.s32.totalorder %v9810_v0, 0  ;;  %vm11724_vm11 = vcmp.lt.s32.totalorder %v9810_v0, 0  ;;  %v11727_v46 = vld [vmem:[#allocation56_spill] sm:$0xff] }
 0x2be   : > { %v11717_v29 = vsel %vm9902_vm12, 4294967295, %v11716_v29  ;;  %vm9927_vm6 = vmand %vm11724_vm11, %vm11723_vm4  ;;  %v9932_v47 = vmul.u32.u64.low 2863311531, %v9785_v40  ;;  %v9933_v50 = vmul.u32.u64.high 2863311531, %v9785_v40, %v9932_v47  ;;  %v5369_v49 = vadd.f32 %v5368_v53, %v5322_v55  ;;  %6147 = vst [vmem:[%s8051_s6 + $0x20] sm:$0xff] %v6047_v23  }
 0x2bf   : > { %11718 = vst [vmem:[#allocation52_spill] sm:$0xff] %v11717_v29  ;;  %vm11728_vm9 = vnez %v11727_v46  ;;  %v11732_v56 = vmov 0  ;;  %v9950_v54 = vadd.s32 288, %v8775_v27  ;;  %v9953_v48 = vadd.s32 312, %v8775_v27  ;;  %v11734_v46 = vld [vmem:[#allocation38_spill] sm:$0xff] }
 0x2c0   : > { %v11731_v22 = vsel %vm11728_vm9, %v11729_v16, %v11730_v14  ;;  %v5323_v53 = vsel %vm9794_vm5, %v9837_v26, 0.0  ;;  %v6997_v14 = vpop.f32.mrb[12].mxu0  ;;  %v9964_v16 = vsub.s32 %v9623_v45, %v4760_v20  ;;  %v9967_v55 = vadd.s32 296, %v8775_v27 }
 0x2c1   : > { %vm9941_vm15 = vcmp.lt.s32.totalorder %v11731_v22, 16  ;;  %v5370_v47 = vadd.f32 %v5369_v49, %v5323_v53  ;;  %v9970_v42 = vadd.f32 %v6997_v14, %v11734_v46  ;;  %v3921_v34 = vpop.f32.mrb[13].mxu0  ;;  %v11736_v23 = vsel %vm9398_vm10, %v9356_v28, %v9316_v60  ;;  %v11740_v53 = vld [vmem:[#allocation51_spill] sm:$0xff] }
 0x2c2   : > { %v11733_v56 = vsel %vm9941_vm15, 4294967295, %v11732_v56  ;;  %vm9977_vm11 = vcmp.lt.s32.totalorder %v11736_v23, 16  ;;  %v11737_v2 = vmov 0  ;;  %v4792_v20 = vshrl.u32 %v9850_v63, 4  ;;  %v6998_v14 = vpop.f32.mrb[14].mxu0  ;;  %v11742_v28 = vld [vmem:[#allocation55_spill] sm:$0xff] }
 0x2c3   : > { %11735 = vst [vmem:[#allocation53_spill] sm:$0xff] %v9970_v42  ;;  %v11738_v2 = vsel %vm9977_vm11, 4294967295, %v11737_v2  ;;  %v5324_v49 = vsel %vm9818_vm2, %v9863_v3, 0.0  ;;  %v9990_v36 = vadd.f32 %v3921_v34, %v11740_v53  ;;  %v9995_v46 = vadd.f32 %v6998_v14, %v11742_v28  ;;  %v3924_v23 = vpop.f32.mrb[15].mxu0  ;;  %v11749_v28 = vld [vmem:[#allocation61_spill] sm:$0xff] }
 0x2c4   : > { %11739 = vst [vmem:[#allocation22_spill] sm:$0xff] %v11738_v2  ;;  %v5371_v60 = vadd.f32 %v5370_v47, %v5324_v49  ;;  %v11743_v63 = vsel %vm9432_vm1, %v9437_v13, %v9351_v38  ;;  %v11744_v22 = vmov 0  ;;  %v11747_v49 = vld [vmem:[#allocation58_spill] sm:$0xff]  ;;  %v10017_v44 = vadd.s32 24, %v9893_v25  ;;  %v11833_v2 = vld [vmem:[#allocation81_spill] sm:$0xff] }
 0x2c5   : > { %11741 = vst [vmem:[#allocation23_spill] sm:$0xff] %v9990_v36  ;;  %vm10002_vm9 = vcmp.lt.s32.totalorder %v11743_v63, 16  ;;  %v10007_v34 = vmul.u32.u64.low 2863311531, %v9950_v54  ;;  %v10008_v53 = vmul.u32.u64.high 2863311531, %v9950_v54, %v10007_v34  ;;  %v5325_v47 = vsel %vm9844_vm3, %v9990_v36, 0.0  ;;  %v11751_v63 = vld [vmem:[#allocation60_spill] sm:$0xff] }
 0x2c6   : > { %v11745_v22 = vsel %vm10002_vm9, 4294967295, %v11744_v22  ;;  %v10014_v14 = vadd.f32 %v3924_v23, %v11747_v49  ;;  %v5372_v38 = vadd.f32 %v5371_v60, %v5325_v47  ;;  %v6062_v13 = vpack.c.bf16 %v9995_v46, %v9970_v42  ;;  %v11752_v34 = vld [vmem:[#allocation31_spill] sm:$0xff] }
 0x2c7   : > { %11746 = vst [vmem:[#allocation24_spill] sm:$0xff] %v11745_v22  ;;  %vm11750_vm4 = vnez %v11749_v28  ;;  %v11754_v59 = vmov 0  ;;  %v4793_v23 = vmul.u32 24, %v4792_v20  ;;  %v4770_v49 = vshrl.u32 %v9916_v8, 4 }
 0x2c8   : > { %11748 = vst [vmem:[#allocation59_spill] sm:$0xff] %v10014_v14  ;;  %v11753_v45 = vsel %vm11750_vm4, %v11751_v63, %v11752_v34  ;;  %v6057_v30 = vpack.c.bf16 %v10014_v14, %v9990_v36  ;;  %v5326_v60 = vsel %vm9870_vm8, %v10014_v14, 0.0  ;;  %vm5009_vm1 = vcmp.lt.s32.totalorder %v9964_v16, 0  ;;  %6150 = vst [vmem:[%s8051_s6 + $0x38] sm:$0xff] %v6062_v13   ;;  %v7001_v13 = vpop.f32.mrb[16].mxu0  ;;  %v11776_v36 = vld [vmem:[#allocation65_spill] sm:$0xff] }
 0x2c9   : > { %vm10027_vm10 = vcmp.lt.s32.totalorder %v11753_v45, 16  ;;  %v4825_v47 = vshrl.u32 %v9933_v50, 4  ;;  %v5373_v28 = vadd.f32 %v5372_v38, %v5326_v60  ;;  %v11757_v45 = vld [vmem:[#allocation62_spill] sm:$0xff]  ;;  %v11759_v8 = vmov 0  ;;  %v6753_v22 = vpop.f32.mrb[24].mxu1 }
 0x2ca   : > { %v11755_v59 = vsel %vm10027_vm10, 4294967295, %v11754_v59  ;;  %v11758_v20 = vsel %vm9414_vm7, %v9379_v18, %v11757_v45  ;;  %vm11762_vm3 = vcmp.ne.s32.totalorder %v9893_v25, 0  ;;  %vm11763_vm2 = vcmp.lt.s32.totalorder %v9893_v25, 0  ;;  %6149 = vst [vmem:[%s8051_s6 + $0x30] sm:$0xff] %v6057_v30  }
 0x2cb   : > { %11756 = vst [vmem:[#allocation57_spill] sm:$0xff] %v11755_v59  ;;  %vm10045_vm4 = vcmp.lt.s32.totalorder %v11758_v20, 16  ;;  %vm10053_vm8 = vmand %vm11763_vm2, %vm11762_vm3  ;;  %v11764_v63 = vmov 0  ;;  %v10058_v50 = vmul.u32.u64.low 2863311531, %v9953_v48  ;;  %v10059_v38 = vmul.u32.u64.high 2863311531, %v9953_v48, %v10058_v50 }
 0x2cc   : > { %v11760_v8 = vsel %vm10045_vm4, 4294967295, %v11759_v8  ;;  %v11765_v63 = vsel %vm10053_vm8, 4294967295, %v11764_v63  ;;  %v10062_v41 = vadd.s32 336, %v8775_v27  ;;  %v5327_v18 = vsel %vm9902_vm12, %v9970_v42, 0.0  ;;  %v3937_v50 = vpop.f32.mrb[17].mxu0 }
 0x2cd   : > { %11761 = vst [vmem:[#allocation27_spill] sm:$0xff] %v11760_v8  ;;  %v10069_v34 = vadd.s32 24, %v9964_v16  ;;  %v10072_v60 = vmul.u32.u64.low 2863311531, %v9967_v55  ;;  %v10073_v45 = vmul.u32.u64.high 2863311531, %v9967_v55, %v10072_v60  ;;  %v5374_v20 = vadd.f32 %v5373_v28, %v5327_v18 }
 0x2ce   : > { %v10076_v14 = vadd.f32 %v7001_v13, %v11766_v12  ;;  %vm11767_vm7 = vnez %v11564_v24  ;;  %v11769_v30 = vmov 0  ;;  %vm11772_vm2 = vcmp.ne.s32.totalorder %v9964_v16, 0 }
 0x2cf   : > { %v11768_v29 = vsel %vm11767_vm7, %v9473_v58, %v9367_v9  ;;  %vm10091_vm12 = vmand %vm5009_vm1, %vm11772_vm2  ;;  %v10096_v12 = vsub.s32 %v9649_v61, %v4793_v23  ;;  %v4771_v28 = vmul.u32 24, %v4770_v49  ;;  %v5328_v9 = vsel %vm9941_vm15, %v9995_v46, 0.0  ;;  %v11775_v58 = vld [vmem:[#allocation64_spill] sm:$0xff] }
 0x2d0   : > { %vm10083_vm3 = vcmp.lt.s32.totalorder %v11768_v29, 16  ;;  %v10102_v24 = vadd.f32 %v3937_v50, %v11775_v58  ;;  %v7002_v29 = vpop.f32.mrb[18].mxu0  ;;  %v4826_v13 = vmul.u32 24, %v4825_v47  ;;  %v5375_v42 = vadd.f32 %v5374_v20, %v5328_v9  ;;  %v11782_v47 = vld [vmem:[#allocation66_spill] sm:$0xff] }
 0x2d1   : > { %v11770_v30 = vsel %vm10083_vm3, 4294967295, %v11769_v30  ;;  %v10109_v3 = vadd.f32 %v7002_v29, %v11776_v36  ;;  %v3940_v61 = vpop.f32.mrb[19].mxu0  ;;  %vm11777_vm1 = vnez %v11580_v33  ;;  %v11779_v49 = vmov 0 }
 0x2d2   : > { %11771 = vst [vmem:[#allocation25_spill] sm:$0xff] %v11770_v30  ;;  %v11778_v23 = vsel %vm11777_vm1, %v9518_v10, %v9388_v21  ;;  %v4803_v50 = vshrl.u32 %v10008_v53, 4  ;;  %v10122_v58 = vadd.s32 320, %v8775_v27  ;;  %v5329_v36 = vsel %vm9977_vm11, %v10102_v24, 0.0  ;;  %v11823_v30 = vld [vmem:[#allocation67_spill] sm:$0xff] }
 0x2d3   : > { %vm10116_vm7 = vcmp.lt.s32.totalorder %v11778_v23, 16  ;;  %v10128_v20 = vadd.f32 %v3940_v61, %v11782_v47  ;;  %v10135_v33 = vadd.s32 344, %v8775_v27  ;;  %v5376_v10 = vadd.f32 %v5375_v42, %v5329_v36 }
 0x2d4   : > { %v11780_v49 = vsel %vm10116_vm7, 4294967295, %v11779_v49  ;;  %v6072_v53 = vpack.c.bf16 %v10109_v3, %v10076_v14  ;;  %vm11783_vm2 = vnez %v11559_v51  ;;  %v11785_v29 = vmov 0 }
 0x2d5   : > { %11781 = vst [vmem:[#allocation50_spill] sm:$0xff] %v11780_v49  ;;  %v11784_v9 = vsel %vm11783_vm2, %v9455_v32, %v9359_v1  ;;  %v10150_v61 = vsub.s32 %v9675_v4, %v4771_v28  ;;  %v6067_v42 = vpack.c.bf16 %v10128_v20, %v10102_v24  ;;  %v5330_v23 = vsel %vm10002_vm9, %v10128_v20, 0.0 }
 0x2d6   : > { %vm10144_vm1 = vcmp.lt.s32.totalorder %v11784_v9, 16  ;;  %v10159_v1 = vsub.s32 %v9785_v40, %v4826_v13  ;;  %6152 = vst [vmem:[%s8051_s6 + $0x48] sm:$0xff] %v6072_v53   ;;  %v5377_v51 = vadd.f32 %v5376_v10, %v5330_v23  ;;  %vm11788_vm2 = vnez %v11576_v7  ;;  %v7005_v13 = vpop.f32.mrb[20].mxu0  ;;  %v11792_v53 = vld [vmem:[#allocation68_spill] sm:$0xff] }
 0x2d7   : > { %v11786_v29 = vsel %vm10144_vm1, 4294967295, %v11785_v29  ;;  %v11789_v32 = vsel %vm11788_vm2, %v9505_v6, %v9384_v17  ;;  %v11790_v4 = vmov 0  ;;  %v10172_v28 = vadd.s32 24, %v10096_v12  ;;  %6151 = vst [vmem:[%s8051_s6 + $0x40] sm:$0xff] %v6067_v42   ;;  %v3953_v23 = vpop.f32.mrb[21].mxu0  ;;  %v11802_v42 = vld [vmem:[#allocation70_spill] sm:$0xff] }
 0x2d8   : > { %11787 = vst [vmem:[#allocation26_spill] sm:$0xff] %v11786_v29  ;;  %vm10167_vm11 = vcmp.lt.s32.totalorder %v11789_v32, 16  ;;  %v4804_v36 = vmul.u32 24, %v4803_v50  ;;  %v4836_v47 = vshrl.u32 %v10059_v38, 4  ;;  %v5331_v40 = vsel %vm10027_vm10, %v10076_v14, 0.0  ;;  %v11794_v50 = vld [vmem:[#allocation79_spill] sm:$0xff] }
 0x2d9   : > { %v11791_v4 = vsel %vm10167_vm11, 4294967295, %v11790_v4  ;;  %v4814_v7 = vshrl.u32 %v10073_v45, 4  ;;  %v10181_v17 = vmul.u32.u64.low 2863311531, %v10062_v41  ;;  %v10182_v6 = vmul.u32.u64.high 2863311531, %v10062_v41, %v10181_v17  ;;  %v11796_v38 = vld [vmem:[#allocation78_spill] sm:$0xff]  ;;  %v11797_v32 = vld [vmem:[#allocation69_spill] sm:$0xff] }
 0x2da   : > { %v5378_v10 = vadd.f32 %v5377_v51, %v5331_v40  ;;  %v10185_v9 = vadd.f32 %v7005_v13, %v11792_v53  ;;  %vm11795_vm2 = vnez %v11794_v50  ;;  %v11799_v21 = vmov 0  ;;  %v7006_v40 = vpop.f32.mrb[22].mxu0  ;;  %v11804_v13 = vld [vmem:[#allocation71_spill] sm:$0xff] }
 0x2db   : > { %v11798_v18 = vsel %vm11795_vm2, %v11796_v38, %v11797_v32  ;;  %v5332_v45 = vsel %vm10045_vm4, %v10109_v3, 0.0  ;;  %v10202_v51 = vadd.f32 %v3953_v23, %v11802_v42  ;;  %v10207_v17 = vadd.f32 %v7006_v40, %v11804_v13  ;;  %v3956_v53 = vpop.f32.mrb[23].mxu0 }
 0x2dc   : > { %11793 = vst [vmem:[#allocation46_spill] sm:$0xff] %v10185_v9  ;;  %vm10192_vm15 = vcmp.lt.s32.totalorder %v11798_v18, 16  ;;  %v5379_v18 = vadd.f32 %v5378_v10, %v5332_v45  ;;  %vm11805_vm10 = vnez %v11652_v43  ;;  %v11807_v38 = vmov 0 }
 0x2dd   : > { %v11800_v21 = vsel %vm10192_vm15, 4294967295, %v11799_v21  ;;  %11803 = vst [vmem:[#allocation54_spill] sm:$0xff] %v10202_v51  ;;  %v11806_v50 = vsel %vm11805_vm10, %v9706_v37, %v9629_v39  ;;  %vm11810_vm4 = vcmp.ne.s32.totalorder %v10096_v12, 0  ;;  %vm11811_vm5 = vcmp.lt.s32.totalorder %v10096_v12, 0  ;;  %v11814_v37 = vld [vmem:[#allocation72_spill] sm:$0xff] }
 0x2de   : > { %11801 = vst [vmem:[#allocation56_spill] sm:$0xff] %v11800_v21  ;;  %vm10214_vm9 = vcmp.lt.s32.totalorder %v11806_v50, 16  ;;  %vm10222_vm14 = vmand %vm11811_vm5, %vm11810_vm4  ;;  %v10227_v10 = vadd.s32 24, %v10150_v61  ;;  %v10230_v43 = vadd.s32 328, %v8775_v27  ;;  %v5333_v39 = vsel %vm10083_vm3, %v10202_v51, 0.0 }
 0x2df   : > { %v11808_v38 = vsel %vm10214_vm9, 4294967295, %v11807_v38  ;;  %v10236_v32 = vadd.f32 %v3956_v53, %v11814_v37  ;;  %vm11816_vm10 = vcmp.ne.s32.totalorder %v10150_v61, 0  ;;  %vm11817_vm5 = vcmp.lt.s32.totalorder %v10150_v61, 0  ;;  %v11820_v53 = vld [vmem:[#allocation77_spill] sm:$0xff]  ;;  %v11822_v37 = vld [vmem:[#allocation75_spill] sm:$0xff] }
 0x2e0   : > { %11809 = vst [vmem:[#allocation49_spill] sm:$0xff] %v11808_v38  ;;  %vm10242_vm4 = vmand %vm11817_vm5, %vm11816_vm10  ;;  %v10247_v42 = vadd.s32 24, %v10159_v1  ;;  %v10250_v40 = vsub.s32 %v9950_v54, %v4804_v36  ;;  %v5380_v13 = vadd.f32 %v5379_v18, %v5333_v39  ;;  %v6082_v50 = vpack.c.bf16 %v10207_v17, %v10185_v9 }
 0x2e1   : > { %11815 = vst [vmem:[#allocation38_spill] sm:$0xff] %v10236_v32  ;;  %vm11821_vm2 = vnez %v11820_v53  ;;  %v11825_v59 = vmov 0  ;;  %vm11828_vm5 = vcmp.ne.s32.totalorder %v10159_v1, 0  ;;  %vm11829_vm3 = vcmp.lt.s32.totalorder %v10159_v1, 0 }
 0x2e2   : > { %v11824_v8 = vsel %vm11821_vm2, %v11822_v37, %v11823_v30  ;;  %vm10267_vm8 = vmand %vm11829_vm3, %vm11828_vm5  ;;  %v4837_v36 = vmul.u32 24, %v4836_v47  ;;  %v4815_v18 = vmul.u32 24, %v4814_v7  ;;  %v6077_v39 = vpack.c.bf16 %v10236_v32, %v10202_v51  ;;  %6154 = vst [vmem:[%s8051_s6 + $0x58] sm:$0xff] %v6082_v50  }
 0x2e3   : > { %vm10259_vm10 = vcmp.lt.s32.totalorder %v11824_v8, 16  ;;  %v5334_v8 = vsel %vm10116_vm7, %v10236_v32, 0.0  ;;  %v10277_v30 = vmul.u32.u64.low 2863311531, %v10122_v58  ;;  %v10278_v53 = vmul.u32.u64.high 2863311531, %v10122_v58, %v10277_v30 }
 0x2e4   : > { %v11826_v59 = vsel %vm10259_vm10, 4294967295, %v11825_v59  ;;  %v5381_v37 = vadd.f32 %v5380_v13, %v5334_v8  ;;  %vm11832_vm3 = vnez %v11638_v35  ;;  %v11835_v7 = vmov 0  ;;  %6153 = vst [vmem:[%s8051_s6 + $0x50] sm:$0xff] %v6077_v39   ;;  %v11838_v39 = vld [vmem:[#allocation41_spill] sm:$0xff] }
 0x2e5   : > { %11827 = vst [vmem:[#allocation51_spill] sm:$0xff] %v11826_v59  ;;  %v11834_v47 = vsel %vm11832_vm3, %v9656_v62, %v11833_v2  ;;  %v10299_v50 = vadd.s32 368, %v8775_v27  ;;  %v5335_v35 = vsel %vm10144_vm1, %v10185_v9, 0.0  ;;  %v7009_v2 = vpop.f32.mrb[24].mxu0  ;;  %v2486_v62 = vpop.f32.mrb[25].mxu1  ;;  %vm4965_vm5 = vcmp.ne.s32.totalorder %v10250_v40, 0 }
 0x2e6   : > { %vm10286_vm2 = vcmp.lt.s32.totalorder %v11834_v47, 16  ;;  %vm5013_vm3 = vcmp.lt.s32.totalorder %v10250_v40, 0  ;;  %v5382_v30 = vadd.f32 %v5381_v37, %v5335_v35  ;;  %v10311_v47 = vadd.f32 %v7009_v2, %v6753_v22  ;;  %v3969_v49 = vpop.f32.mrb[25].mxu0  ;;  %v6754_v13 = vpop.f32.mrb[26].mxu1 }
 0x2e7   : > { %v11836_v7 = vsel %vm10286_vm2, 4294967295, %v11835_v7  ;;  %v11839_v29 = vsel %vm9888_vm13, %v9827_v19, %v11838_v39  ;;  %v11840_v9 = vmov 0  ;;  %v10323_v8 = vadd.s32 24, %v10250_v40  ;;  %v7010_v35 = vpop.f32.mrb[26].mxu0  ;;  %v2489_v15 = vpop.f32.mrb[27].mxu1 }
 0x2e8   : > { %11837 = vst [vmem:[#allocation55_spill] sm:$0xff] %v11836_v7  ;;  %vm10318_vm1 = vcmp.lt.s32.totalorder %v11839_v29, 16  ;;  %v4869_v32 = vshrl.u32 %v10182_v6, 4  ;;  %v5336_v22 = vsel %vm10167_vm11, %v10207_v17, 0.0  ;;  %v10329_v37 = vadd.f32 %v3969_v49, %v2486_v62  ;;  %v3972_v51 = vpop.f32.mrb[27].mxu0  ;;  %vm10352_vm11 = vmand %vm5013_vm3, %vm4965_vm5 }
 0x2e9   : > { %v11841_v9 = vsel %vm10318_vm1, 4294967295, %v11840_v9  ;;  %v10332_v2 = vsub.s32 %v9953_v48, %v4837_v36  ;;  %v10335_v19 = vsub.s32 %v9967_v55, %v4815_v18  ;;  %v5383_v29 = vadd.f32 %v5382_v30, %v5336_v22  ;;  %v11849_v30 = vld [vmem:[#allocation86_spill] sm:$0xff]  ;;  %v11851_v22 = vld [vmem:[#allocation43_spill] sm:$0xff]  ;;  %v7013_v11 = vpop.f32.mrb[28].mxu0 }
 0x2ea   : > { %11842 = vst [vmem:[#allocation58_spill] sm:$0xff] %v11841_v9  ;;  %v10337_v39 = vadd.f32 %v7010_v35, %v6754_v13  ;;  %v11843_v6 = vsel %vm9927_vm6, %v9876_v52, %v9810_v0  ;;  %v11844_v49 = vmov 0  ;;  %v5337_v0 = vsel %vm10192_vm15, %v10329_v37, 0.0  ;;  %v11852_v35 = vld [vmem:[#allocation32_spill] sm:$0xff] }
 0x2eb   : > { %vm10344_vm13 = vcmp.lt.s32.totalorder %v11843_v6, 16  ;;  %v10357_v55 = vmul.u32.u64.low 2863311531, %v10135_v33  ;;  %v10358_v36 = vmul.u32.u64.high 2863311531, %v10135_v33, %v10357_v55  ;;  %v10363_v52 = vadd.f32 %v3972_v51, %v2489_v15 }
 0x2ec   : > { %v11845_v49 = vsel %vm10344_vm13, 4294967295, %v11844_v49  ;;  %v10366_v57 = vmul.u32.u64.low 2863311531, %v10230_v43  ;;  %v10367_v18 = vmul.u32.u64.high 2863311531, %v10230_v43, %v10366_v57  ;;  %v5384_v13 = vadd.f32 %v5383_v29, %v5337_v0 }
 0x2ed   : > { %11846 = vst [vmem:[#allocation61_spill] sm:$0xff] %v11845_v49  ;;  %v6092_v62 = vpack.c.bf16 %v10337_v39, %v10311_v47  ;;  %vm11850_vm6 = vnez %v11849_v30  ;;  %v11854_v55 = vmov 0  ;;  %v4870_v51 = vmul.u32 24, %v4869_v32  ;;  %v6757_v32 = vpop.f32.mrb[28].mxu1 }
 0x2ee   : > { %v11853_v6 = vsel %vm11850_vm6, %v11851_v22, %v11852_v35  ;;  %v10381_v15 = vadd.s32 352, %v8775_v27  ;;  %v6087_v29 = vpack.c.bf16 %v10363_v52, %v10329_v37  ;;  %v5338_v0 = vsel %vm10214_vm9, %v10363_v52, 0.0 }
 0x2ef   : > { %vm10376_vm5 = vcmp.lt.s32.totalorder %v11853_v6, 16  ;;  %v4847_v30 = vshrl.u32 %v10278_v53, 4  ;;  %6156 = vst [vmem:[%s8051_s6 + $0x68] sm:$0xff] %v6092_v62   ;;  %v5385_v22 = vadd.f32 %v5384_v13, %v5338_v0  ;;  %v11857_v35 = vsel %vm9910_vm0, %v9859_v5, %v9782_v31  ;;  %v2502_v13 = vpop.f32.mrb[29].mxu1  ;;  %v3985_v0 = vpop.f32.mrb[29].mxu0 }
 0x2f0   : > { %v11855_v55 = vsel %vm10376_vm5, 4294967295, %v11854_v55  ;;  %vm10399_vm3 = vcmp.lt.s32.totalorder %v11857_v35, 16  ;;  %v10406_v57 = vadd.s32 24, %v10332_v2  ;;  %v5339_v53 = vsel %vm10259_vm10, %v10311_v47, 0.0  ;;  %6155 = vst [vmem:[%s8051_s6 + $0x60] sm:$0xff] %v6087_v29   ;;  %v6758_v35 = vpop.f32.mrb[30].mxu1 }
 0x2f1   : > { %11856 = vst [vmem:[#allocation60_spill] sm:$0xff] %v11855_v55  ;;  %vm4966_vm0 = vcmp.ne.s32.totalorder %v10335_v19, 0  ;;  %vm5014_vm15 = vcmp.lt.s32.totalorder %v10335_v19, 0  ;;  %v10415_v31 = vadd.s32 24, %v10335_v19  ;;  %v5386_v5 = vadd.f32 %v5385_v22, %v5339_v53  ;;  %v7014_v60 = vpop.f32.mrb[30].mxu0  ;;  %v2505_v53 = vpop.f32.mrb[31].mxu1 }
 0x2f2   : > { %v10417_v62 = vadd.f32 %v7013_v11, %v6757_v32  ;;  %v11860_v59 = vsel %vm10091_vm12, %v10069_v34, %v9964_v16  ;;  %v10429_v38 = vsub.s32 %v10062_v41, %v4870_v51  ;;  %v10432_v21 = vadd.s32 376, %v8775_v27  ;;  %v3988_v41 = vpop.f32.mrb[31].mxu0  ;;  %vm10466_vm6 = vmand %vm5014_vm15, %vm4966_vm0 }
 0x2f3   : > { %vm10424_vm9 = vcmp.lt.s32.totalorder %v11860_v59, 16  ;;  %v5340_v22 = vsel %vm10286_vm2, %v10337_v39, 0.0  ;;  %v10437_v32 = vadd.f32 %v3985_v0, %v2502_v13  ;;  %v4848_v11 = vmul.u32 24, %v4847_v30 }
 0x2f4   : > { %v10440_v59 = vadd.s32 360, %v8775_v27  ;;  %v5387_v16 = vadd.f32 %v5386_v5, %v5340_v22  ;;  %v10442_v34 = vadd.f32 %v7014_v60, %v6758_v35  ;;  %v11863_v51 = vsel %vm10242_vm4, %v10227_v10, %v10150_v61 }
 0x2f5   : > { %vm10449_vm12 = vcmp.lt.s32.totalorder %v11863_v51, 16  ;;  %v10454_v13 = vmul.u32.u64.low 2863311531, %v10381_v15  ;;  %v10455_v30 = vmul.u32.u64.high 2863311531, %v10381_v15, %v10454_v13  ;;  %v5341_v27 = vsel %vm10318_vm1, %v10437_v32, 0.0 }
 0x2f6   : > { %v10460_v5 = vadd.f32 %v3988_v41, %v2505_v53  ;;  %v4880_v10 = vshrl.u32 %v10358_v36, 4  ;;  %v4858_v45 = vshrl.u32 %v10367_v18, 4  ;;  %v5388_v0 = vadd.f32 %v5387_v16, %v5341_v27 }
 0x2f7   : > { %v6102_v35 = vpack.c.bf16 %v10442_v34, %v10417_v62  ;;  %vm11868_vm4 = vnez %v11765_v63  ;;  %v10484_v53 = vmul.u32.u64.low 2863311531, %v10299_v50  ;;  %v10485_v41 = vmul.u32.u64.high 2863311531, %v10299_v50, %v10484_v53 }
 0x2f8   : > { %v11869_v22 = vsel %vm11868_vm4, %v10017_v44, %v9893_v25  ;;  %v6097_v36 = vpack.c.bf16 %v10460_v5, %v10437_v32  ;;  %v5342_v18 = vsel %vm10344_vm13, %v10460_v5, 0.0  ;;  %v6761_v44 = vpop.f32.mrb[32].mxu1  ;;  %v11872_v51 = vsel %vm10222_vm14, %v10172_v28, %v10096_v12 }
 0x2f9   : > { %vm10479_vm1 = vcmp.lt.s32.totalorder %v11869_v22, 16  ;;  %v10493_v63 = vmul.u32.u64.low 2863311531, %v10440_v59  ;;  %v10494_v16 = vmul.u32.u64.high 2863311531, %v10440_v59, %v10493_v63  ;;  %6158 = vst [vmem:[%s8051_s6 + $0x78] sm:$0xff] %v6102_v35   ;;  %v5389_v25 = vadd.f32 %v5388_v0, %v5342_v18  ;;  %v7017_v0 = vpop.f32.mrb[32].mxu0  ;;  %v2518_v12 = vpop.f32.mrb[33].mxu1 }
 0x2fa   : > { %vm10502_vm15 = vcmp.lt.s32.totalorder %v11872_v51, 16  ;;  %v11873_v13 = vmov 0  ;;  %v5158_v27 = vsel %vm10466_vm6, %v10415_v31, %v10335_v19  ;;  %vm4971_vm0 = vcmp.ne.s32.totalorder %v10429_v38, 0  ;;  %6157 = vst [vmem:[%s8051_s6 + $0x70] sm:$0xff] %v6097_v36   ;;  %v4001_v53 = vpop.f32.mrb[33].mxu0  ;;  %v6762_v36 = vpop.f32.mrb[34].mxu1 }
 0x2fb   : > { %v11874_v13 = vsel %vm10502_vm15, 4294967295, %v11873_v13  ;;  %vm5019_vm4 = vcmp.lt.s32.totalorder %v10429_v38, 0  ;;  %v5343_v23 = vsel %vm10376_vm5, %v10417_v62, 0.0  ;;  %vm11875_vm14 = vcmp.ne.s32.totalorder %v10332_v2, 0  ;;  %v7018_v49 = vpop.f32.mrb[34].mxu0  ;;  %v2521_v9 = vpop.f32.mrb[35].mxu1 }
 0x2fc   : > { %vm11876_vm13 = vcmp.lt.s32.totalorder %v10332_v2, 0  ;;  %v10525_v19 = vadd.s32 24, %v10429_v38  ;;  %v4881_v31 = vmul.u32 24, %v4880_v10  ;;  %v4859_v61 = vmul.u32 24, %v4858_v45  ;;  %vm10551_vm6 = vmand %vm5019_vm4, %vm4971_vm0 }
 0x2fd   : > { %vm10520_vm2 = vmand %vm11876_vm13, %vm11875_vm14  ;;  %v5390_v35 = vadd.f32 %v5389_v25, %v5343_v23  ;;  %v10527_v22 = vadd.f32 %v7017_v0, %v6761_v44  ;;  %v10530_v18 = vmul.u32.u64.low 2863311531, %v10432_v21  ;;  %v10531_v63 = vmul.u32.u64.high 2863311531, %v10432_v21, %v10530_v18  ;;  %v4004_v0 = vpop.f32.mrb[35].mxu0 }
 0x2fe   : > { %v5344_v51 = vsel %vm10399_vm3, %v10442_v34, 0.0  ;;  %v10536_v55 = vadd.f32 %v4001_v53, %v2518_v12  ;;  %v11879_v10 = vsel %vm10352_vm11, %v10323_v8, %v10250_v40  ;;  %v11880_v45 = vmov 0 }
 0x2ff   : > { %vm10543_vm13 = vcmp.lt.s32.totalorder %v11879_v10, 16  ;;  %v10556_v44 = vsub.s32 %v10122_v58, %v4848_v11  ;;  %v5391_v23 = vadd.f32 %v5390_v35, %v5344_v51  ;;  %v10558_v48 = vadd.f32 %v7018_v49, %v6762_v36 }
 0x300   : > { %v11881_v45 = vsel %vm10543_vm13, 4294967295, %v11880_v45  ;;  %v5160_v40 = vsel %vm10520_vm2, %v10406_v57, %v10332_v2  ;;  %v4891_v8 = vshrl.u32 %v10455_v30, 4  ;;  %v5345_v12 = vsel %vm10424_vm9, %v10536_v55, 0.0 }
 0x301   : > { %v10568_v53 = vadd.f32 %v4004_v0, %v2521_v9  ;;  %vm10570_vm11 = vcmp.lt.s32.totalorder %v5158_v27, 16  ;;  %v11884_v58 = vmov 0  ;;  %v10575_v49 = vsub.s32 %v10135_v33, %v4881_v31  ;;  %v6765_v27 = vpop.f32.mrb[36].mxu1 }
 0x302   : > { %v11885_v58 = vsel %vm10570_vm11, 4294967295, %v11884_v58  ;;  %v5392_v11 = vadd.f32 %v5391_v23, %v5345_v12  ;;  %v6112_v28 = vpack.c.bf16 %v10558_v48, %v10527_v22  ;;  %v11886_v2 = vsel %vm10267_vm8, %v10247_v42, %v10159_v1  ;;  %v2534_v35 = vpop.f32.mrb[37].mxu1 }
 0x303   : > { %vm10584_vm2 = vcmp.lt.s32.totalorder %v11886_v2, 16  ;;  %v11887_v9 = vmov 0  ;;  %v5163_v33 = vsel %vm10551_vm6, %v10525_v19, %v10429_v38  ;;  %v10593_v57 = vsub.s32 %v10230_v43, %v4859_v61  ;;  %v7021_v61 = vpop.f32.mrb[36].mxu0  ;;  %v6766_v10 = vpop.f32.mrb[38].mxu1 }
 0x304   : > { %v11888_v9 = vsel %vm10584_vm2, 4294967295, %v11887_v9  ;;  %v6107_v30 = vpack.c.bf16 %v10568_v53, %v10536_v55  ;;  %v5346_v1 = vsel %vm10449_vm12, %v10568_v53, 0.0  ;;  %vm4969_vm8 = vcmp.ne.s32.totalorder %v10556_v44, 0  ;;  %6160 = vst [vmem:[%s8051_s6 + $0x88] sm:$0xff] %v6112_v28   ;;  %v4017_v51 = vpop.f32.mrb[37].mxu0 }
 0x305   : > { %v4902_v42 = vshrl.u32 %v10494_v16, 4  ;;  %v5393_v54 = vadd.f32 %v5392_v11, %v5346_v1  ;;  %vm10603_vm0 = vcmp.lt.s32.totalorder %v5160_v40, 16  ;;  %v11889_v31 = vmov 0  ;;  %v7022_v0 = vpop.f32.mrb[38].mxu0  ;;  %v2537_v40 = vpop.f32.mrb[39].mxu1 }
 0x306   : > { %v11890_v31 = vsel %vm10603_vm0, 4294967295, %v11889_v31  ;;  %v4913_v38 = vshrl.u32 %v10485_v41, 4  ;;  %v4892_v43 = vmul.u32 24, %v4891_v8  ;;  %v5347_v19 = vsel %vm10479_vm1, %v10527_v22, 0.0  ;;  %6159 = vst [vmem:[%s8051_s6 + $0x80] sm:$0xff] %v6107_v30   ;;  %v4020_v28 = vpop.f32.mrb[39].mxu0 }
 0x307   : > { %11891 = vst [vmem:[#allocation31_spill] sm:$0xff] %v11890_v31  ;;  %v5113_v16 = vadd.s32 24, %v10556_v44  ;;  %v5394_v36 = vadd.f32 %v5393_v54, %v5347_v19  ;;  %v10616_v18 = vadd.f32 %v7021_v61, %v6765_v27  ;;  %v4924_v41 = vshrl.u32 %v10531_v63, 4 }
 0x308   : > { %v5348_v25 = vsel %vm10502_vm15, %v10558_v48, 0.0  ;;  %v10623_v23 = vadd.f32 %v4017_v51, %v2534_v35  ;;  %vm11892_vm6 = vcmp.lt.s32.totalorder %v10556_v44, 0  ;;  %v4903_v12 = vmul.u32 24, %v4902_v42 }
 0x309   : > { %vm10629_vm14 = vmand %vm11892_vm6, %vm4969_vm8  ;;  %v5395_v63 = vadd.f32 %v5394_v36, %v5348_v25  ;;  %v10634_v11 = vadd.f32 %v7022_v0, %v6766_v10  ;;  %v4914_v2 = vmul.u32 24, %v4913_v38  ;;  %v10637_v30 = vsub.s32 %v10381_v15, %v4892_v43  ;;  %v6769_v25 = vpop.f32.mrb[40].mxu1 }
 0x30a   : > { %v5349_v1 = vsel %vm10543_vm13, %v10623_v23, 0.0  ;;  %v10642_v54 = vadd.f32 %v4020_v28, %v2537_v40  ;;  %vm11895_vm8 = vcmp.ne.s32.totalorder %v10575_v49, 0  ;;  %vm11896_vm6 = vcmp.lt.s32.totalorder %v10575_v49, 0  ;;  %v2550_v40 = vpop.f32.mrb[41].mxu1 }
 0x30b   : > { %vm10648_vm4 = vmand %vm11896_vm6, %vm11895_vm8  ;;  %v5116_v27 = vadd.s32 24, %v10575_v49  ;;  %v5114_v38 = vadd.s32 24, %v10593_v57  ;;  %v5396_v15 = vadd.f32 %v5395_v63, %v5349_v1  ;;  %v6122_v43 = vpack.c.bf16 %v10634_v11, %v10616_v18 }
 0x30c   : > { %v5161_v19 = vsel %vm10629_vm14, %v5113_v16, %v10556_v44  ;;  %vm11899_vm13 = vcmp.ne.s32.totalorder %v10593_v57, 0  ;;  %vm11900_vm8 = vcmp.lt.s32.totalorder %v10593_v57, 0  ;;  %v4925_v35 = vmul.u32 24, %v4924_v41  ;;  %v7025_v41 = vpop.f32.mrb[40].mxu0 }
 0x30d   : > { %vm10663_vm6 = vmand %vm11900_vm8, %vm11899_vm13  ;;  %v6117_v36 = vpack.c.bf16 %v10642_v54, %v10623_v23  ;;  %v5350_v51 = vsel %vm10570_vm11, %v10642_v54, 0.0  ;;  %vm10672_vm15 = vcmp.lt.s32.totalorder %v5163_v33, 16  ;;  %v11903_v10 = vmov 0  ;;  %6162 = vst [vmem:[%s8051_s6 + $0x98] sm:$0xff] %v6122_v43   ;;  %v4033_v28 = vpop.f32.mrb[41].mxu0 }
 0x30e   : > { %v11904_v10 = vsel %vm10672_vm15, 4294967295, %v11903_v10  ;;  %v10677_v44 = vsub.s32 %v10440_v59, %v4903_v12  ;;  %v5397_v16 = vadd.f32 %v5396_v15, %v5350_v51  ;;  %v10681_v0 = vsub.s32 %v10299_v50, %v4914_v2  ;;  %v6770_v2 = vpop.f32.mrb[42].mxu1 }
 0x30f   : > { %11905 = vst [vmem:[#allocation62_spill] sm:$0xff] %v11904_v10  ;;  %vm4973_vm13 = vcmp.ne.s32.totalorder %v10637_v30, 0  ;;  %vm5021_vm14 = vcmp.lt.s32.totalorder %v10637_v30, 0  ;;  %v5351_v33 = vsel %vm10584_vm2, %v10616_v18, 0.0  ;;  %6161 = vst [vmem:[%s8051_s6 + $0x90] sm:$0xff] %v6117_v36   ;;  %vm10689_vm8 = vcmp.lt.s32.totalorder %v5161_v19, 16 }
 0x310   : > { %v11906_v59 = vmov 0  ;;  %v5164_v50 = vsel %vm10648_vm4, %v5116_v27, %v10575_v49  ;;  %v5162_v8 = vsel %vm10663_vm6, %v5114_v38, %v10593_v57  ;;  %v5398_v12 = vadd.f32 %v5397_v16, %v5351_v33  ;;  %v7026_v49 = vpop.f32.mrb[42].mxu0  ;;  %v2553_v42 = vpop.f32.mrb[43].mxu1  ;;  %vm10712_vm4 = vmand %vm5021_vm14, %vm4973_vm13 }
 0x311   : > { %v11907_v59 = vsel %vm10689_vm8, 4294967295, %v11906_v59  ;;  %v10699_v63 = vadd.f32 %v7025_v41, %v6769_v25  ;;  %v5117_v1 = vadd.s32 24, %v10637_v30  ;;  %v4926_v15 = vsub.s32 %v10432_v21, %v4925_v35  ;;  %v4036_v38 = vpop.f32.mrb[43].mxu0 }
 0x312   : > { %11908 = vst [vmem:[#allocation63_spill] sm:$0xff] %v11907_v59  ;;  %v5352_v43 = vsel %vm10603_vm0, %v10634_v11, 0.0  ;;  %v10706_v19 = vadd.f32 %v4033_v28, %v2550_v40  ;;  %vm4974_vm6 = vcmp.ne.s32.totalorder %v10677_v44, 0  ;;  %vm5022_vm2 = vcmp.lt.s32.totalorder %v10677_v44, 0 }
 0x313   : > { %v5399_v21 = vadd.f32 %v5398_v12, %v5352_v43  ;;  %v10718_v27 = vadd.f32 %v7026_v49, %v6770_v2  ;;  %vm10720_vm0 = vcmp.lt.s32.totalorder %v5162_v8, 16  ;;  %v10728_v36 = vadd.f32 %v4036_v38, %v2553_v42  ;;  %vm10740_vm14 = vmand %vm5022_vm2, %vm4974_vm6  ;;  %v6773_v2 = vpop.f32.mrb[44].mxu1  ;;  %v7029_v49 = vpop.f32.mrb[44].mxu0 }
 0x314   : > { %v5353_v35 = vsel %vm10689_vm8, %v10706_v19, 0.0  ;;  %v5118_v51 = vadd.s32 24, %v10677_v44  ;;  %v5119_v33 = vadd.s32 24, %v10681_v0  ;;  %v5165_v41 = vsel %vm10712_vm4, %v5117_v1, %v10637_v30 }
 0x315   : > { %v5400_v16 = vadd.f32 %v5399_v21, %v5353_v35  ;;  %v6132_v25 = vpack.c.bf16 %v10718_v27, %v10699_v63  ;;  %v6127_v8 = vpack.c.bf16 %v10728_v36, %v10706_v19  ;;  %v5354_v12 = vsel %vm10720_vm0, %v10728_v36, 0.0  ;;  %v4049_v35 = vpop.f32.mrb[45].mxu0 }
 0x316   : > { %vm4976_vm13 = vcmp.ne.s32.totalorder %v4926_v15, 0  ;;  %vm5024_vm11 = vcmp.lt.s32.totalorder %v4926_v15, 0  ;;  %vm10750_vm8 = vcmp.lt.s32.totalorder %v5164_v50, 16  ;;  %vm11917_vm2 = vcmp.ne.s32.totalorder %v10681_v0, 0  ;;  %v2566_v50 = vpop.f32.mrb[45].mxu1 }
 0x317   : > { %6164 = vst [vmem:[%s8051_s6 + $0xa8] sm:$0xff] %v6132_v25   ;;  %v5401_v30 = vadd.f32 %v5400_v16, %v5354_v12  ;;  %vm11918_vm4 = vcmp.lt.s32.totalorder %v10681_v0, 0  ;;  %v5355_v43 = vsel %vm10672_vm15, %v10699_v63, 0.0  ;;  %6163 = vst [vmem:[%s8051_s6 + $0xa0] sm:$0xff] %v6127_v8   ;;  %v5120_v42 = vadd.s32 24, %v4926_v15  ;;  %v6774_v25 = vpop.f32.mrb[46].mxu1 }
 0x318   : > { %vm10758_vm6 = vmand %vm11918_vm4, %vm11917_vm2  ;;  %v5166_v57 = vsel %vm10740_vm14, %v5118_v51, %v10677_v44  ;;  %v10769_v38 = vadd.f32 %v7029_v49, %v6773_v2  ;;  %vm10771_vm2 = vcmp.lt.s32.totalorder %v5165_v41, 16  ;;  %v5356_v40 = vsel %vm10750_vm8, %v10718_v27, 0.0  ;;  %v7030_v41 = vpop.f32.mrb[46].mxu0  ;;  %v2569_v12 = vpop.f32.mrb[47].mxu1 }
 0x319   : > { %v5402_v21 = vadd.f32 %v5401_v30, %v5355_v43  ;;  %vm10777_vm4 = vmand %vm5024_vm11, %vm4976_vm13  ;;  %v5167_v44 = vsel %vm10758_vm6, %v5119_v33, %v10681_v0  ;;  %v10787_v51 = vadd.f32 %v4049_v35, %v2566_v50  ;;  %v10789_v2 = vadd.f32 %v7030_v41, %v6774_v25  ;;  %v4052_v43 = vpop.f32.mrb[47].mxu0 }
 0x31a   : > { %vm10791_vm11 = vcmp.lt.s32.totalorder %v5166_v57, 16  ;;  %v11925_v49 = vmov 0  ;;  %v5168_v0 = vsel %vm10777_vm4, %v5120_v42, %v4926_v15  ;;  %v10800_v33 = vadd.f32 %v4052_v43, %v2569_v12 }
 0x31b   : > { %v5403_v30 = vadd.f32 %v5402_v21, %v5356_v40  ;;  %v11926_v49 = vsel %vm10791_vm11, 4294967295, %v11925_v49  ;;  %v5357_v10 = vsel %vm10771_vm2, %v10787_v51, 0.0  ;;  %vm10802_vm13 = vcmp.lt.s32.totalorder %v5167_v44, 16 }
 0x31c   : > { %11927 = vst [vmem:[#allocation64_spill] sm:$0xff] %v11926_v49  ;;  %v6142_v57 = vpack.c.bf16 %v10789_v2, %v10769_v38  ;;  %v6137_v21 = vpack.c.bf16 %v10800_v33, %v10787_v51  ;;  %v5358_v35 = vsel %vm10791_vm11, %v10800_v33, 0.0  ;;  %vm10814_vm14 = vcmp.lt.s32.totalorder %v5168_v0, 16 }
 0x31d   : > { %v5404_v50 = vadd.f32 %v5403_v30, %v5357_v10  ;;  %v11930_v15 = vmov 0  ;;  %v5359_v10 = vsel %vm10802_vm13, %v10769_v38, 0.0  ;;  %v5360_v8 = vsel %vm10814_vm14, %v10789_v2, 0.0 }
 0x31e   : > { %6166 = vst [vmem:[%s8051_s6 + $0xb8] sm:$0xff] %v6142_v57   ;;  %v11931_v15 = vsel %vm10814_vm14, 4294967295, %v11930_v15  ;;  %6165 = vst [vmem:[%s8051_s6 + $0xb0] sm:$0xff] %v6137_v21  }
 0x31f   : > { %11932 = vst [vmem:[#allocation65_spill] sm:$0xff] %v11931_v15  ;;  %v5405_v42 = vadd.f32 %v5404_v50, %v5358_v35 }
 0x321   : > { %v5406_v25 = vadd.f32 %v5405_v42, %v5359_v10 }
 0x323   : > { %v5407_v40 = vadd.f32 %v5406_v25, %v5360_v8 }
 0x325   : > { %v5408_v44 = vrot.slane %v5407_v40, 4 }
 0x327   : > { %v5409_v41 = vadd.f32 %v5408_v44, %v5407_v40 }
 0x329   : > { %v5410_v12 = vrot.slane %v5409_v41, 2 }
 0x32b   : > { %v5411_v30 = vadd.f32 %v5410_v12, %v5409_v41 }
 0x32d   : > { %v5412_v43 = vrot.slane %v5411_v30, 1 }
 0x32f   : > { %v10825_v0 = vadd.f32 %v5412_v43, %v5411_v30 }
 0x331   : > { %11933 = vst [vmem:[#allocation66_spill] sm:$0xff] %v10825_v0  ;;  %v10828_v50 = vmul.f32 0.00390625, %v10825_v0 }
 0x333   : > { %v10841_v57 = vsub.f32 %v10568_v53, %v10828_v50  ;;  %v10845_v21 = vsub.f32 %v10527_v22, %v10828_v50  ;;  %v10849_v35 = vsub.f32 %v10558_v48, %v10828_v50 }
 0x334   : > { %7805 = shalt.err (!%p7802_p1)
}
 0x335   : > { %s7806_s20 = scalar_lea.hbm %s10835_s10, 3072  ;;  %s7810_s25 = scalar_lea.hbm %s11191_s3, 6144 }
 0x336   : > { %p7807_p3 = scmp.ne.s32.totalorder %s10835_s10, %s7806_s20  ;;  %p7811_p7 = scmp.lt.u32.totalorder %s10835_s10, %s11191_s3 }
 0x337   : > { %p7812_p9 = scmp.lt.u32.totalorder %s7810_s25, %s7806_s20  ;;  %p7814_p0 = scmp.lt.u32.totalorder %s7806_s20, %s10835_s10 }
 0x338   : > { %p7808_p5 = pnand %p7807_p3, %p11934_p2 }
 0x339   : > { %p7813_p12 = por %p7812_p9, %p7811_p7 }
 0x33a   : > { %p7809_p6 = pneg %p7808_p5 }
 0x33b   : > { %p7815_p4 = por %p7814_p0, %p7813_p12 }
 0x33d   : > { %p7816_p8 = pnand %p7815_p4, %p7809_p6 }
 0x33f   : > { %7819 = shalt.err (!%p7816_p8)
}
 0x340   : > { %s7915_s5 = smov 64   ;;  %s7916_s28 = smov 4   ;;  %v10877_v22 = vsub.f32 %v10623_v23, %v10828_v50  ;;  %v10881_v48 = vsub.f32 %v10642_v54, %v10828_v50  ;;  %v10885_v53 = vsub.f32 %v10616_v18, %v10828_v50  ;;  %v10889_v42 = vsub.f32 %v10634_v11, %v10828_v50  ;;  %v11939_v30 = vld [vmem:[#allocation85_spill] sm:$0xff]  ;;  %v11952_v49 = vld [vmem:[#allocation80_spill] sm:$0xff]  ;;  %v11954_v15 = vld [vmem:[#allocation30_spill] sm:$0xff] }
 0x341   : > { %7533 = dma.vmem_to_hbm [thread:$0]  (%p11934_p2), %s10837_s8, 3072, %s10835_s10, %s5616_s11, %s7915_s5, %s7915_s5, %s7916_s28   ;;  %v10893_v10 = vsub.f32 %v10706_v19, %v10828_v50  ;;  %v5456_v23 = vsub.f32 %v10728_v36, %v10828_v50  ;;  %v10899_v25 = vsub.f32 %v10699_v63, %v10828_v50  ;;  %v5458_v54 = vsub.f32 %v10718_v27, %v10828_v50  ;;  %v11936_v36 = vld [vmem:[#allocation84_spill] sm:$0xff]  ;;  %v11937_v63 = vld [vmem:[#allocation47_spill] sm:$0xff]  ;;  %v11938_v27 = vld [vmem:[#allocation82_spill] sm:$0xff] }
 0x342   : > { %v5459_v18 = vsub.f32 %v10787_v51, %v10828_v50  ;;  %v5460_v11 = vsub.f32 %v10800_v33, %v10828_v50  ;;  %v5461_v19 = vsub.f32 %v10769_v38, %v10828_v50  ;;  %v5462_v8 = vsub.f32 %v10789_v2, %v10828_v50  ;;  %s5968_s8 = sshll.u32 %s7900_s18, 5  ;;  %s5653_s10 = sshll.u32 %s8053_s9, 4  ;;  %v12033_v1 = vld [vmem:[#allocation66_spill] sm:$0xff]  ;;  %s11140_s10 = int_to_ptr.vmem [resolvable:$true] %s5653_s10 }
 0x343   : > { %11935 = vst [vmem:[#allocation68_spill] sm:$0xff] %v10899_v25  ;;  %v5415_v40 = vsub.f32 %v11936_v36, %v10828_v50  ;;  %v5416_v44 = vsub.f32 %v11937_v63, %v10828_v50  ;;  %v5417_v41 = vsub.f32 %v11938_v27, %v10828_v50  ;;  %v5418_v33 = vsub.f32 %v11939_v30, %v10828_v50  ;;  %v11942_v63 = vld [vmem:[#allocation44_spill] sm:$0xff]  ;;  %v11945_v30 = vld [vmem:[#allocation74_spill] sm:$0xff]  ;;  %s11138_s29 = scalar_lea.hbm %s11192_s4, %s5968_s8  ;;  %s5621_s13 = scalar_lea.sflag [#allocation9], %s8037_s30 }
 0x344   : > { %v10919_v43 = vmul.f32 %v5456_v23, %v5456_v23  ;;  %v10921_v38 = vmul.f32 %v5458_v54, %v5458_v54  ;;  %v10923_v0 = vmul.f32 %v5459_v18, %v5459_v18  ;;  %v10925_v2 = vmul.f32 %v5460_v11, %v5460_v11  ;;  %v11947_v54 = vld [vmem:[#allocation20_spill] sm:$0xff]  ;;  %s7820_s14 = scalar_lea.vmem %s11140_s10, 32  ;;  %s7917_s18 = smov [#allocation8]  }
 0x345   : > { %v5463_v12 = vmul.f32 %v5415_v40, %v5415_v40  ;;  %v5464_v51 = vmul.f32 %v5416_v44, %v5416_v44  ;;  %v10927_v36 = vmul.f32 %v5461_v19, %v5461_v19  ;;  %v10929_v59 = vmul.f32 %v5462_v8, %v5462_v8  ;;  %v11943_v44 = vld [vmem:[#allocation73_spill] sm:$0xff]  ;;  %v11951_v11 = vld [vmem:[#allocation40_spill] sm:$0xff]  ;;  %p7821_p10 = scmp.ne.s32.totalorder %s11140_s10, %s7820_s14  ;;  %s7824_s20 = sshll.u32 %s7917_s18, 4  ;;  %s7825_s20 = int_to_ptr.vmem [resolvable:$false] %s7824_s20 }
 0x346   : > { %11940 = vst [vmem:[#allocation79_spill] sm:$0xff] %v10925_v2  ;;  %v5419_v27 = vsub.f32 %v11942_v63, %v10828_v50  ;;  %v5465_v40 = vmul.f32 %v5417_v41, %v5417_v41  ;;  %vm11944_vm6 = vnez %v11943_v44  ;;  %vm11946_vm4 = vnez %v11945_v30  ;;  %v11948_v63 = vld [vmem:[#allocation33_spill] sm:$0xff]  ;;  %s7826_s21 = scalar_lea.vmem %s7825_s20, 64  ;;  %p7827_p1 = scmp.lt.s32.totalorder %s11140_s10, %s7825_s20 }
 0x347   : > { %11941 = vst [vmem:[#allocation78_spill] sm:$0xff] %v10927_v36  ;;  %v5511_v25 = vsel %vm11944_vm6, %v5463_v12, 0.0  ;;  %v5512_v23 = vsel %vm11946_vm4, %v5464_v51, 0.0  ;;  %v5420_v18 = vsub.f32 %v11947_v54, %v10828_v50  ;;  %v5466_v31 = vmul.f32 %v5418_v33, %v5418_v33  ;;  %v11949_v54 = vld [vmem:[#allocation76_spill] sm:$0xff]  ;;  %p7822_p11 = pnand %p7821_p10, %p11934_p2  ;;  %p7828_p3 = scmp.lt.s32.totalorder %s7826_s21, %s7820_s14 }
 0x348   : > { %v5559_v33 = vadd.f32 %v5512_v23, %v5511_v25  ;;  %v5421_v44 = vsub.f32 %v11948_v63, %v10828_v50  ;;  %v5467_v30 = vmul.f32 %v5419_v27, %v5419_v27  ;;  %vm11950_vm6 = vnez %v11949_v54  ;;  %v11955_v23 = vld [vmem:[#allocation83_spill] sm:$0xff]  ;;  %v11957_v54 = vld [vmem:[#allocation48_spill] sm:$0xff] }
 0x349   : > { %v5513_v8 = vsel %vm11950_vm6, %v5465_v40, 0.0  ;;  %v5422_v41 = vsub.f32 %v11951_v11, %v10828_v50  ;;  %v5468_v2 = vmul.f32 %v5420_v18, %v5420_v18  ;;  %vm11953_vm4 = vnez %v11952_v49  ;;  %p7823_p13 = pneg %p7822_p11  ;;  %p7829_p5 = por %p7828_p3, %p7827_p1 }
 0x34a   : > { %v5560_v19 = vadd.f32 %v5559_v33, %v5513_v8  ;;  %v5514_v12 = vsel %vm11953_vm4, %v5466_v31, 0.0  ;;  %v5423_v51 = vsub.f32 %v11954_v15, %v10828_v50  ;;  %v5469_v25 = vmul.f32 %v5421_v44, %v5421_v44  ;;  %v11958_v33 = vld [vmem:[#allocation35_spill] sm:$0xff]  ;;  %v11962_v44 = vld [vmem:[#allocation21_spill] sm:$0xff] }
 0x34b   : > { %vm11956_vm14 = vnez %v11955_v23  ;;  %v5424_v40 = vsub.f32 %v11957_v54, %v10828_v50  ;;  %v5470_v8 = vmul.f32 %v5422_v41, %v5422_v41  ;;  %vm11959_vm6 = vnez %v11958_v33  ;;  %v11963_v23 = vld [vmem:[#allocation45_spill] sm:$0xff]  ;;  %v11965_v54 = vld [vmem:[#allocation23_spill] sm:$0xff]  ;;  %v11966_v33 = vld [vmem:[#allocation34_spill] sm:$0xff]  ;;  %p7830_p6 = pnand %p7829_p5, %p7823_p13 }
 0x34c   : > { %v5561_v36 = vadd.f32 %v5560_v19, %v5514_v12  ;;  %v5515_v63 = vsel %vm11956_vm14, %v5467_v30, 0.0  ;;  %v5516_v11 = vsel %vm11959_vm6, %v5468_v2, 0.0  ;;  %v5425_v31 = vsub.f32 %v9837_v26, %v10828_v50  ;;  %v11960_v19 = vld [vmem:[#allocation29_spill] sm:$0xff] }
 0x34d   : > { %v5471_v49 = vmul.f32 %v5423_v51, %v5423_v51  ;;  %vm11961_vm4 = vnez %v11960_v19  ;;  %v5426_v30 = vsub.f32 %v11962_v44, %v10828_v50  ;;  %vm11964_vm14 = vnez %v11963_v23  ;;  %v11969_v19 = vld [vmem:[#allocation42_spill] sm:$0xff]  ;;  %v11971_v44 = vld [vmem:[#allocation53_spill] sm:$0xff]  ;;  %v12026_v61 = vld [vmem:[#allocation79_spill] sm:$0xff] }
 0x34e   : > { %v5562_v27 = vadd.f32 %v5561_v36, %v5515_v63  ;;  %v5517_v15 = vsel %vm11961_vm4, %v5469_v25, 0.0  ;;  %v5472_v36 = vmul.f32 %v5424_v40, %v5424_v40  ;;  %v5518_v63 = vsel %vm11964_vm14, %v5470_v8, 0.0  ;;  %v11972_v23 = vld [vmem:[#allocation37_spill] sm:$0xff] }
 0x34f   : > { %v5427_v2 = vsub.f32 %v11965_v54, %v10828_v50  ;;  %vm11967_vm6 = vnez %v11966_v33  ;;  %vm11970_vm4 = vnez %v11969_v19  ;;  %v5429_v8 = vsub.f32 %v11971_v44, %v10828_v50  ;;  %v11974_v54 = vld [vmem:[#allocation36_spill] sm:$0xff] }
 0x350   : > { %v5563_v18 = vadd.f32 %v5562_v27, %v5516_v11  ;;  %v5473_v27 = vmul.f32 %v5425_v31, %v5425_v31  ;;  %v5519_v26 = vsel %vm11967_vm6, %v5471_v49, 0.0  ;;  %v11968_v11 = vld [vmem:[#allocation59_spill] sm:$0xff]  ;;  %vm11973_vm14 = vnez %v11972_v23  ;;  %v11980_v44 = vld [vmem:[#allocation52_spill] sm:$0xff] }
 0x351   : > { %v5428_v25 = vsub.f32 %v11968_v11, %v10828_v50  ;;  %v5430_v49 = vsub.f32 %v9995_v46, %v10828_v50  ;;  %vm11975_vm6 = vnez %v11974_v54  ;;  %v11984_v54 = vld [vmem:[#allocation22_spill] sm:$0xff] }
 0x352   : > { %v5564_v12 = vadd.f32 %v5563_v18, %v5517_v15  ;;  %v5474_v18 = vmul.f32 %v5426_v30, %v5426_v30  ;;  %v5520_v15 = vsel %vm11970_vm4, %v5472_v36, 0.0  ;;  %v5431_v36 = vsub.f32 %v10102_v24, %v10828_v50 }
 0x353   : > { %v5478_v19 = vmul.f32 %v5430_v49, %v5430_v49 }
 0x354   : > { %v5565_v41 = vadd.f32 %v5564_v12, %v5518_v63  ;;  %v5475_v12 = vmul.f32 %v5427_v2, %v5427_v2  ;;  %v5521_v63 = vsel %vm11973_vm14, %v5473_v27, 0.0  ;;  %v5522_v33 = vsel %vm11975_vm6, %v5474_v18, 0.0 }
 0x355   : > { %v5432_v27 = vsub.f32 %v10128_v20, %v10828_v50  ;;  %v5433_v18 = vsub.f32 %v10076_v14, %v10828_v50  ;;  %vm11981_vm6 = vnez %v11980_v44 }
 0x356   : > { %v5566_v51 = vadd.f32 %v5565_v41, %v5519_v26  ;;  %v5476_v41 = vmul.f32 %v5428_v25, %v5428_v25  ;;  %v5477_v26 = vmul.f32 %v5429_v8, %v5429_v8 }
 0x357   : > { %v5480_v23 = vmul.f32 %v5432_v27, %v5432_v27 }
 0x358   : > { %v5567_v40 = vadd.f32 %v5566_v51, %v5520_v15  ;;  %v11976_v51 = vld [vmem:[#allocation28_spill] sm:$0xff]  ;;  %v11978_v15 = vld [vmem:[#allocation39_spill] sm:$0xff]  ;;  %v5525_v24 = vsel %vm11981_vm6, %v5477_v26, 0.0 }
 0x359   : > { %vm11977_vm4 = vnez %v11976_v51  ;;  %vm11979_vm14 = vnez %v11978_v15  ;;  %v11987_v51 = vld [vmem:[#allocation24_spill] sm:$0xff] }
 0x35a   : > { %v5568_v31 = vadd.f32 %v5567_v40, %v5521_v63  ;;  %v5523_v11 = vsel %vm11977_vm4, %v5475_v12, 0.0  ;;  %v5524_v46 = vsel %vm11979_vm14, %v5476_v41, 0.0  ;;  %v5479_v40 = vmul.f32 %v5431_v36, %v5431_v36 }
 0x35b   : > { %v5434_v12 = vsub.f32 %v10109_v3, %v10828_v50  ;;  %vm11982_vm4 = vnez %v11733_v56  ;;  %v5481_v41 = vmul.f32 %v5433_v18, %v5433_v18  ;;  %vm11985_vm14 = vnez %v11984_v54  ;;  %v11989_v56 = vld [vmem:[#allocation46_spill] sm:$0xff] }
 0x35c   : > { %v5569_v30 = vadd.f32 %v5568_v31, %v5522_v33  ;;  %v5526_v20 = vsel %vm11982_vm4, %v5478_v19, 0.0  ;;  %v11983_v31 = vld [vmem:[#allocation54_spill] sm:$0xff]  ;;  %v5527_v14 = vsel %vm11985_vm14, %v5479_v40, 0.0  ;;  %vm11988_vm6 = vnez %v11987_v51  ;;  %v11990_v19 = vld [vmem:[#allocation57_spill] sm:$0xff]  ;;  %v11992_v40 = vld [vmem:[#allocation27_spill] sm:$0xff] }
 0x35d   : > { %v5435_v49 = vsub.f32 %v11983_v31, %v10828_v50  ;;  %v5482_v26 = vmul.f32 %v5434_v12, %v5434_v12  ;;  %v5528_v3 = vsel %vm11988_vm6, %v5480_v23, 0.0  ;;  %vm11991_vm4 = vnez %v11990_v19  ;;  %v11994_v23 = vld [vmem:[#allocation25_spill] sm:$0xff] }
 0x35e   : > { %v5570_v2 = vadd.f32 %v5569_v30, %v5523_v11  ;;  %v11986_v30 = vld [vmem:[#allocation38_spill] sm:$0xff]  ;;  %v5529_v15 = vsel %vm11991_vm4, %v5481_v41, 0.0  ;;  %vm11993_vm14 = vnez %v11992_v40  ;;  %vm11995_vm6 = vnez %v11994_v23 }
 0x35f   : > { %v5436_v36 = vsub.f32 %v11986_v30, %v10828_v50  ;;  %v5483_v27 = vmul.f32 %v5435_v49, %v5435_v49  ;;  %v5530_v44 = vsel %vm11993_vm14, %v5482_v26, 0.0  ;;  %v5440_v31 = vsub.f32 %v10363_v52, %v10828_v50  ;;  %v11997_v30 = vld [vmem:[#allocation26_spill] sm:$0xff] }
 0x360   : > { %v5571_v25 = vadd.f32 %v5570_v2, %v5524_v46  ;;  %v5437_v2 = vsub.f32 %v11989_v56, %v10828_v50  ;;  %vm11998_vm4 = vnez %v11997_v30  ;;  %v5442_v26 = vsub.f32 %v10337_v39, %v10828_v50 }
 0x361   : > { %v5484_v18 = vmul.f32 %v5436_v36, %v5436_v36  ;;  %v5488_v51 = vmul.f32 %v5440_v31, %v5440_v31  ;;  %vm11999_vm14 = vnez %v11791_v4  ;;  %v5444_v19 = vsub.f32 %v10460_v5, %v10828_v50  ;;  %v12007_v31 = vld [vmem:[#allocation58_spill] sm:$0xff] }
 0x362   : > { %v5572_v8 = vadd.f32 %v5571_v25, %v5525_v24  ;;  %v5438_v25 = vsub.f32 %v10207_v17, %v10828_v50  ;;  %v5485_v12 = vmul.f32 %v5437_v2, %v5437_v2  ;;  %v12000_v2 = vld [vmem:[#allocation56_spill] sm:$0xff]  ;;  %v5445_v4 = vsub.f32 %v10417_v62, %v10828_v50 }
 0x363   : > { %v5532_v17 = vsel %vm10116_vm7, %v5484_v18, 0.0  ;;  %vm12001_vm7 = vnez %v12000_v2 }
 0x364   : > { %v5573_v63 = vadd.f32 %v5572_v8, %v5526_v20  ;;  %v5439_v8 = vsub.f32 %v10329_v37, %v10828_v50  ;;  %v5531_v20 = vsel %vm11995_vm6, %v5483_v27, 0.0  ;;  %v5486_v49 = vmul.f32 %v5438_v25, %v5438_v25 }
 0x365   : > { %v5533_v37 = vsel %vm11998_vm4, %v5485_v12, 0.0  ;;  %v12005_v12 = vld [vmem:[#allocation55_spill] sm:$0xff] }
 0x366   : > { %v5574_v33 = vadd.f32 %v5573_v63, %v5527_v14  ;;  %v5441_v14 = vsub.f32 %v10311_v47, %v10828_v50  ;;  %v5534_v52 = vsel %vm11999_vm14, %v5486_v49, 0.0  ;;  %vm12006_vm4 = vnez %v12005_v12 }
 0x367   : > { %vm12008_vm14 = vnez %v12007_v31  ;;  %v12030_v31 = vld [vmem:[#allocation65_spill] sm:$0xff] }
 0x368   : > { %v5575_v11 = vadd.f32 %v5574_v33, %v5528_v3  ;;  %v5487_v33 = vmul.f32 %v5439_v8, %v5439_v8  ;;  %v5489_v56 = vmul.f32 %v5441_v14, %v5441_v14  ;;  %v5492_v8 = vmul.f32 %v5444_v19, %v5444_v19 }
 0x36a   : > { %v5576_v46 = vadd.f32 %v5575_v11, %v5529_v15  ;;  %v5443_v11 = vsub.f32 %v10437_v32, %v10828_v50  ;;  %v5535_v47 = vsel %vm12001_vm7, %v5487_v33, 0.0  ;;  %v5490_v15 = vmul.f32 %v5442_v26, %v5442_v26 }
 0x36b   : > { %v5537_v32 = vsel %vm10259_vm10, %v5489_v56, 0.0  ;;  %v5497_v26 = vmul.f32 %v10845_v21, %v10845_v21  ;;  %v5500_v21 = vmul.f32 %v10881_v48, %v10881_v48  ;;  %v5503_v48 = vmul.f32 %v10893_v10, %v10893_v10 }
 0x36c   : > { %v5577_v24 = vadd.f32 %v5576_v46, %v5530_v44  ;;  %v12002_v46 = vld [vmem:[#allocation49_spill] sm:$0xff]  ;;  %v5491_v18 = vmul.f32 %v5443_v11, %v5443_v11  ;;  %v5538_v5 = vsel %vm12006_vm4, %v5490_v15, 0.0  ;;  %v12021_v10 = vsel %vm10720_vm0, %v10919_v43, 0.0 }
 0x36d   : > { %vm12003_vm6 = vnez %v12002_v46  ;;  %v5545_v6 = vsel %vm10479_vm1, %v5497_v26, 0.0  ;;  %vm12014_vm1 = vnez %v11885_v58  ;;  %v12016_v46 = vld [vmem:[#allocation31_spill] sm:$0xff]  ;;  %vm5612_vm0 = vcmask 1040384  }
 0x36e   : > { %v5578_v63 = vadd.f32 %v5577_v24, %v5531_v20  ;;  %v5536_v39 = vsel %vm12003_vm6, %v5488_v51, 0.0  ;;  %v5446_v24 = vsub.f32 %v10442_v34, %v10828_v50  ;;  %v5447_v20 = vsub.f32 %v10536_v55, %v10828_v50 }
 0x36f   : > { %v5539_v62 = vsel %vm12008_vm14, %v5491_v18, 0.0  ;;  %v5548_v60 = vsel %vm12014_vm1, %v5500_v21, 0.0 }
 0x370   : > { %v5579_v54 = vadd.f32 %v5578_v63, %v5532_v17  ;;  %v5493_v63 = vmul.f32 %v5445_v4, %v5445_v4  ;;  %v5494_v41 = vmul.f32 %v5446_v24, %v5446_v24  ;;  %v12009_v17 = vld [vmem:[#allocation61_spill] sm:$0xff]  ;;  %v5495_v33 = vmul.f32 %v5447_v20, %v5447_v20  ;;  %v12019_v4 = vld [vmem:[#allocation63_spill] sm:$0xff]  ;;  %v12028_v20 = vld [vmem:[#allocation78_spill] sm:$0xff] }
 0x371   : > { %vm12010_vm10 = vnez %v12009_v17  ;;  %vm12020_vm7 = vnez %v12019_v4 }
 0x372   : > { %v5580_v36 = vadd.f32 %v5579_v54, %v5533_v37  ;;  %v5540_v54 = vsel %vm12010_vm10, %v5492_v8, 0.0  ;;  %v5541_v30 = vsel %vm10376_vm5, %v5493_v63, 0.0  ;;  %v5542_v55 = vsel %vm10399_vm3, %v5494_v41, 0.0 }
 0x373   : > { %v5543_v51 = vsel %vm10424_vm9, %v5495_v33, 0.0  ;;  %vm12012_vm9 = vnez %v11874_v13  ;;  %vm12013_vm5 = vnez %v11881_v45  ;;  %vm12015_vm3 = vnez %v11888_v9 }
 0x374   : > { %v5581_v3 = vadd.f32 %v5580_v36, %v5534_v52  ;;  %v5496_v36 = vmul.f32 %v10841_v57, %v10841_v57  ;;  %v5499_v57 = vmul.f32 %v10877_v22, %v10877_v22  ;;  %v5502_v22 = vmul.f32 %v10889_v42, %v10889_v42 }
 0x375   : > { %v5551_v58 = vsel %vm12020_vm7, %v5503_v48, 0.0  ;;  %v12024_v8 = vsel %vm10771_vm2, %v10923_v0, 0.0  ;;  %v12029_v63 = vsel %vm10802_vm13, %v12028_v20, 0.0 }
 0x376   : > { %v5582_v27 = vadd.f32 %v5581_v3, %v5535_v47  ;;  %v5498_v3 = vmul.f32 %v10849_v35, %v10849_v35  ;;  %v5544_v11 = vsel %vm10449_vm12, %v5496_v36, 0.0  ;;  %v5501_v35 = vmul.f32 %v10885_v53, %v10885_v53 }
 0x377   : > { %v5547_v7 = vsel %vm12013_vm5, %v5499_v57, 0.0  ;;  %vm12017_vm12 = vnez %v12016_v46 }
 0x378   : > { %v5583_v25 = vadd.f32 %v5582_v27, %v5536_v39  ;;  %v5546_v29 = vsel %vm12012_vm9, %v5498_v3, 0.0  ;;  %v5549_v13 = vsel %vm12015_vm3, %v5501_v35, 0.0  ;;  %v5550_v53 = vsel %vm12017_vm12, %v5502_v22, 0.0  ;;  %v12018_v39 = vld [vmem:[#allocation68_spill] sm:$0xff] }
 0x37a   : > { %v5584_v44 = vadd.f32 %v5583_v25, %v5537_v32  ;;  %v5505_v25 = vmul.f32 %v12018_v39, %v12018_v39 }
 0x37c   : > { %v5585_v23 = vadd.f32 %v5584_v44, %v5538_v5  ;;  %v5553_v40 = vsel %vm10672_vm15, %v5505_v25, 0.0  ;;  %v12023_v44 = vsel %vm10750_vm8, %v10921_v38, 0.0  ;;  %vm12031_vm15 = vnez %v12030_v31 }
 0x37d   : > { %v12032_v38 = vsel %vm12031_vm15, %v10929_v59, 0.0 }
 0x37e   : > { %v5586_v49 = vadd.f32 %v5585_v23, %v5539_v62  ;;  %v12027_v23 = vsel %vm10791_vm11, %v12026_v61, 0.0 }
 0x380   : > { %v5587_v14 = vadd.f32 %v5586_v49, %v5540_v54 }
 0x382   : > { %v5588_v37 = vadd.f32 %v5587_v14, %v5541_v30 }
 0x384   : > { %v5589_v50 = vadd.f32 %v5588_v37, %v5542_v55 }
 0x386   : > { %v5590_v52 = vadd.f32 %v5589_v50, %v5543_v51 }
 0x388   : > { %v5591_v56 = vadd.f32 %v5590_v52, %v5544_v11 }
 0x38a   : > { %v5592_v2 = vadd.f32 %v5591_v56, %v5545_v6 }
 0x38c   : > { %v5593_v47 = vadd.f32 %v5592_v2, %v5546_v29 }
 0x38e   : > { %v5594_v27 = vadd.f32 %v5593_v47, %v5547_v7 }
 0x390   : > { %v5595_v19 = vadd.f32 %v5594_v27, %v5548_v60 }
 0x392   : > { %v5596_v15 = vadd.f32 %v5595_v19, %v5549_v13 }
 0x394   : > { %v5597_v45 = vadd.f32 %v5596_v15, %v5550_v53 }
 0x396   : > { %v5598_v42 = vadd.f32 %v5597_v45, %v5551_v58 }
 0x398   : > { %v5599_v9 = vadd.f32 %v5598_v42, %v12021_v10 }
 0x39a   : > { %v5600_v32 = vadd.f32 %v5599_v9, %v5553_v40 }
 0x39c   : > { %v5601_v24 = vadd.f32 %v5600_v32, %v12023_v44 }
 0x39e   : > { %v5602_v12 = vadd.f32 %v5601_v24, %v12024_v8 }
 0x3a0   : > { %v5603_v43 = vadd.f32 %v5602_v12, %v12027_v23 }
 0x3a2   : > { %v5604_v28 = vadd.f32 %v5603_v43, %v12029_v63 }
 0x3a4   : > { %v5605_v16 = vadd.f32 %v5604_v28, %v12032_v38 }
 0x3a6   : > { %v5606_v62 = vrot.slane %v5605_v16, 4 }
 0x3a8   : > { %v5607_v0 = vadd.f32 %v5606_v62, %v5605_v16 }
 0x3aa   : > { %v5608_v49 = vrot.slane %v5607_v0, 2 }
 0x3ac   : > { %v5609_v41 = vadd.f32 %v5608_v49, %v5607_v0 }
 0x3ae   : > { %v5610_v17 = vrot.slane %v5609_v41, 1 }
 0x3b0   : > { %v5611_v54 = vadd.f32 %v5610_v17, %v5609_v41 }
 0x3b2   : > { %v5613_v59 = vsel %vm5612_vm0, %v12033_v1, %v5611_v54 }
 0x3b3   : > { %5614 = vst [vmem:[%s8053_s9] sm:$0x3] %v5613_v59 }
 0x3b4   : > { %7833 = shalt.err (!%p7830_p6)
}
 0x3b5   : > { %s7834_s30 = scalar_lea.hbm %s11138_s29, 32  ;;  %s7838_s25 = scalar_lea.hbm %s11192_s4, 64 }
 0x3b6   : > { %p7835_p7 = scmp.ne.s32.totalorder %s11138_s29, %s7834_s30  ;;  %p7839_p0 = scmp.lt.u32.totalorder %s11138_s29, %s11192_s4 }
 0x3b7   : > { %p7840_p4 = scmp.lt.u32.totalorder %s7838_s25, %s7834_s30  ;;  %p7842_p10 = scmp.lt.u32.totalorder %s7834_s30, %s11138_s29 }
 0x3b8   : > { %p7836_p9 = pnand %p7835_p7, %p11934_p2 }
 0x3b9   : > { %p7841_p8 = por %p7840_p4, %p7839_p0 }
 0x3ba   : > { %p7837_p12 = pneg %p7836_p9 }
 0x3bb   : > { %p7843_p11 = por %p7842_p10, %p7841_p8 }
 0x3bd   : > { %p7844_p13 = pnand %p7843_p11, %p7837_p12 }
 0x3bf   : > { %7847 = shalt.err (!%p7844_p13)
}
 0x3c0   : > { %7534 = dma.vmem_to_hbm [thread:$0]  (%p11934_p2), %s11140_s10, 32, %s11138_s29, %s5621_s13  }
 0x3c1 PF: > { %p7550_p1 = scmp.ge.s32.totalorder %s7908_s19, 2  ;;  %s5665_s5 = sand.u32 1, %s7888_s15  }
 0x3c2   : > { %p12034_p3 = scmp.ne.s32.totalorder %s11384_s26, 0  ;;  %s5666_s28 = scalar_lea.sflag [#allocation6], %s5665_s5 }
 0x3c4   : > { %p7542_p5 = pnand %p7550_p1, %p12034_p3 }
 0x3c6   : > { %7879 = dma.done.wait (!%p7542_p5), %s5666_s28, 3072  }
 0x3c7   : > { %7881 = vsyncadd (!%p7542_p5), %s5666_s28, 4294964224  ;;  %s5675_s8 = scalar_lea.sflag [#allocation9], %s5665_s5 }
 0x3c8   : > { %7883 = dma.done.wait (!%p7542_p5), %s5675_s8, 32  }
 0x3c9   : > { %7885 = vsyncadd (!%p7542_p5), %s5675_s8, 4294967264  ;;  %s22_s19 = sadd.s32 1, %s7908_s19   ;;  %s12035_s15 = smov %s7892_s16 }
 0x3ca   : > { %p19_p6 = scmp.ge.s32.totalorder %s22_s19, 4   ;;  %s12036_s16 = smov %s7896_s17 }
 0x3cb   : > { %s12037_s17 = smov %s7996_s27  ;;  %s12038_s18 = smov %s7904_s2 }
 0x3cc   : > { %s12039_s2 = smov %s12041_s22  ;;  %21 = sbr.rel (!%p19_p6) target bundleno = 7 (0x7), region = 113 }
 0x3d3   :  { %5680 = vsyncpa [#allocation5], 1 }
 0x3d4   :  { %5682 = vsyncpa [#allocation5 + $0x1], 1 }
 0x3d5   :  { %5683 = vsyncpa [#allocation6], 1 }
 0x3d6   :  { %5685 = vsyncpa [#allocation6 + $0x1], 1 }
 0x3d7   :  { %5686 = vsyncpa [#allocation9], 1 }
 0x3d8   :  { %5688 = vsyncpa [#allocation9 + $0x1], 1 }
 0x3d9   :  { %5689 = vsyncmov [#allocation3] }
 0x3dc   :  { %s5690_s24 = vpop.sfrf %5689 }
 0x3dd   :  { %p5971_p2 = scmp.ne.s32.totalorder %s5690_s24, 0 }
 0x3df   :  { %5694 = shalt.err (%p5971_p2)  }
 0x3e0   :  { %5696 = vsyncmov [#allocation3 + $0x1] }
 0x3e3   :  { %s5697_s26 = vpop.sfrf %5696 }
 0x3e4   :  { %p5972_p7 = scmp.ne.s32.totalorder %s5697_s26, 0 }
 0x3e6   :  { %5701 = shalt.err (%p5972_p7)  }

</bundles_post_ra>
